<compile_context>
chip_gen: v5e
topology: v5e:2x2
jax: 0.10.0
libtpu: 0.0.40
codegen_flags: <defaults>
</compile_context>

<pallas_src>
import functools
import math

import jax
import jax.numpy as jnp
from jax import lax
from jax.experimental import pallas as pl


_LN_EPS = 1e-5                  # PyTorch nn.LayerNorm default


def _mm(a, b):
    """2-D MXU matmul with f32 accumulation.

    TODO(synk): for production sizes on v6e/v7x cast operands to bf16 here (keep
    preferred_element_type=f32); keep elementwise math f32 (v5e has no bf16 VPU/EUP).
    """
    return jnp.dot(a, b, preferred_element_type=jnp.float32)


def _erf(x):
    # Abramowitz & Stegun 7.1.26 rational approximation, |err| < 1.5e-7.  Lets the
    # exact (erf-based) nn.GELU() be evaluated with only exp/abs/where.
    ax = jnp.abs(x)
    t = 1.0 / (1.0 + 0.3275911 * ax)
    poly = ((((1.061405429 * t - 1.453152027) * t + 1.421413741) * t
             - 0.284496736) * t + 0.254829592) * t
    y = 1.0 - poly * jnp.exp(-ax * ax)
    return jnp.where(x >= 0, y, -y)


def _gelu(x):
    # nn.GELU() default (erf-based): 0.5 * x * (1 + erf(x / sqrt(2)))
    return 0.5 * x * (1.0 + _erf(x * (1.0 / math.sqrt(2.0))))


def _layernorm(x, w, b):
    mu = jnp.mean(x, axis=-1, keepdims=True)
    var = jnp.mean(jnp.square(x - mu), axis=-1, keepdims=True)
    return (x - mu) * lax.rsqrt(var + _LN_EPS) * w + b


# ----------------------------- fused kernel builder -----------------------------

def _make_fused_kernel(*, batch, seq, num_heads, scaling,
                       has_attn, has_qkv, has_head, emit_probs):
    """One configurable full-block kernel.

    has_attn   : consume (q, k, v, x, layer-i attn/FFN weights) and advance the
                 residual stream through layer i (kept in vregs).
    has_qkv    : apply the NEXT layer's LayerNorm1 and emit its q/k/v projections.
    has_head   : mean-pool + LayerNorm + 3 Linears (classification head).
    emit_probs : write the attention probabilities to HBM (last layer only).
    """

    def kernel(*refs):
        it = iter(refs)
        # ---------------- inputs ----------------
        if has_attn:
            q_ref = next(it); k_ref = next(it); v_ref = next(it)
        x_ref = next(it)
        if has_attn:
            wo_t_ref = next(it); bo_ref = next(it)
            ln2w_ref = next(it); ln2b_ref = next(it)
            w1_ref = next(it); b1_ref = next(it)
            w2_ref = next(it); b2_ref = next(it)
        if has_qkv:
            ln1w_ref = next(it); ln1b_ref = next(it)
            wq_ref = next(it); bq_ref = next(it)
            wk_ref = next(it); bk_ref = next(it)
            wv_ref = next(it); bv_ref = next(it)
        if has_head:
            hlnw_ref = next(it); hlnb_ref = next(it)
            hw1_ref = next(it); hb1_ref = next(it)
            hw2_ref = next(it); hb2_ref = next(it)
            hw3_ref = next(it); hb3_ref = next(it)
        # ---------------- outputs ----------------
        if has_attn and not has_head:
            xnew_ref = next(it)
        if has_qkv:
            qo_ref = next(it); ko_ref = next(it); vo_ref = next(it)
        if has_head:
            logits_ref = next(it)
        if emit_probs:
            probs_ref = next(it)

        x = x_ref[...]                                   # (B*S, E) residual stream

        if has_attn:
            # Scale q (the (BH,S,Dh) operand) instead of the (BH,S,S) scores.
            q = q_ref[...] * scaling
            k = k_ref[...]
            v = v_ref[...]
            # All B*H heads in one batched einsum (no per-head grid steps / loops).
            scores = jnp.einsum('xqd,xkd->xqk', q, k,
                                preferred_element_type=jnp.float32)
            scores = scores - jnp.max(scores, axis=-1, keepdims=True)
            num = jnp.exp(scores)
            # Exact divide: the last layer's probs are a returned module output.
            p = num / jnp.sum(num, axis=-1, keepdims=True)
            if emit_probs:
                probs_ref[...] = p

            ctx = jnp.einsum('xqk,xkd->xqd', p, v,
                             preferred_element_type=jnp.float32)   # (B*H, S, Dh)

            # out_proj with torch's context.transpose(1,2).view(B,S,E) folded in:
            #   out[b,s,:] = sum_h ctx[b,h,s,:] @ Wo[h*Dh:(h+1)*Dh, :]
            # One batched (B*H) matmul against the per-head Wo slices, then a sum
            # over heads (H-1 vector adds).  Same FLOPs as the dense (B*S,E)@(E,E)
            # out_proj; the transposed context tensor is never materialized.
            ctxo = jnp.einsum('xsd,xde->xse', ctx, wo_t_ref[...],
                              preferred_element_type=jnp.float32)  # (B*H, S, E)
            e_dim = ctxo.shape[-1]
            ctxo4 = ctxo.reshape(batch, num_heads, seq, e_dim)     # leading split
            attn_out = ctxo4[:, 0]
            for hh in range(1, num_heads):                         # vector adds only
                attn_out = attn_out + ctxo4[:, hh]                 # (B, S, E)
            # tile-aligned (seq multiple-of-8) sublane merge -> 2-D residual stream
            attn_out = attn_out.reshape(batch * seq, e_dim)

            # residual 1 (bias broadcast added once to the full block)
            x = x + attn_out + bo_ref[...]

            # FFN residual block: LN2 -> fc1 -> GELU -> fc2 -> + residual.
            xn2 = _layernorm(x, ln2w_ref[...], ln2b_ref[...])
            hid = _gelu(_mm(xn2, w1_ref[...]) + b1_ref[...])
            x = x + _mm(hid, w2_ref[...]) + b2_ref[...]

        if has_attn and not has_head:
            xnew_ref[...] = x                            # one whole-block store

        if has_qkv:
            # Next layer's LayerNorm1 + Q/K/V projections; emitted as three
            # contiguous (B*S, E) slabs so the torch `.view(B,H,S,Dh)` between
            # calls is a zero-copy XLA reshape.
            xn1 = _layernorm(x, ln1w_ref[...], ln1b_ref[...])
            qo_ref[...] = _mm(xn1, wq_ref[...]) + bq_ref[...]
            ko_ref[...] = _mm(xn1, wk_ref[...]) + bk_ref[...]
            vo_ref[...] = _mm(xn1, wv_ref[...]) + bv_ref[...]

        if has_head:
            # ClassificationHead (mask=None, other_feature=None):
            # mean over seq -> LN -> Linear(E,512) -> Linear(512,256) -> Linear(256,n)
            xb = x.reshape(batch, seq, x.shape[-1])      # tile-aligned sublane split
            pooled = jnp.sum(xb, axis=1) * (1.0 / seq)   # x.mean(1)
            hn = _layernorm(pooled, hlnw_ref[...], hlnb_ref[...])
            c = _mm(hn, hw1_ref[...]) + hb1_ref[...]
            c = _mm(c, hw2_ref[...]) + hb2_ref[...]
            logits_ref[...] = _mm(c, hw3_ref[...]) + hb3_ref[...]

    return kernel


# ----------------------------- forward (depth + 1 pallas_calls) -----------------------------

def seva_forward(params, x, *, num_heads):
    b, s, e = x.shape
    h = num_heads
    dh = e // h
    rows = b * s
    scaling = dh ** (-0.5)
    layers = params["layers"]
    depth = len(layers)
    hp = params["head"]
    n_classes = hp["w3"].shape[1]

    def heads(a2d):
        # Exact torch `.view(B, H, S, Dh)`: row-major reinterpretation of the
        # contiguous (B, S, E) projection output.  It re-chunks the lane axis across
        # sublanes, so it is NOT a layout-safe in-kernel reshape; it stays a
        # metadata-only XLA reshape of a contiguous buffer (zero copies).
        return a2d.reshape(b * h, s, dh)

    def wo_tiled(wo):
        # Per-head Wo slices replicated over batch so the in-kernel out_proj is one
        # batched (B*H) matmul (18 KiB at these shapes).
        # TODO(synk): at production sizes pass (H, Dh, E) plus a grid axis instead
        # of replicating by B.
        return jnp.broadcast_to(wo.reshape(h, dh, e)[None],
                                (b, h, dh, e)).reshape(b * h, dh, e)

    def attn_args(lp):
        return (wo_tiled(lp["wo"]), lp["bo"], lp["ln2_w"], lp["ln2_b"],
                lp["w1"], lp["b1"], lp["w2"], lp["b2"])

    def qkv_args(lp):
        return (lp["ln1_w"], lp["ln1_b"], lp["wq"], lp["bq"],
                lp["wk"], lp["bk"], lp["wv"], lp["bv"])

    head_args = (hp["ln_w"], hp["ln_b"], hp["w1"], hp["b1"],
                 hp["w2"], hp["b2"], hp["w3"], hp["b3"])

    mk = functools.partial(_make_fused_kernel, batch=b, seq=s,
                           num_heads=h, scaling=scaling)
    f32 = jnp.float32
    x_sd = jax.ShapeDtypeStruct((rows, e), f32)
    qkv_sd = (x_sd, x_sd, x_sd)

    x2d = x.reshape(rows, e)

    # Kernel 1: LayerNorm1 + Q/K/V projections of layer 0.
    q2d, k2d, v2d = pl.pallas_call(
        mk(has_attn=False, has_qkv=True, has_head=False, emit_probs=False),
        out_shape=qkv_sd,
    )(x2d, *qkv_args(layers[0]))

    logits = None
    probs = None
    for i in range(depth):
        lp = layers[i]
        qh, kh, vh = heads(q2d), heads(k2d), heads(v2d)
        if i + 1 < depth:
            # layer i's attention/FFN fused with layer i+1's LN1 + Q/K/V.
            x2d, q2d, k2d, v2d = pl.pallas_call(
                mk(has_attn=True, has_qkv=True, has_head=False, emit_probs=False),
                out_shape=(x_sd,) + qkv_sd,
            )(qh, kh, vh, x2d, *attn_args(lp), *qkv_args(layers[i + 1]))
        else:
            # Last layer's attention/FFN fused with the classification head; the
            # only kernel that writes attention probabilities to HBM.
            logits, probs = pl.pallas_call(
                mk(has_attn=True, has_qkv=False, has_head=True, emit_probs=True),
                out_shape=(jax.ShapeDtypeStruct((b, n_classes), f32),
                           jax.ShapeDtypeStruct((b * h, s, s), f32)),
            )(qh, kh, vh, x2d, *attn_args(lp), *head_args)

    return logits, probs.reshape(b, h, s, s)


# ----------------------------- deterministic parameter init -----------------------------

def _dense(key, fan_in, fan_out):
    kw, kb = jax.random.split(key)
    bound = 1.0 / math.sqrt(fan_in)
    w = jax.random.uniform(kw, (fan_in, fan_out), jnp.float32, -bound, bound)
    b = jax.random.uniform(kb, (1, fan_out), jnp.float32, -bound, bound)
    return w, b


def init_params(key, *, emb_size, depth, ffn_expansion, n_classes):
    layers = []
    for _ in range(depth):
        keys = jax.random.split(key, 7)
        key = keys[0]
        wq, bq = _dense(keys[1], emb_size, emb_size)
        wk, bk = _dense(keys[2], emb_size, emb_size)
        wv, bv = _dense(keys[3], emb_size, emb_size)
        wo, bo = _dense(keys[4], emb_size, emb_size)
        w1, b1 = _dense(keys[5], emb_size, emb_size * ffn_expansion)
        w2, b2 = _dense(keys[6], emb_size * ffn_expansion, emb_size)
        layers.append(dict(
            ln1_w=jnp.ones((1, emb_size), jnp.float32),
            ln1_b=jnp.zeros((1, emb_size), jnp.float32),
            wq=wq, bq=bq, wk=wk, bk=bk, wv=wv, bv=bv,
            wo=wo, bo=bo,
            ln2_w=jnp.ones((1, emb_size), jnp.float32),
            ln2_b=jnp.zeros((1, emb_size), jnp.float32),
            w1=w1, b1=b1, w2=w2, b2=b2,
        ))
        # TODO(synk): SelfAttention.conv (nn.Conv2d(5, num_heads, 1)) is never used
        # in the reference forward pass, so it is intentionally not materialized.
    k1, k2, k3 = jax.random.split(key, 3)
    hw1, hb1 = _dense(k1, emb_size, 512)
    hw2, hb2 = _dense(k2, 512, 256)
    hw3, hb3 = _dense(k3, 256, n_classes)
    head = dict(
        ln_w=jnp.ones((1, emb_size), jnp.float32),
        ln_b=jnp.zeros((1, emb_size), jnp.float32),
        w1=hw1, b1=hb1, w2=hw2, b2=hb2, w3=hw3, b3=hb3,
    )
    return dict(layers=layers, head=head)


# ----------------------------- main -----------------------------

if __name__ == "__main__":
    # small config consistent with the module: emb_size divisible by num_heads
    B, S, E, H, DEPTH, EXPANSION, N_CLASSES = 2, 8, 48, 6, 2, 4, 3

    key = jax.random.PRNGKey(0)
    kx, kp = jax.random.split(key)
    x = jax.random.normal(kx, (B, S, E), jnp.float32)
    params = init_params(kp, emb_size=E, depth=DEPTH,
                         ffn_expansion=EXPANSION, n_classes=N_CLASSES)

    fwd = jax.jit(functools.partial(seva_forward, num_heads=H))
    logits, attn = fwd(params, x)
    jax.block_until_ready((logits, attn))

    assert logits.shape == (B, N_CLASSES), logits.shape
    assert attn.shape == (B, H, S, S), attn.shape
    print("KERNEL_OK")
</pallas_src>

<mosaic_0001>
module attributes {stable_mosaic.version = 11 : i64} {
  func.func @kernel(%arg0: memref<16x48xf32, #tpu.memory_space<vmem>>, %arg1: memref<1x48xf32, #tpu.memory_space<vmem>>, %arg2: memref<1x48xf32, #tpu.memory_space<vmem>>, %arg3: memref<48x48xf32, #tpu.memory_space<vmem>>, %arg4: memref<1x48xf32, #tpu.memory_space<vmem>>, %arg5: memref<48x48xf32, #tpu.memory_space<vmem>>, %arg6: memref<1x48xf32, #tpu.memory_space<vmem>>, %arg7: memref<48x48xf32, #tpu.memory_space<vmem>>, %arg8: memref<1x48xf32, #tpu.memory_space<vmem>>, %arg9: memref<16x48xf32, #tpu.memory_space<vmem>>, %arg10: memref<16x48xf32, #tpu.memory_space<vmem>>, %arg11: memref<16x48xf32, #tpu.memory_space<vmem>>) attributes {dimension_semantics = [], scalar_prefetch = 0 : i64, scratch_operands = 0 : i64, tpu.core_type = #tpu.core_type<tc>} {
    %c0 = arith.constant 0 : index
    %c0_0 = arith.constant 0 : index
    %0 = vector.load %arg0[%c0, %c0_0] : memref<16x48xf32, #tpu.memory_space<vmem>>, vector<16x48xf32>
    %c0_1 = arith.constant 0 : index
    %c0_2 = arith.constant 0 : index
    %1 = vector.load %arg1[%c0_1, %c0_2] : memref<1x48xf32, #tpu.memory_space<vmem>>, vector<1x48xf32>
    %c0_3 = arith.constant 0 : index
    %c0_4 = arith.constant 0 : index
    %2 = vector.load %arg2[%c0_3, %c0_4] : memref<1x48xf32, #tpu.memory_space<vmem>>, vector<1x48xf32>
    %cst = arith.constant dense<0.000000e+00> : vector<16xf32>
    %3 = vector.multi_reduction <add>, %0, %cst [1] : vector<16x48xf32> to vector<16xf32>
    %4 = vector.shape_cast %3 : vector<16xf32> to vector<16x1xf32>
    %cst_5 = arith.constant 4.800000e+01 : f32
    %5 = vector.broadcast %cst_5 : f32 to vector<16x1xf32>
    %6 = arith.divf %4, %5 : vector<16x1xf32>
    %7 = vector.broadcast %6 : vector<16x1xf32> to vector<16x48xf32>
    %8 = arith.subf %0, %7 : vector<16x48xf32>
    %9 = arith.mulf %8, %8 : vector<16x48xf32>
    %cst_6 = arith.constant dense<0.000000e+00> : vector<16xf32>
    %10 = vector.multi_reduction <add>, %9, %cst_6 [1] : vector<16x48xf32> to vector<16xf32>
    %11 = vector.shape_cast %10 : vector<16xf32> to vector<16x1xf32>
    %cst_7 = arith.constant 4.800000e+01 : f32
    %12 = vector.broadcast %cst_7 : f32 to vector<16x1xf32>
    %13 = arith.divf %11, %12 : vector<16x1xf32>
    %14 = vector.broadcast %6 : vector<16x1xf32> to vector<16x48xf32>
    %15 = arith.subf %0, %14 : vector<16x48xf32>
    %cst_8 = arith.constant 9.99999974E-6 : f32
    %16 = vector.broadcast %cst_8 : f32 to vector<16x1xf32>
    %17 = arith.addf %13, %16 : vector<16x1xf32>
    %18 = math.rsqrt %17 : vector<16x1xf32>
    %19 = vector.broadcast %18 : vector<16x1xf32> to vector<16x48xf32>
    %20 = arith.mulf %15, %19 : vector<16x48xf32>
    %21 = vector.broadcast %1 : vector<1x48xf32> to vector<16x48xf32>
    %22 = arith.mulf %20, %21 : vector<16x48xf32>
    %23 = vector.broadcast %2 : vector<1x48xf32> to vector<16x48xf32>
    %24 = arith.addf %22, %23 : vector<16x48xf32>
    %c0_9 = arith.constant 0 : index
    %c0_10 = arith.constant 0 : index
    %25 = vector.load %arg3[%c0_9, %c0_10] : memref<48x48xf32, #tpu.memory_space<vmem>>, vector<48x48xf32>
    %cst_11 = arith.constant dense<0.000000e+00> : vector<16x48xf32>
    %26 = tpu.matmul %24, %25, %cst_11 {dimension_numbers = #tpu.dot_dimension_numbers<[1], [0], [0], [1], [0, 0, 1, 1], [], []>} : vector<16x48xf32>, vector<48x48xf32>, vector<16x48xf32> -> vector<16x48xf32>
    %c0_12 = arith.constant 0 : index
    %c0_13 = arith.constant 0 : index
    %27 = vector.load %arg4[%c0_12, %c0_13] : memref<1x48xf32, #tpu.memory_space<vmem>>, vector<1x48xf32>
    %28 = vector.broadcast %27 : vector<1x48xf32> to vector<16x48xf32>
    %29 = arith.addf %26, %28 : vector<16x48xf32>
    %c0_14 = arith.constant 0 : index
    %c0_15 = arith.constant 0 : index
    %30 = vector.load %arg9[%c0_14, %c0_15] : memref<16x48xf32, #tpu.memory_space<vmem>>, vector<16x48xf32>
    tpu.vector_store %arg9[%c0_14, %c0_15], %29 {strides = array<i32>} : memref<16x48xf32, #tpu.memory_space<vmem>>, vector<16x48xf32>,
    %c0_16 = arith.constant 0 : index
    %c0_17 = arith.constant 0 : index
    %31 = vector.load %arg5[%c0_16, %c0_17] : memref<48x48xf32, #tpu.memory_space<vmem>>, vector<48x48xf32>
    %cst_18 = arith.constant dense<0.000000e+00> : vector<16x48xf32>
    %32 = tpu.matmul %24, %31, %cst_18 {dimension_numbers = #tpu.dot_dimension_numbers<[1], [0], [0], [1], [0, 0, 1, 1], [], []>} : vector<16x48xf32>, vector<48x48xf32>, vector<16x48xf32> -> vector<16x48xf32>
    %c0_19 = arith.constant 0 : index
    %c0_20 = arith.constant 0 : index
    %33 = vector.load %arg6[%c0_19, %c0_20] : memref<1x48xf32, #tpu.memory_space<vmem>>, vector<1x48xf32>
    %34 = vector.broadcast %33 : vector<1x48xf32> to vector<16x48xf32>
    %35 = arith.addf %32, %34 : vector<16x48xf32>
    %c0_21 = arith.constant 0 : index
    %c0_22 = arith.constant 0 : index
    %36 = vector.load %arg10[%c0_21, %c0_22] : memref<16x48xf32, #tpu.memory_space<vmem>>, vector<16x48xf32>
    tpu.vector_store %arg10[%c0_21, %c0_22], %35 {strides = array<i32>} : memref<16x48xf32, #tpu.memory_space<vmem>>, vector<16x48xf32>,
    %c0_23 = arith.constant 0 : index
    %c0_24 = arith.constant 0 : index
    %37 = vector.load %arg7[%c0_23, %c0_24] : memref<48x48xf32, #tpu.memory_space<vmem>>, vector<48x48xf32>
    %cst_25 = arith.constant dense<0.000000e+00> : vector<16x48xf32>
    %38 = tpu.matmul %24, %37, %cst_25 {dimension_numbers = #tpu.dot_dimension_numbers<[1], [0], [0], [1], [0, 0, 1, 1], [], []>} : vector<16x48xf32>, vector<48x48xf32>, vector<16x48xf32> -> vector<16x48xf32>
    %c0_26 = arith.constant 0 : index
    %c0_27 = arith.constant 0 : index
    %39 = vector.load %arg8[%c0_26, %c0_27] : memref<1x48xf32, #tpu.memory_space<vmem>>, vector<1x48xf32>
    %40 = vector.broadcast %39 : vector<1x48xf32> to vector<16x48xf32>
    %41 = arith.addf %38, %40 : vector<16x48xf32>
    %c0_28 = arith.constant 0 : index
    %c0_29 = arith.constant 0 : index
    %42 = vector.load %arg11[%c0_28, %c0_29] : memref<16x48xf32, #tpu.memory_space<vmem>>, vector<16x48xf32>
    tpu.vector_store %arg11[%c0_28, %c0_29], %41 {strides = array<i32>} : memref<16x48xf32, #tpu.memory_space<vmem>>, vector<16x48xf32>,
    return
  }
}

module attributes {stable_mosaic.version = 11 : i64} {
  func.func @kernel(%arg0: memref<12x8x8xf32, #tpu.memory_space<vmem>>, %arg1: memref<12x8x8xf32, #tpu.memory_space<vmem>>, %arg2: memref<12x8x8xf32, #tpu.memory_space<vmem>>, %arg3: memref<16x48xf32, #tpu.memory_space<vmem>>, %arg4: memref<12x8x48xf32, #tpu.memory_space<vmem>>, %arg5: memref<1x48xf32, #tpu.memory_space<vmem>>, %arg6: memref<1x48xf32, #tpu.memory_space<vmem>>, %arg7: memref<1x48xf32, #tpu.memory_space<vmem>>, %arg8: memref<48x192xf32, #tpu.memory_space<vmem>>, %arg9: memref<1x192xf32, #tpu.memory_space<vmem>>, %arg10: memref<192x48xf32, #tpu.memory_space<vmem>>, %arg11: memref<1x48xf32, #tpu.memory_space<vmem>>, %arg12: memref<1x48xf32, #tpu.memory_space<vmem>>, %arg13: memref<1x48xf32, #tpu.memory_space<vmem>>, %arg14: memref<48x48xf32, #tpu.memory_space<vmem>>, %arg15: memref<1x48xf32, #tpu.memory_space<vmem>>, %arg16: memref<48x48xf32, #tpu.memory_space<vmem>>, %arg17: memref<1x48xf32, #tpu.memory_space<vmem>>, %arg18: memref<48x48xf32, #tpu.memory_space<vmem>>, %arg19: memref<1x48xf32, #tpu.memory_space<vmem>>, %arg20: memref<16x48xf32, #tpu.memory_space<vmem>>, %arg21: memref<16x48xf32, #tpu.memory_space<vmem>>, %arg22: memref<16x48xf32, #tpu.memory_space<vmem>>, %arg23: memref<16x48xf32, #tpu.memory_space<vmem>>) attributes {dimension_semantics = [], scalar_prefetch = 0 : i64, scratch_operands = 0 : i64, tpu.core_type = #tpu.core_type<tc>} {
    %c0 = arith.constant 0 : index
    %c0_0 = arith.constant 0 : index
    %0 = vector.load %arg3[%c0, %c0_0] : memref<16x48xf32, #tpu.memory_space<vmem>>, vector<16x48xf32>
    %c0_1 = arith.constant 0 : index
    %c0_2 = arith.constant 0 : index
    %c0_3 = arith.constant 0 : index
    %1 = vector.load %arg0[%c0_1, %c0_2, %c0_3] : memref<12x8x8xf32, #tpu.memory_space<vmem>>, vector<12x8x8xf32>
    %cst = arith.constant 0.353553385 : f32
    %2 = vector.broadcast %cst : f32 to vector<12x8x8xf32>
    %3 = arith.mulf %1, %2 : vector<12x8x8xf32>
    %c0_4 = arith.constant 0 : index
    %c0_5 = arith.constant 0 : index
    %c0_6 = arith.constant 0 : index
    %4 = vector.load %arg1[%c0_4, %c0_5, %c0_6] : memref<12x8x8xf32, #tpu.memory_space<vmem>>, vector<12x8x8xf32>
    %c0_7 = arith.constant 0 : index
    %c0_8 = arith.constant 0 : index
    %c0_9 = arith.constant 0 : index
    %5 = vector.load %arg2[%c0_7, %c0_8, %c0_9] : memref<12x8x8xf32, #tpu.memory_space<vmem>>, vector<12x8x8xf32>
    "tpu.trace_start"() <{level = 10 : i32, message = "xqd,xkd->xqk"}> : () -> ()
    %cst_10 = arith.constant dense<0.000000e+00> : vector<12x8x8xf32>
    %6 = tpu.matmul %3, %4, %cst_10 {dimension_numbers = #tpu.dot_dimension_numbers<[2], [2], [1], [1], [0, 0, 0, 1, 1, 1], [0], [0]>} : vector<12x8x8xf32>, vector<12x8x8xf32>, vector<12x8x8xf32> -> vector<12x8x8xf32>
    "tpu.trace_stop"() : () -> ()
    %cst_11 = arith.constant dense<0xFF800000> : vector<12x8xf32>
    %7 = vector.multi_reduction <maximumf>, %6, %cst_11 [2] : vector<12x8x8xf32> to vector<12x8xf32>
    %8 = vector.shape_cast %7 : vector<12x8xf32> to vector<12x8x1xf32>
    %9 = vector.broadcast %8 : vector<12x8x1xf32> to vector<12x8x8xf32>
    %10 = arith.subf %6, %9 : vector<12x8x8xf32>
    %11 = math.exp %10 : vector<12x8x8xf32>
    %cst_12 = arith.constant dense<0.000000e+00> : vector<12x8xf32>
    %12 = vector.multi_reduction <add>, %11, %cst_12 [2] : vector<12x8x8xf32> to vector<12x8xf32>
    %13 = vector.shape_cast %12 : vector<12x8xf32> to vector<12x8x1xf32>
    %14 = vector.broadcast %13 : vector<12x8x1xf32> to vector<12x8x8xf32>
    %15 = arith.divf %11, %14 : vector<12x8x8xf32>
    "tpu.trace_start"() <{level = 10 : i32, message = "xqk,xkd->xqd"}> : () -> ()
    %cst_13 = arith.constant dense<0.000000e+00> : vector<12x8x8xf32>
    %16 = tpu.matmul %15, %5, %cst_13 {dimension_numbers = #tpu.dot_dimension_numbers<[2], [1], [1], [2], [0, 0, 0, 1, 1, 2], [0], [0]>} : vector<12x8x8xf32>, vector<12x8x8xf32>, vector<12x8x8xf32> -> vector<12x8x8xf32>
    "tpu.trace_stop"() : () -> ()
    %c0_14 = arith.constant 0 : index
    %c0_15 = arith.constant 0 : index
    %c0_16 = arith.constant 0 : index
    %17 = vector.load %arg4[%c0_14, %c0_15, %c0_16] : memref<12x8x48xf32, #tpu.memory_space<vmem>>, vector<12x8x48xf32>
    "tpu.trace_start"() <{level = 10 : i32, message = "xsd,xde->xse"}> : () -> ()
    %cst_17 = arith.constant dense<0.000000e+00> : vector<12x8x48xf32>
    %18 = tpu.matmul %16, %17, %cst_17 {dimension_numbers = #tpu.dot_dimension_numbers<[2], [1], [1], [2], [0, 0, 0, 1, 1, 2], [0], [0]>} : vector<12x8x8xf32>, vector<12x8x48xf32>, vector<12x8x48xf32> -> vector<12x8x48xf32>
    "tpu.trace_stop"() : () -> ()
    %19 = vector.shape_cast %18 : vector<12x8x48xf32> to vector<2x6x8x48xf32>
    %20 = vector.extract_strided_slice %19 {offsets = [0, 0, 0, 0], sizes = [2, 1, 8, 48], strides = [1, 1, 1, 1]} : vector<2x6x8x48xf32> to vector<2x1x8x48xf32>
    %21 = vector.shape_cast %20 : vector<2x1x8x48xf32> to vector<2x8x48xf32>
    %22 = vector.extract_strided_slice %19 {offsets = [0, 1, 0, 0], sizes = [2, 1, 8, 48], strides = [1, 1, 1, 1]} : vector<2x6x8x48xf32> to vector<2x1x8x48xf32>
    %23 = vector.shape_cast %22 : vector<2x1x8x48xf32> to vector<2x8x48xf32>
    %24 = arith.addf %21, %23 : vector<2x8x48xf32>
    %25 = vector.extract_strided_slice %19 {offsets = [0, 2, 0, 0], sizes = [2, 1, 8, 48], strides = [1, 1, 1, 1]} : vector<2x6x8x48xf32> to vector<2x1x8x48xf32>
    %26 = vector.shape_cast %25 : vector<2x1x8x48xf32> to vector<2x8x48xf32>
    %27 = arith.addf %24, %26 : vector<2x8x48xf32>
    %28 = vector.extract_strided_slice %19 {offsets = [0, 3, 0, 0], sizes = [2, 1, 8, 48], strides = [1, 1, 1, 1]} : vector<2x6x8x48xf32> to vector<2x1x8x48xf32>
    %29 = vector.shape_cast %28 : vector<2x1x8x48xf32> to vector<2x8x48xf32>
    %30 = arith.addf %27, %29 : vector<2x8x48xf32>
    %31 = vector.extract_strided_slice %19 {offsets = [0, 4, 0, 0], sizes = [2, 1, 8, 48], strides = [1, 1, 1, 1]} : vector<2x6x8x48xf32> to vector<2x1x8x48xf32>
    %32 = vector.shape_cast %31 : vector<2x1x8x48xf32> to vector<2x8x48xf32>
    %33 = arith.addf %30, %32 : vector<2x8x48xf32>
    %34 = vector.extract_strided_slice %19 {offsets = [0, 5, 0, 0], sizes = [2, 1, 8, 48], strides = [1, 1, 1, 1]} : vector<2x6x8x48xf32> to vector<2x1x8x48xf32>
    %35 = vector.shape_cast %34 : vector<2x1x8x48xf32> to vector<2x8x48xf32>
    %36 = arith.addf %33, %35 : vector<2x8x48xf32>
    %37 = vector.shape_cast %36 : vector<2x8x48xf32> to vector<16x48xf32>
    %38 = arith.addf %0, %37 : vector<16x48xf32>
    %c0_18 = arith.constant 0 : index
    %c0_19 = arith.constant 0 : index
    %39 = vector.load %arg5[%c0_18, %c0_19] : memref<1x48xf32, #tpu.memory_space<vmem>>, vector<1x48xf32>
    %40 = vector.broadcast %39 : vector<1x48xf32> to vector<16x48xf32>
    %41 = arith.addf %38, %40 : vector<16x48xf32>
    %c0_20 = arith.constant 0 : index
    %c0_21 = arith.constant 0 : index
    %42 = vector.load %arg6[%c0_20, %c0_21] : memref<1x48xf32, #tpu.memory_space<vmem>>, vector<1x48xf32>
    %c0_22 = arith.constant 0 : index
    %c0_23 = arith.constant 0 : index
    %43 = vector.load %arg7[%c0_22, %c0_23] : memref<1x48xf32, #tpu.memory_space<vmem>>, vector<1x48xf32>
    %cst_24 = arith.constant dense<0.000000e+00> : vector<16xf32>
    %44 = vector.multi_reduction <add>, %41, %cst_24 [1] : vector<16x48xf32> to vector<16xf32>
    %45 = vector.shape_cast %44 : vector<16xf32> to vector<16x1xf32>
    %cst_25 = arith.constant 4.800000e+01 : f32
    %46 = vector.broadcast %cst_25 : f32 to vector<16x1xf32>
    %47 = arith.divf %45, %46 : vector<16x1xf32>
    %48 = vector.broadcast %47 : vector<16x1xf32> to vector<16x48xf32>
    %49 = arith.subf %41, %48 : vector<16x48xf32>
    %50 = arith.mulf %49, %49 : vector<16x48xf32>
    %cst_26 = arith.constant dense<0.000000e+00> : vector<16xf32>
    %51 = vector.multi_reduction <add>, %50, %cst_26 [1] : vector<16x48xf32> to vector<16xf32>
    %52 = vector.shape_cast %51 : vector<16xf32> to vector<16x1xf32>
    %cst_27 = arith.constant 4.800000e+01 : f32
    %53 = vector.broadcast %cst_27 : f32 to vector<16x1xf32>
    %54 = arith.divf %52, %53 : vector<16x1xf32>
    %55 = vector.broadcast %47 : vector<16x1xf32> to vector<16x48xf32>
    %56 = arith.subf %41, %55 : vector<16x48xf32>
    %cst_28 = arith.constant 9.99999974E-6 : f32
    %57 = vector.broadcast %cst_28 : f32 to vector<16x1xf32>
    %58 = arith.addf %54, %57 : vector<16x1xf32>
    %59 = math.rsqrt %58 : vector<16x1xf32>
    %60 = vector.broadcast %59 : vector<16x1xf32> to vector<16x48xf32>
    %61 = arith.mulf %56, %60 : vector<16x48xf32>
    %62 = vector.broadcast %42 : vector<1x48xf32> to vector<16x48xf32>
    %63 = arith.mulf %61, %62 : vector<16x48xf32>
    %64 = vector.broadcast %43 : vector<1x48xf32> to vector<16x48xf32>
    %65 = arith.addf %63, %64 : vector<16x48xf32>
    %c0_29 = arith.constant 0 : index
    %c0_30 = arith.constant 0 : index
    %66 = vector.load %arg8[%c0_29, %c0_30] : memref<48x192xf32, #tpu.memory_space<vmem>>, vector<48x192xf32>
    %cst_31 = arith.constant dense<0.000000e+00> : vector<16x192xf32>
    %67 = tpu.matmul %65, %66, %cst_31 {dimension_numbers = #tpu.dot_dimension_numbers<[1], [0], [0], [1], [0, 0, 1, 1], [], []>} : vector<16x48xf32>, vector<48x192xf32>, vector<16x192xf32> -> vector<16x192xf32>
    %c0_32 = arith.constant 0 : index
    %c0_33 = arith.constant 0 : index
    %68 = vector.load %arg9[%c0_32, %c0_33] : memref<1x192xf32, #tpu.memory_space<vmem>>, vector<1x192xf32>
    %69 = vector.broadcast %68 : vector<1x192xf32> to vector<16x192xf32>
    %70 = arith.addf %67, %69 : vector<16x192xf32>
    %cst_34 = arith.constant 5.000000e-01 : f32
    %71 = vector.broadcast %cst_34 : f32 to vector<16x192xf32>
    %72 = arith.mulf %71, %70 : vector<16x192xf32>
    %cst_35 = arith.constant 0.707106769 : f32
    %73 = vector.broadcast %cst_35 : f32 to vector<16x192xf32>
    %74 = arith.mulf %70, %73 : vector<16x192xf32>
    %75 = math.absf %74 : vector<16x192xf32>
    %cst_36 = arith.constant 0.327591091 : f32
    %76 = vector.broadcast %cst_36 : f32 to vector<16x192xf32>
    %77 = arith.mulf %76, %75 : vector<16x192xf32>
    %cst_37 = arith.constant 1.000000e+00 : f32
    %78 = vector.broadcast %cst_37 : f32 to vector<16x192xf32>
    %79 = arith.addf %78, %77 : vector<16x192xf32>
    %cst_38 = arith.constant 1.000000e+00 : f32
    %80 = vector.broadcast %cst_38 : f32 to vector<16x192xf32>
    %81 = arith.divf %80, %79 : vector<16x192xf32>
    %cst_39 = arith.constant 1.06140542 : f32
    %82 = vector.broadcast %cst_39 : f32 to vector<16x192xf32>
    %83 = arith.mulf %82, %81 : vector<16x192xf32>
    %cst_40 = arith.constant 1.45315206 : f32
    %84 = vector.broadcast %cst_40 : f32 to vector<16x192xf32>
    %85 = arith.subf %83, %84 : vector<16x192xf32>
    %86 = arith.mulf %85, %81 : vector<16x192xf32>
    %cst_41 = arith.constant 1.42141378 : f32
    %87 = vector.broadcast %cst_41 : f32 to vector<16x192xf32>
    %88 = arith.addf %86, %87 : vector<16x192xf32>
    %89 = arith.mulf %88, %81 : vector<16x192xf32>
    %cst_42 = arith.constant 0.284496725 : f32
    %90 = vector.broadcast %cst_42 : f32 to vector<16x192xf32>
    %91 = arith.subf %89, %90 : vector<16x192xf32>
    %92 = arith.mulf %91, %81 : vector<16x192xf32>
    %cst_43 = arith.constant 0.254829586 : f32
    %93 = vector.broadcast %cst_43 : f32 to vector<16x192xf32>
    %94 = arith.addf %92, %93 : vector<16x192xf32>
    %95 = arith.mulf %94, %81 : vector<16x192xf32>
    %cst_44 = arith.constant 0.000000e+00 : f32
    %96 = vector.broadcast %cst_44 : f32 to vector<16x192xf32>
    %97 = arith.subf %96, %75 : vector<16x192xf32>
    %98 = arith.mulf %97, %75 : vector<16x192xf32>
    %99 = math.exp %98 : vector<16x192xf32>
    %100 = arith.mulf %95, %99 : vector<16x192xf32>
    %cst_45 = arith.constant 1.000000e+00 : f32
    %101 = vector.broadcast %cst_45 : f32 to vector<16x192xf32>
    %102 = arith.subf %101, %100 : vector<16x192xf32>
    %cst_46 = arith.constant 0.000000e+00 : f32
    %103 = vector.broadcast %cst_46 : f32 to vector<16x192xf32>
    %104 = arith.cmpf oge, %74, %103 : vector<16x192xf32>
    %cst_47 = arith.constant 0.000000e+00 : f32
    %105 = vector.broadcast %cst_47 : f32 to vector<16x192xf32>
    %106 = arith.subf %105, %102 : vector<16x192xf32>
    %107 = arith.select %104, %102, %106 : vector<16x192xi1>, vector<16x192xf32>
    %cst_48 = arith.constant 1.000000e+00 : f32
    %108 = vector.broadcast %cst_48 : f32 to vector<16x192xf32>
    %109 = arith.addf %108, %107 : vector<16x192xf32>
    %110 = arith.mulf %72, %109 : vector<16x192xf32>
    %c0_49 = arith.constant 0 : index
    %c0_50 = arith.constant 0 : index
    %111 = vector.load %arg10[%c0_49, %c0_50] : memref<192x48xf32, #tpu.memory_space<vmem>>, vector<192x48xf32>
    %cst_51 = arith.constant dense<0.000000e+00> : vector<16x48xf32>
    %112 = tpu.matmul %110, %111, %cst_51 {dimension_numbers = #tpu.dot_dimension_numbers<[1], [0], [0], [1], [0, 0, 1, 1], [], []>} : vector<16x192xf32>, vector<192x48xf32>, vector<16x48xf32> -> vector<16x48xf32>
    %113 = arith.addf %41, %112 : vector<16x48xf32>
    %c0_52 = arith.constant 0 : index
    %c0_53 = arith.constant 0 : index
    %114 = vector.load %arg11[%c0_52, %c0_53] : memref<1x48xf32, #tpu.memory_space<vmem>>, vector<1x48xf32>
    %115 = vector.broadcast %114 : vector<1x48xf32> to vector<16x48xf32>
    %116 = arith.addf %113, %115 : vector<16x48xf32>
    %c0_54 = arith.constant 0 : index
    %c0_55 = arith.constant 0 : index
    %117 = vector.load %arg20[%c0_54, %c0_55] : memref<16x48xf32, #tpu.memory_space<vmem>>, vector<16x48xf32>
    tpu.vector_store %arg20[%c0_54, %c0_55], %116 {strides = array<i32>} : memref<16x48xf32, #tpu.memory_space<vmem>>, vector<16x48xf32>,
    %c0_56 = arith.constant 0 : index
    %c0_57 = arith.constant 0 : index
    %118 = vector.load %arg12[%c0_56, %c0_57] : memref<1x48xf32, #tpu.memory_space<vmem>>, vector<1x48xf32>
    %c0_58 = arith.constant 0 : index
    %c0_59 = arith.constant 0 : index
    %119 = vector.load %arg13[%c0_58, %c0_59] : memref<1x48xf32, #tpu.memory_space<vmem>>, vector<1x48xf32>
    %cst_60 = arith.constant dense<0.000000e+00> : vector<16xf32>
    %120 = vector.multi_reduction <add>, %116, %cst_60 [1] : vector<16x48xf32> to vector<16xf32>
    %121 = vector.shape_cast %120 : vector<16xf32> to vector<16x1xf32>
    %cst_61 = arith.constant 4.800000e+01 : f32
    %122 = vector.broadcast %cst_61 : f32 to vector<16x1xf32>
    %123 = arith.divf %121, %122 : vector<16x1xf32>
    %124 = vector.broadcast %123 : vector<16x1xf32> to vector<16x48xf32>
    %125 = arith.subf %116, %124 : vector<16x48xf32>
    %126 = arith.mulf %125, %125 : vector<16x48xf32>
    %cst_62 = arith.constant dense<0.000000e+00> : vector<16xf32>
    %127 = vector.multi_reduction <add>, %126, %cst_62 [1] : vector<16x48xf32> to vector<16xf32>
    %128 = vector.shape_cast %127 : vector<16xf32> to vector<16x1xf32>
    %cst_63 = arith.constant 4.800000e+01 : f32
    %129 = vector.broadcast %cst_63 : f32 to vector<16x1xf32>
    %130 = arith.divf %128, %129 : vector<16x1xf32>
    %131 = vector.broadcast %123 : vector<16x1xf32> to vector<16x48xf32>
    %132 = arith.subf %116, %131 : vector<16x48xf32>
    %cst_64 = arith.constant 9.99999974E-6 : f32
    %133 = vector.broadcast %cst_64 : f32 to vector<16x1xf32>
    %134 = arith.addf %130, %133 : vector<16x1xf32>
    %135 = math.rsqrt %134 : vector<16x1xf32>
    %136 = vector.broadcast %135 : vector<16x1xf32> to vector<16x48xf32>
    %137 = arith.mulf %132, %136 : vector<16x48xf32>
    %138 = vector.broadcast %118 : vector<1x48xf32> to vector<16x48xf32>
    %139 = arith.mulf %137, %138 : vector<16x48xf32>
    %140 = vector.broadcast %119 : vector<1x48xf32> to vector<16x48xf32>
    %141 = arith.addf %139, %140 : vector<16x48xf32>
    %c0_65 = arith.constant 0 : index
    %c0_66 = arith.constant 0 : index
    %142 = vector.load %arg14[%c0_65, %c0_66] : memref<48x48xf32, #tpu.memory_space<vmem>>, vector<48x48xf32>
    %cst_67 = arith.constant dense<0.000000e+00> : vector<16x48xf32>
    %143 = tpu.matmul %141, %142, %cst_67 {dimension_numbers = #tpu.dot_dimension_numbers<[1], [0], [0], [1], [0, 0, 1, 1], [], []>} : vector<16x48xf32>, vector<48x48xf32>, vector<16x48xf32> -> vector<16x48xf32>
    %c0_68 = arith.constant 0 : index
    %c0_69 = arith.constant 0 : index
    %144 = vector.load %arg15[%c0_68, %c0_69] : memref<1x48xf32, #tpu.memory_space<vmem>>, vector<1x48xf32>
    %145 = vector.broadcast %144 : vector<1x48xf32> to vector<16x48xf32>
    %146 = arith.addf %143, %145 : vector<16x48xf32>
    %c0_70 = arith.constant 0 : index
    %c0_71 = arith.constant 0 : index
    %147 = vector.load %arg21[%c0_70, %c0_71] : memref<16x48xf32, #tpu.memory_space<vmem>>, vector<16x48xf32>
    tpu.vector_store %arg21[%c0_70, %c0_71], %146 {strides = array<i32>} : memref<16x48xf32, #tpu.memory_space<vmem>>, vector<16x48xf32>,
    %c0_72 = arith.constant 0 : index
    %c0_73 = arith.constant 0 : index
    %148 = vector.load %arg16[%c0_72, %c0_73] : memref<48x48xf32, #tpu.memory_space<vmem>>, vector<48x48xf32>
    %cst_74 = arith.constant dense<0.000000e+00> : vector<16x48xf32>
    %149 = tpu.matmul %141, %148, %cst_74 {dimension_numbers = #tpu.dot_dimension_numbers<[1], [0], [0], [1], [0, 0, 1, 1], [], []>} : vector<16x48xf32>, vector<48x48xf32>, vector<16x48xf32> -> vector<16x48xf32>
    %c0_75 = arith.constant 0 : index
    %c0_76 = arith.constant 0 : index
    %150 = vector.load %arg17[%c0_75, %c0_76] : memref<1x48xf32, #tpu.memory_space<vmem>>, vector<1x48xf32>
    %151 = vector.broadcast %150 : vector<1x48xf32> to vector<16x48xf32>
    %152 = arith.addf %149, %151 : vector<16x48xf32>
    %c0_77 = arith.constant 0 : index
    %c0_78 = arith.constant 0 : index
    %153 = vector.load %arg22[%c0_77, %c0_78] : memref<16x48xf32, #tpu.memory_space<vmem>>, vector<16x48xf32>
    tpu.vector_store %arg22[%c0_77, %c0_78], %152 {strides = array<i32>} : memref<16x48xf32, #tpu.memory_space<vmem>>, vector<16x48xf32>,
    %c0_79 = arith.constant 0 : index
    %c0_80 = arith.constant 0 : index
    %154 = vector.load %arg18[%c0_79, %c0_80] : memref<48x48xf32, #tpu.memory_space<vmem>>, vector<48x48xf32>
    %cst_81 = arith.constant dense<0.000000e+00> : vector<16x48xf32>
    %155 = tpu.matmul %141, %154, %cst_81 {dimension_numbers = #tpu.dot_dimension_numbers<[1], [0], [0], [1], [0, 0, 1, 1], [], []>} : vector<16x48xf32>, vector<48x48xf32>, vector<16x48xf32> -> vector<16x48xf32>
    %c0_82 = arith.constant 0 : index
    %c0_83 = arith.constant 0 : index
    %156 = vector.load %arg19[%c0_82, %c0_83] : memref<1x48xf32, #tpu.memory_space<vmem>>, vector<1x48xf32>
    %157 = vector.broadcast %156 : vector<1x48xf32> to vector<16x48xf32>
    %158 = arith.addf %155, %157 : vector<16x48xf32>
    %c0_84 = arith.constant 0 : index
    %c0_85 = arith.constant 0 : index
    %159 = vector.load %arg23[%c0_84, %c0_85] : memref<16x48xf32, #tpu.memory_space<vmem>>, vector<16x48xf32>
    tpu.vector_store %arg23[%c0_84, %c0_85], %158 {strides = array<i32>} : memref<16x48xf32, #tpu.memory_space<vmem>>, vector<16x48xf32>,
    return
  }
}

module attributes {stable_mosaic.version = 11 : i64} {
  func.func @kernel(%arg0: memref<12x8x8xf32, #tpu.memory_space<vmem>>, %arg1: memref<12x8x8xf32, #tpu.memory_space<vmem>>, %arg2: memref<12x8x8xf32, #tpu.memory_space<vmem>>, %arg3: memref<16x48xf32, #tpu.memory_space<vmem>>, %arg4: memref<12x8x48xf32, #tpu.memory_space<vmem>>, %arg5: memref<1x48xf32, #tpu.memory_space<vmem>>, %arg6: memref<1x48xf32, #tpu.memory_space<vmem>>, %arg7: memref<1x48xf32, #tpu.memory_space<vmem>>, %arg8: memref<48x192xf32, #tpu.memory_space<vmem>>, %arg9: memref<1x192xf32, #tpu.memory_space<vmem>>, %arg10: memref<192x48xf32, #tpu.memory_space<vmem>>, %arg11: memref<1x48xf32, #tpu.memory_space<vmem>>, %arg12: memref<1x48xf32, #tpu.memory_space<vmem>>, %arg13: memref<1x48xf32, #tpu.memory_space<vmem>>, %arg14: memref<48x512xf32, #tpu.memory_space<vmem>>, %arg15: memref<1x512xf32, #tpu.memory_space<vmem>>, %arg16: memref<512x256xf32, #tpu.memory_space<vmem>>, %arg17: memref<1x256xf32, #tpu.memory_space<vmem>>, %arg18: memref<256x3xf32, #tpu.memory_space<vmem>>, %arg19: memref<1x3xf32, #tpu.memory_space<vmem>>, %arg20: memref<2x3xf32, #tpu.memory_space<vmem>>, %arg21: memref<12x8x8xf32, #tpu.memory_space<vmem>>) attributes {dimension_semantics = [], scalar_prefetch = 0 : i64, scratch_operands = 0 : i64, tpu.core_type = #tpu.core_type<tc>} {
    %c0 = arith.constant 0 : index
    %c0_0 = arith.constant 0 : index
    %0 = vector.load %arg3[%c0, %c0_0] : memref<16x48xf32, #tpu.memory_space<vmem>>, vector<16x48xf32>
    %c0_1 = arith.constant 0 : index
    %c0_2 = arith.constant 0 : index
    %c0_3 = arith.constant 0 : index
    %1 = vector.load %arg0[%c0_1, %c0_2, %c0_3] : memref<12x8x8xf32, #tpu.memory_space<vmem>>, vector<12x8x8xf32>
    %cst = arith.constant 0.353553385 : f32
    %2 = vector.broadcast %cst : f32 to vector<12x8x8xf32>
    %3 = arith.mulf %1, %2 : vector<12x8x8xf32>
    %c0_4 = arith.constant 0 : index
    %c0_5 = arith.constant 0 : index
    %c0_6 = arith.constant 0 : index
    %4 = vector.load %arg1[%c0_4, %c0_5, %c0_6] : memref<12x8x8xf32, #tpu.memory_space<vmem>>, vector<12x8x8xf32>
    %c0_7 = arith.constant 0 : index
    %c0_8 = arith.constant 0 : index
    %c0_9 = arith.constant 0 : index
    %5 = vector.load %arg2[%c0_7, %c0_8, %c0_9] : memref<12x8x8xf32, #tpu.memory_space<vmem>>, vector<12x8x8xf32>
    "tpu.trace_start"() <{level = 10 : i32, message = "xqd,xkd->xqk"}> : () -> ()
    %cst_10 = arith.constant dense<0.000000e+00> : vector<12x8x8xf32>
    %6 = tpu.matmul %3, %4, %cst_10 {dimension_numbers = #tpu.dot_dimension_numbers<[2], [2], [1], [1], [0, 0, 0, 1, 1, 1], [0], [0]>} : vector<12x8x8xf32>, vector<12x8x8xf32>, vector<12x8x8xf32> -> vector<12x8x8xf32>
    "tpu.trace_stop"() : () -> ()
    %cst_11 = arith.constant dense<0xFF800000> : vector<12x8xf32>
    %7 = vector.multi_reduction <maximumf>, %6, %cst_11 [2] : vector<12x8x8xf32> to vector<12x8xf32>
    %8 = vector.shape_cast %7 : vector<12x8xf32> to vector<12x8x1xf32>
    %9 = vector.broadcast %8 : vector<12x8x1xf32> to vector<12x8x8xf32>
    %10 = arith.subf %6, %9 : vector<12x8x8xf32>
    %11 = math.exp %10 : vector<12x8x8xf32>
    %cst_12 = arith.constant dense<0.000000e+00> : vector<12x8xf32>
    %12 = vector.multi_reduction <add>, %11, %cst_12 [2] : vector<12x8x8xf32> to vector<12x8xf32>
    %13 = vector.shape_cast %12 : vector<12x8xf32> to vector<12x8x1xf32>
    %14 = vector.broadcast %13 : vector<12x8x1xf32> to vector<12x8x8xf32>
    %15 = arith.divf %11, %14 : vector<12x8x8xf32>
    %c0_13 = arith.constant 0 : index
    %c0_14 = arith.constant 0 : index
    %c0_15 = arith.constant 0 : index
    %16 = vector.load %arg21[%c0_13, %c0_14, %c0_15] : memref<12x8x8xf32, #tpu.memory_space<vmem>>, vector<12x8x8xf32>
    tpu.vector_store %arg21[%c0_13, %c0_14, %c0_15], %15 {strides = array<i32>} : memref<12x8x8xf32, #tpu.memory_space<vmem>>, vector<12x8x8xf32>,
    "tpu.trace_start"() <{level = 10 : i32, message = "xqk,xkd->xqd"}> : () -> ()
    %cst_16 = arith.constant dense<0.000000e+00> : vector<12x8x8xf32>
    %17 = tpu.matmul %15, %5, %cst_16 {dimension_numbers = #tpu.dot_dimension_numbers<[2], [1], [1], [2], [0, 0, 0, 1, 1, 2], [0], [0]>} : vector<12x8x8xf32>, vector<12x8x8xf32>, vector<12x8x8xf32> -> vector<12x8x8xf32>
    "tpu.trace_stop"() : () -> ()
    %c0_17 = arith.constant 0 : index
    %c0_18 = arith.constant 0 : index
    %c0_19 = arith.constant 0 : index
    %18 = vector.load %arg4[%c0_17, %c0_18, %c0_19] : memref<12x8x48xf32, #tpu.memory_space<vmem>>, vector<12x8x48xf32>
    "tpu.trace_start"() <{level = 10 : i32, message = "xsd,xde->xse"}> : () -> ()
    %cst_20 = arith.constant dense<0.000000e+00> : vector<12x8x48xf32>
    %19 = tpu.matmul %17, %18, %cst_20 {dimension_numbers = #tpu.dot_dimension_numbers<[2], [1], [1], [2], [0, 0, 0, 1, 1, 2], [0], [0]>} : vector<12x8x8xf32>, vector<12x8x48xf32>, vector<12x8x48xf32> -> vector<12x8x48xf32>
    "tpu.trace_stop"() : () -> ()
    %20 = vector.shape_cast %19 : vector<12x8x48xf32> to vector<2x6x8x48xf32>
    %21 = vector.extract_strided_slice %20 {offsets = [0, 0, 0, 0], sizes = [2, 1, 8, 48], strides = [1, 1, 1, 1]} : vector<2x6x8x48xf32> to vector<2x1x8x48xf32>
    %22 = vector.shape_cast %21 : vector<2x1x8x48xf32> to vector<2x8x48xf32>
    %23 = vector.extract_strided_slice %20 {offsets = [0, 1, 0, 0], sizes = [2, 1, 8, 48], strides = [1, 1, 1, 1]} : vector<2x6x8x48xf32> to vector<2x1x8x48xf32>
    %24 = vector.shape_cast %23 : vector<2x1x8x48xf32> to vector<2x8x48xf32>
    %25 = arith.addf %22, %24 : vector<2x8x48xf32>
    %26 = vector.extract_strided_slice %20 {offsets = [0, 2, 0, 0], sizes = [2, 1, 8, 48], strides = [1, 1, 1, 1]} : vector<2x6x8x48xf32> to vector<2x1x8x48xf32>
    %27 = vector.shape_cast %26 : vector<2x1x8x48xf32> to vector<2x8x48xf32>
    %28 = arith.addf %25, %27 : vector<2x8x48xf32>
    %29 = vector.extract_strided_slice %20 {offsets = [0, 3, 0, 0], sizes = [2, 1, 8, 48], strides = [1, 1, 1, 1]} : vector<2x6x8x48xf32> to vector<2x1x8x48xf32>
    %30 = vector.shape_cast %29 : vector<2x1x8x48xf32> to vector<2x8x48xf32>
    %31 = arith.addf %28, %30 : vector<2x8x48xf32>
    %32 = vector.extract_strided_slice %20 {offsets = [0, 4, 0, 0], sizes = [2, 1, 8, 48], strides = [1, 1, 1, 1]} : vector<2x6x8x48xf32> to vector<2x1x8x48xf32>
    %33 = vector.shape_cast %32 : vector<2x1x8x48xf32> to vector<2x8x48xf32>
    %34 = arith.addf %31, %33 : vector<2x8x48xf32>
    %35 = vector.extract_strided_slice %20 {offsets = [0, 5, 0, 0], sizes = [2, 1, 8, 48], strides = [1, 1, 1, 1]} : vector<2x6x8x48xf32> to vector<2x1x8x48xf32>
    %36 = vector.shape_cast %35 : vector<2x1x8x48xf32> to vector<2x8x48xf32>
    %37 = arith.addf %34, %36 : vector<2x8x48xf32>
    %38 = vector.shape_cast %37 : vector<2x8x48xf32> to vector<16x48xf32>
    %39 = arith.addf %0, %38 : vector<16x48xf32>
    %c0_21 = arith.constant 0 : index
    %c0_22 = arith.constant 0 : index
    %40 = vector.load %arg5[%c0_21, %c0_22] : memref<1x48xf32, #tpu.memory_space<vmem>>, vector<1x48xf32>
    %41 = vector.broadcast %40 : vector<1x48xf32> to vector<16x48xf32>
    %42 = arith.addf %39, %41 : vector<16x48xf32>
    %c0_23 = arith.constant 0 : index
    %c0_24 = arith.constant 0 : index
    %43 = vector.load %arg6[%c0_23, %c0_24] : memref<1x48xf32, #tpu.memory_space<vmem>>, vector<1x48xf32>
    %c0_25 = arith.constant 0 : index
    %c0_26 = arith.constant 0 : index
    %44 = vector.load %arg7[%c0_25, %c0_26] : memref<1x48xf32, #tpu.memory_space<vmem>>, vector<1x48xf32>
    %cst_27 = arith.constant dense<0.000000e+00> : vector<16xf32>
    %45 = vector.multi_reduction <add>, %42, %cst_27 [1] : vector<16x48xf32> to vector<16xf32>
    %46 = vector.shape_cast %45 : vector<16xf32> to vector<16x1xf32>
    %cst_28 = arith.constant 4.800000e+01 : f32
    %47 = vector.broadcast %cst_28 : f32 to vector<16x1xf32>
    %48 = arith.divf %46, %47 : vector<16x1xf32>
    %49 = vector.broadcast %48 : vector<16x1xf32> to vector<16x48xf32>
    %50 = arith.subf %42, %49 : vector<16x48xf32>
    %51 = arith.mulf %50, %50 : vector<16x48xf32>
    %cst_29 = arith.constant dense<0.000000e+00> : vector<16xf32>
    %52 = vector.multi_reduction <add>, %51, %cst_29 [1] : vector<16x48xf32> to vector<16xf32>
    %53 = vector.shape_cast %52 : vector<16xf32> to vector<16x1xf32>
    %cst_30 = arith.constant 4.800000e+01 : f32
    %54 = vector.broadcast %cst_30 : f32 to vector<16x1xf32>
    %55 = arith.divf %53, %54 : vector<16x1xf32>
    %56 = vector.broadcast %48 : vector<16x1xf32> to vector<16x48xf32>
    %57 = arith.subf %42, %56 : vector<16x48xf32>
    %cst_31 = arith.constant 9.99999974E-6 : f32
    %58 = vector.broadcast %cst_31 : f32 to vector<16x1xf32>
    %59 = arith.addf %55, %58 : vector<16x1xf32>
    %60 = math.rsqrt %59 : vector<16x1xf32>
    %61 = vector.broadcast %60 : vector<16x1xf32> to vector<16x48xf32>
    %62 = arith.mulf %57, %61 : vector<16x48xf32>
    %63 = vector.broadcast %43 : vector<1x48xf32> to vector<16x48xf32>
    %64 = arith.mulf %62, %63 : vector<16x48xf32>
    %65 = vector.broadcast %44 : vector<1x48xf32> to vector<16x48xf32>
    %66 = arith.addf %64, %65 : vector<16x48xf32>
    %c0_32 = arith.constant 0 : index
    %c0_33 = arith.constant 0 : index
    %67 = vector.load %arg8[%c0_32, %c0_33] : memref<48x192xf32, #tpu.memory_space<vmem>>, vector<48x192xf32>
    %cst_34 = arith.constant dense<0.000000e+00> : vector<16x192xf32>
    %68 = tpu.matmul %66, %67, %cst_34 {dimension_numbers = #tpu.dot_dimension_numbers<[1], [0], [0], [1], [0, 0, 1, 1], [], []>} : vector<16x48xf32>, vector<48x192xf32>, vector<16x192xf32> -> vector<16x192xf32>
    %c0_35 = arith.constant 0 : index
    %c0_36 = arith.constant 0 : index
    %69 = vector.load %arg9[%c0_35, %c0_36] : memref<1x192xf32, #tpu.memory_space<vmem>>, vector<1x192xf32>
    %70 = vector.broadcast %69 : vector<1x192xf32> to vector<16x192xf32>
    %71 = arith.addf %68, %70 : vector<16x192xf32>
    %cst_37 = arith.constant 5.000000e-01 : f32
    %72 = vector.broadcast %cst_37 : f32 to vector<16x192xf32>
    %73 = arith.mulf %72, %71 : vector<16x192xf32>
    %cst_38 = arith.constant 0.707106769 : f32
    %74 = vector.broadcast %cst_38 : f32 to vector<16x192xf32>
    %75 = arith.mulf %71, %74 : vector<16x192xf32>
    %76 = math.absf %75 : vector<16x192xf32>
    %cst_39 = arith.constant 0.327591091 : f32
    %77 = vector.broadcast %cst_39 : f32 to vector<16x192xf32>
    %78 = arith.mulf %77, %76 : vector<16x192xf32>
    %cst_40 = arith.constant 1.000000e+00 : f32
    %79 = vector.broadcast %cst_40 : f32 to vector<16x192xf32>
    %80 = arith.addf %79, %78 : vector<16x192xf32>
    %cst_41 = arith.constant 1.000000e+00 : f32
    %81 = vector.broadcast %cst_41 : f32 to vector<16x192xf32>
    %82 = arith.divf %81, %80 : vector<16x192xf32>
    %cst_42 = arith.constant 1.06140542 : f32
    %83 = vector.broadcast %cst_42 : f32 to vector<16x192xf32>
    %84 = arith.mulf %83, %82 : vector<16x192xf32>
    %cst_43 = arith.constant 1.45315206 : f32
    %85 = vector.broadcast %cst_43 : f32 to vector<16x192xf32>
    %86 = arith.subf %84, %85 : vector<16x192xf32>
    %87 = arith.mulf %86, %82 : vector<16x192xf32>
    %cst_44 = arith.constant 1.42141378 : f32
    %88 = vector.broadcast %cst_44 : f32 to vector<16x192xf32>
    %89 = arith.addf %87, %88 : vector<16x192xf32>
    %90 = arith.mulf %89, %82 : vector<16x192xf32>
    %cst_45 = arith.constant 0.284496725 : f32
    %91 = vector.broadcast %cst_45 : f32 to vector<16x192xf32>
    %92 = arith.subf %90, %91 : vector<16x192xf32>
    %93 = arith.mulf %92, %82 : vector<16x192xf32>
    %cst_46 = arith.constant 0.254829586 : f32
    %94 = vector.broadcast %cst_46 : f32 to vector<16x192xf32>
    %95 = arith.addf %93, %94 : vector<16x192xf32>
    %96 = arith.mulf %95, %82 : vector<16x192xf32>
    %cst_47 = arith.constant 0.000000e+00 : f32
    %97 = vector.broadcast %cst_47 : f32 to vector<16x192xf32>
    %98 = arith.subf %97, %76 : vector<16x192xf32>
    %99 = arith.mulf %98, %76 : vector<16x192xf32>
    %100 = math.exp %99 : vector<16x192xf32>
    %101 = arith.mulf %96, %100 : vector<16x192xf32>
    %cst_48 = arith.constant 1.000000e+00 : f32
    %102 = vector.broadcast %cst_48 : f32 to vector<16x192xf32>
    %103 = arith.subf %102, %101 : vector<16x192xf32>
    %cst_49 = arith.constant 0.000000e+00 : f32
    %104 = vector.broadcast %cst_49 : f32 to vector<16x192xf32>
    %105 = arith.cmpf oge, %75, %104 : vector<16x192xf32>
    %cst_50 = arith.constant 0.000000e+00 : f32
    %106 = vector.broadcast %cst_50 : f32 to vector<16x192xf32>
    %107 = arith.subf %106, %103 : vector<16x192xf32>
    %108 = arith.select %105, %103, %107 : vector<16x192xi1>, vector<16x192xf32>
    %cst_51 = arith.constant 1.000000e+00 : f32
    %109 = vector.broadcast %cst_51 : f32 to vector<16x192xf32>
    %110 = arith.addf %109, %108 : vector<16x192xf32>
    %111 = arith.mulf %73, %110 : vector<16x192xf32>
    %c0_52 = arith.constant 0 : index
    %c0_53 = arith.constant 0 : index
    %112 = vector.load %arg10[%c0_52, %c0_53] : memref<192x48xf32, #tpu.memory_space<vmem>>, vector<192x48xf32>
    %cst_54 = arith.constant dense<0.000000e+00> : vector<16x48xf32>
    %113 = tpu.matmul %111, %112, %cst_54 {dimension_numbers = #tpu.dot_dimension_numbers<[1], [0], [0], [1], [0, 0, 1, 1], [], []>} : vector<16x192xf32>, vector<192x48xf32>, vector<16x48xf32> -> vector<16x48xf32>
    %114 = arith.addf %42, %113 : vector<16x48xf32>
    %c0_55 = arith.constant 0 : index
    %c0_56 = arith.constant 0 : index
    %115 = vector.load %arg11[%c0_55, %c0_56] : memref<1x48xf32, #tpu.memory_space<vmem>>, vector<1x48xf32>
    %116 = vector.broadcast %115 : vector<1x48xf32> to vector<16x48xf32>
    %117 = arith.addf %114, %116 : vector<16x48xf32>
    %118 = vector.shape_cast %117 : vector<16x48xf32> to vector<2x8x48xf32>
    %cst_57 = arith.constant dense<0.000000e+00> : vector<2x48xf32>
    %119 = vector.multi_reduction <add>, %118, %cst_57 [1] : vector<2x8x48xf32> to vector<2x48xf32>
    %cst_58 = arith.constant 1.250000e-01 : f32
    %120 = vector.broadcast %cst_58 : f32 to vector<2x48xf32>
    %121 = arith.mulf %119, %120 : vector<2x48xf32>
    %c0_59 = arith.constant 0 : index
    %c0_60 = arith.constant 0 : index
    %122 = vector.load %arg12[%c0_59, %c0_60] : memref<1x48xf32, #tpu.memory_space<vmem>>, vector<1x48xf32>
    %c0_61 = arith.constant 0 : index
    %c0_62 = arith.constant 0 : index
    %123 = vector.load %arg13[%c0_61, %c0_62] : memref<1x48xf32, #tpu.memory_space<vmem>>, vector<1x48xf32>
    %cst_63 = arith.constant dense<0.000000e+00> : vector<2xf32>
    %124 = vector.multi_reduction <add>, %121, %cst_63 [1] : vector<2x48xf32> to vector<2xf32>
    %125 = vector.shape_cast %124 : vector<2xf32> to vector<2x1xf32>
    %cst_64 = arith.constant 4.800000e+01 : f32
    %126 = vector.broadcast %cst_64 : f32 to vector<2x1xf32>
    %127 = arith.divf %125, %126 : vector<2x1xf32>
    %128 = vector.broadcast %127 : vector<2x1xf32> to vector<2x48xf32>
    %129 = arith.subf %121, %128 : vector<2x48xf32>
    %130 = arith.mulf %129, %129 : vector<2x48xf32>
    %cst_65 = arith.constant dense<0.000000e+00> : vector<2xf32>
    %131 = vector.multi_reduction <add>, %130, %cst_65 [1] : vector<2x48xf32> to vector<2xf32>
    %132 = vector.shape_cast %131 : vector<2xf32> to vector<2x1xf32>
    %cst_66 = arith.constant 4.800000e+01 : f32
    %133 = vector.broadcast %cst_66 : f32 to vector<2x1xf32>
    %134 = arith.divf %132, %133 : vector<2x1xf32>
    %135 = vector.broadcast %127 : vector<2x1xf32> to vector<2x48xf32>
    %136 = arith.subf %121, %135 : vector<2x48xf32>
    %cst_67 = arith.constant 9.99999974E-6 : f32
    %137 = vector.broadcast %cst_67 : f32 to vector<2x1xf32>
    %138 = arith.addf %134, %137 : vector<2x1xf32>
    %139 = math.rsqrt %138 : vector<2x1xf32>
    %140 = vector.broadcast %139 : vector<2x1xf32> to vector<2x48xf32>
    %141 = arith.mulf %136, %140 : vector<2x48xf32>
    %142 = vector.broadcast %122 : vector<1x48xf32> to vector<2x48xf32>
    %143 = arith.mulf %141, %142 : vector<2x48xf32>
    %144 = vector.broadcast %123 : vector<1x48xf32> to vector<2x48xf32>
    %145 = arith.addf %143, %144 : vector<2x48xf32>
    %c0_68 = arith.constant 0 : index
    %c0_69 = arith.constant 0 : index
    %146 = vector.load %arg14[%c0_68, %c0_69] : memref<48x512xf32, #tpu.memory_space<vmem>>, vector<48x512xf32>
    %cst_70 = arith.constant dense<0.000000e+00> : vector<2x512xf32>
    %147 = tpu.matmul %145, %146, %cst_70 {dimension_numbers = #tpu.dot_dimension_numbers<[1], [0], [0], [1], [0, 0, 1, 1], [], []>} : vector<2x48xf32>, vector<48x512xf32>, vector<2x512xf32> -> vector<2x512xf32>
    %c0_71 = arith.constant 0 : index
    %c0_72 = arith.constant 0 : index
    %148 = vector.load %arg15[%c0_71, %c0_72] : memref<1x512xf32, #tpu.memory_space<vmem>>, vector<1x512xf32>
    %149 = vector.broadcast %148 : vector<1x512xf32> to vector<2x512xf32>
    %150 = arith.addf %147, %149 : vector<2x512xf32>
    %c0_73 = arith.constant 0 : index
    %c0_74 = arith.constant 0 : index
    %151 = vector.load %arg16[%c0_73, %c0_74] : memref<512x256xf32, #tpu.memory_space<vmem>>, vector<512x256xf32>
    %cst_75 = arith.constant dense<0.000000e+00> : vector<2x256xf32>
    %152 = tpu.matmul %150, %151, %cst_75 {dimension_numbers = #tpu.dot_dimension_numbers<[1], [0], [0], [1], [0, 0, 1, 1], [], []>} : vector<2x512xf32>, vector<512x256xf32>, vector<2x256xf32> -> vector<2x256xf32>
    %c0_76 = arith.constant 0 : index
    %c0_77 = arith.constant 0 : index
    %153 = vector.load %arg17[%c0_76, %c0_77] : memref<1x256xf32, #tpu.memory_space<vmem>>, vector<1x256xf32>
    %154 = vector.broadcast %153 : vector<1x256xf32> to vector<2x256xf32>
    %155 = arith.addf %152, %154 : vector<2x256xf32>
    %c0_78 = arith.constant 0 : index
    %c0_79 = arith.constant 0 : index
    %156 = vector.load %arg18[%c0_78, %c0_79] : memref<256x3xf32, #tpu.memory_space<vmem>>, vector<256x3xf32>
    %cst_80 = arith.constant dense<0.000000e+00> : vector<2x3xf32>
    %157 = tpu.matmul %155, %156, %cst_80 {dimension_numbers = #tpu.dot_dimension_numbers<[1], [0], [0], [1], [0, 0, 1, 1], [], []>} : vector<2x256xf32>, vector<256x3xf32>, vector<2x3xf32> -> vector<2x3xf32>
    %c0_81 = arith.constant 0 : index
    %c0_82 = arith.constant 0 : index
    %158 = vector.load %arg19[%c0_81, %c0_82] : memref<1x3xf32, #tpu.memory_space<vmem>>, vector<1x3xf32>
    %159 = vector.broadcast %158 : vector<1x3xf32> to vector<2x3xf32>
    %160 = arith.addf %157, %159 : vector<2x3xf32>
    %c0_83 = arith.constant 0 : index
    %c0_84 = arith.constant 0 : index
    %161 = vector.load %arg20[%c0_83, %c0_84] : memref<2x3xf32, #tpu.memory_space<vmem>>, vector<2x3xf32>
    tpu.vector_store %arg20[%c0_83, %c0_84], %160 {strides = array<i32>} : memref<2x3xf32, #tpu.memory_space<vmem>>, vector<2x3xf32>,
    return
  }
}

</mosaic_0001>

<bundles_post_ra>
// kernel: seva_forward.3
= control target key start
LH: loop header
LB: loop body
LE: loop exit
PB: predicated region body
PF: predicated region fallthrough
CT: control target
= control target key end

     0   :  { %17 = vsyncpa [#allocation3], 0  ;;  %s518_s0 = inlined_call_operand.vmem [shape: f32[16,48], index: 0, kind: input, shape index: {}]   ;;  %s519_s1 = inlined_call_operand.vmem [shape: f32[1,48], index: 1, kind: input, shape index: {}]   ;;  %s520_s2 = inlined_call_operand.vmem [shape: f32[1,48], index: 2, kind: input, shape index: {}]   ;;  %s521_s3 = inlined_call_operand.hbm [shape: f32[48,48], index: 3, kind: input, shape index: {}]   ;;  %s522_s4 = inlined_call_operand.vmem [shape: f32[1,48], index: 4, kind: input, shape index: {}]   ;;  %s523_s5 = inlined_call_operand.hbm [shape: f32[48,48], index: 5, kind: input, shape index: {}]   ;;  %s524_s6 = inlined_call_operand.vmem [shape: f32[1,48], index: 6, kind: input, shape index: {}]   ;;  %s525_s7 = inlined_call_operand.hbm [shape: f32[48,48], index: 7, kind: input, shape index: {}]   ;;  %s526_s8 = inlined_call_operand.vmem [shape: f32[1,48], index: 8, kind: input, shape index: {}]   ;;  %s527_s9 = inlined_call_operand.vmem [shape: f32[16,48], index: 9, kind: output, shape index: {0}]   ;;  %s528_s10 = inlined_call_operand.vmem [shape: f32[16,48], index: 10, kind: output, shape index: {1}]   ;;  %s529_s11 = inlined_call_operand.vmem [shape: f32[16,48], index: 11, kind: output, shape index: {2}]  }
   0x1   :  { %18 = vsyncpa [#allocation5], 0  ;;  %s44_s19 = sshll.u32 %s523_s5, 4  ;;  %s378_s20 = smov [#allocation4]   ;;  %s45_s19 = int_to_ptr.hbm [resolvable:$true] %s44_s19 }
   0x2   :  { %s46_s21 = sshll.u32 %s378_s20, 4  ;;  %s29_s24 = sshll.u32 %s521_s3, 4  ;;  %s47_s21 = int_to_ptr.vmem [resolvable:$true] %s46_s21  ;;  %s30_s24 = int_to_ptr.hbm [resolvable:$true] %s29_s24 }
   0x3   :  { %s379_s25 = smov 128   ;;  %s380_s26 = smov 8  }
   0x4   :  { %52 = dma.hbm_to_vmem [thread:$0]  %s45_s19, 768, %s47_s21, [#allocation5], %s379_s25, %s379_s25, %s380_s26  }
   0x5   :  { %s381_s27 = smov [#allocation2]   ;;  %s59_s12 = sshll.u32 %s525_s7, 4  ;;  %s60_s12 = int_to_ptr.hbm [resolvable:$true] %s59_s12 }
   0x6   :  { %s31_s28 = sshll.u32 %s381_s27, 4  ;;  %s382_s5 = smov [#allocation6]   ;;  %s32_s28 = int_to_ptr.vmem [resolvable:$true] %s31_s28 }
   0x7   :  { %37 = dma.hbm_to_vmem [thread:$0]  %s30_s24, 768, %s32_s28, [#allocation3], %s379_s25, %s379_s25, %s380_s26  }
   0x8   :  { %s61_s13 = sshll.u32 %s382_s5, 4  ;;  %s62_s13 = int_to_ptr.vmem [resolvable:$true] %s61_s13 }
   0x9   :  { %67 = dma.hbm_to_vmem [thread:$0]  %s60_s12, 768, %s62_s13, [#allocation5], %s379_s25, %s379_s25, %s380_s26  }
   0xa   :  { %374 = dma.done.wait [#allocation3], 768  }
   0xb   :  { %375 = vsyncadd [#allocation3], 4294966528 }
   0xc   :  { %376 = dma.done.wait [#allocation5], 1536  }
   0xd   :  { %377 = vsyncadd [#allocation5], 4294965760  ;;  %vm86_vm0 = vcmask 392192   ;;  %v82_v0 = vld [vmem:[%s518_s0] sm:$0xff]  ;;  %v83_v2 = vld [vmem:[%s518_s0 + $0x8] sm:$0xff]  ;;  %v383_v4 = vmov 48.0  }
   0xe   :  { %v87_v1 = vsel %vm86_vm0, %v82_v0, 0.0  ;;  %v90_v3 = vsel %vm86_vm0, %v83_v2, 0.0  ;;  %296 = vrcp.f32 %v383_v4  ;;  %v153_v21 = vld [vmem:[#allocation2 + $0x28] sm:$0xff]  ;;  %v194_v22 = vld [vmem:[#allocation4 + $0x28] sm:$0xff]  ;;  %v152_v24 = vld [vmem:[#allocation2 + $0x20] sm:$0xff] }
   0xf   :  { %88 = vadd.xlane.f32.xlu0 %v87_v1  ;;  %v229_v23 = vld [vmem:[#allocation6 + $0x28] sm:$0xff]  ;;  %174 = vmatpush.msra.mxu0 %v153_v21  ;;  %v193_v25 = vld [vmem:[#allocation4 + $0x20] sm:$0xff]  ;;  %v228_v26 = vld [vmem:[#allocation6 + $0x20] sm:$0xff] }
  0x10   :  { %209 = vmatpush.msra.mxu1 %v194_v22  ;;  %244 = vmatpush.msra.mxu2 %v229_v23  ;;  %v151_v27 = vld [vmem:[#allocation2 + $0x18] sm:$0xff]  ;;  %v192_v28 = vld [vmem:[#allocation4 + $0x18] sm:$0xff]  ;;  %v150_v30 = vld [vmem:[#allocation2 + $0x10] sm:$0xff] }
  0x11   :  { %279 = vmatpush.msra.mxu3 %v153_v21  ;;  %175 = vmatpush.msra.mxu0 %v152_v24  ;;  %v227_v29 = vld [vmem:[#allocation6 + $0x18] sm:$0xff]  ;;  %v191_v31 = vld [vmem:[#allocation4 + $0x10] sm:$0xff]  ;;  %v226_v32 = vld [vmem:[#allocation6 + $0x10] sm:$0xff] }
  0x12   :  { %210 = vmatpush.msra.mxu1 %v193_v25  ;;  %245 = vmatpush.msra.mxu2 %v228_v26  ;;  %v149_v33 = vld [vmem:[#allocation2 + $0x8] sm:$0xff]  ;;  %v190_v34 = vld [vmem:[#allocation4 + $0x8] sm:$0xff]  ;;  %v148_v36 = vld [vmem:[#allocation2] sm:$0xff] }
  0x13   :  { %280 = vmatpush.msra.mxu3 %v152_v24  ;;  %176 = vmatpush.msra.mxu0 %v151_v27  ;;  %v225_v35 = vld [vmem:[#allocation6 + $0x8] sm:$0xff]  ;;  %v189_v37 = vld [vmem:[#allocation4] sm:$0xff]  ;;  %v224_v38 = vld [vmem:[#allocation6] sm:$0xff] }
  0x14   :  { %v297_v5 = vpop.eup %296  ;;  %211 = vmatpush.msra.mxu1 %v192_v28  ;;  %246 = vmatpush.msra.mxu2 %v227_v29  ;;  %v291_v53 = vld [vmem:[%s519_s1] ss:$0 sm:$0xff] }
  0x15   :  { %v94_v6 = vmul.f32 48.0, %v297_v5  ;;  %vm98_vm1 = vweird.f32 %v297_v5  ;;  %281 = vmatpush.msra.mxu3 %v151_v27  ;;  %177 = vmatpush.msra.mxu0 %v150_v30  ;;  %v292_v57 = vld [vmem:[%s520_s2] ss:$0 sm:$0xff] }
  0x16   :  { %212 = vmatpush.msra.mxu1 %v191_v31  ;;  %247 = vmatpush.msra.mxu2 %v226_v32  ;;  %v294_v4 = vld [vmem:[%s524_s6] ss:$0 sm:$0xff] }
  0x17   :  { %91 = vadd.xlane.f32.xlu0 %v90_v3  ;;  %v95_v7 = vsub.f32 1.0, %v94_v6  ;;  %282 = vmatpush.msra.mxu3 %v150_v30  ;;  %v293_v3 = vld [vmem:[%s522_s4] ss:$0 sm:$0xff] }
  0x18   :  { %178 = vmatpush.msra.mxu0 %v149_v33  ;;  %213 = vmatpush.msra.mxu1 %v190_v34 }
  0x19   :  { %v96_v8 = vmul.f32 %v297_v5, %v95_v7  ;;  %248 = vmatpush.msra.mxu2 %v225_v35  ;;  %283 = vmatpush.msra.mxu3 %v149_v33 }
  0x1a   :  { %179 = vmatpush.msra.mxu0 %v148_v36  ;;  %214 = vmatpush.msra.mxu1 %v189_v37 }
  0x1b   :  { %v97_v9 = vadd.f32 %v297_v5, %v96_v8  ;;  %249 = vmatpush.msra.mxu2 %v224_v38  ;;  %284 = vmatpush.msra.mxu3 %v148_v36 }
  0x1d   :  { %v99_v10 = vsel %vm98_vm1, %v297_v5, %v97_v9  ;;  %v295_v9 = vld [vmem:[%s526_s8] ss:$0 sm:$0xff] }
  0x82   :  { %v89_v11 = vpop.xlane.xlu0 %88 }
  0x83   :  { %v100_v12 = vmul.f32 %v99_v10, %v89_v11 }
  0x85   :  { %v461_v13 = vsub.f32 %v82_v0, %v100_v12 }
  0x87   :  { %v104_v14 = vmul.f32 %v461_v13, %v461_v13 }
  0x89   :  { %v106_v15 = vsel %vm86_vm0, %v104_v14, 0.0 }
  0x8a   :  { %107 = vadd.xlane.f32.xlu1 %v106_v15  ;;  %v92_v16 = vpop.xlane.xlu0 %91 }
  0x8b   :  { %v101_v17 = vmul.f32 %v99_v10, %v92_v16 }
  0x8d   :  { %v466_v18 = vsub.f32 %v83_v2, %v101_v17 }
  0x8f   :  { %v105_v19 = vmul.f32 %v466_v18, %v466_v18 }
  0x91   :  { %v109_v20 = vsel %vm86_vm0, %v105_v19, 0.0 }
  0x92   :  { %110 = vadd.xlane.f32.xlu1 %v109_v20 }
  0xfd   :  { %v108_v39 = vpop.xlane.xlu1 %107 }
  0xfe   :  { %v112_v40 = vmul.f32 %v108_v39, %v99_v10 }
 0x100   :  { %v114_v41 = vadd.f32 1e-05, %v112_v40 }
 0x102   :  { %298 = vrsqrt.f32 %v114_v41  ;;  %vm122_vm3 = vweird.f32 %v114_v41 }
 0x105   :  { %v111_v42 = vpop.xlane.xlu1 %110 }
 0x106   :  { %v113_v43 = vmul.f32 %v111_v42, %v99_v10 }
 0x108   :  { %v299_v44 = vpop.eup %298  ;;  %v115_v45 = vadd.f32 1e-05, %v113_v43 }
 0x109   :  { %v117_v46 = vmul.f32 %v299_v44, %v114_v41  ;;  %vm123_vm2 = vweird.f32 %v299_v44 }
 0x10a   :  { %300 = vrsqrt.f32 %v115_v45  ;;  %vm124_vm4 = vmor %vm122_vm3, %vm123_vm2  ;;  %vm132_vm6 = vweird.f32 %v115_v45 }
 0x10b   :  { %v118_v47 = vmul.f32 %v299_v44, %v117_v46 }
 0x10d   :  { %v119_v48 = vmul.f32 0.5, %v118_v47 }
 0x10f   :  { %v120_v49 = vsub.f32 1.5, %v119_v48 }
 0x110   :  { %v301_v50 = vpop.eup %300 }
 0x111   :  { %v121_v51 = vmul.f32 %v299_v44, %v120_v49  ;;  %v127_v52 = vmul.f32 %v301_v50, %v115_v45  ;;  %vm133_vm5 = vweird.f32 %v301_v50 }
 0x112   :  { %vm134_vm7 = vmor %vm132_vm6, %vm133_vm5 }
 0x113   :  { %v125_v54 = vsel %vm124_vm4, %v299_v44, %v121_v51  ;;  %v128_v55 = vmul.f32 %v301_v50, %v127_v52 }
 0x114   :  { %v136_v56 = vmul.f32 %v125_v54, %v461_v13 }
 0x115   :  { %v129_v58 = vmul.f32 0.5, %v128_v55 }
 0x116   :  { %v141_v59 = vmul.f32 %v291_v53, %v136_v56 }
 0x117   :  { %v130_v60 = vsub.f32 1.5, %v129_v58 }
 0x118   :  { %v146_v61 = vadd.f32 %v292_v57, %v141_v59 }
 0x119   :  { %v131_v62 = vmul.f32 %v301_v50, %v130_v60 }
 0x11a   :  { %273 = vmatmul.msk.f32.vlgmr.msra.gmra.mxu0 %vm86_vm0, %v146_v61  ;;  %275 = vmatmul.msk.f32.vlgmr.msra.gmra.mxu1 %vm86_vm0, %v146_v61 }
 0x11b   :  { %v135_v63 = vsel %vm134_vm7, %v301_v50, %v131_v62  ;;  %277 = vmatmul.msk.f32.vlgmr.msra.gmra.mxu2 %vm86_vm0, %v146_v61 }
 0x11c   :  { %v137_v0 = vmul.f32 %v135_v63, %v466_v18 }
 0x11e   :  { %v142_v1 = vmul.f32 %v291_v53, %v137_v0 }
 0x120   :  { %v147_v2 = vadd.f32 %v292_v57, %v142_v1 }
 0x122   :  { %274 = vmatmul.msk.f32.vlgmr.msra.gmra.mxu3 %vm86_vm0, %v147_v2  ;;  %276 = vmatmul.msk.f32.gmra.mxu1 %vm86_vm0, %v147_v2 }
 0x123   :  { %278 = vmatmul.msk.f32.gmra.mxu2 %vm86_vm0, %v147_v2 }
 0x197   :  { %v181_v5 = vpop.f32.mrf.mxu0  ;;  %v216_v6 = vpop.f32.mrf.mxu1 }
 0x198   :  { %v182_v7 = vadd.f32 %v293_v3, %v181_v5  ;;  %v217_v8 = vadd.f32 %v294_v4, %v216_v6 }
 0x19a   :  { %187 = vst.msk [vmem:[%s527_s9] sm:$0xff] %vm86_vm0, %v182_v7 }
 0x19b   :  { %222 = vst.msk [vmem:[%s528_s10] sm:$0xff] %vm86_vm0, %v217_v8 }
 0x19e   :  { %v251_v10 = vpop.f32.mrf.mxu2 }
 0x19f   :  { %v252_v11 = vadd.f32 %v295_v9, %v251_v10  ;;  %v219_v12 = vpop.f32.mrf.mxu1 }
 0x1a0   :  { %v220_v13 = vadd.f32 %v294_v4, %v219_v12 }
 0x1a1   :  { %257 = vst.msk [vmem:[%s529_s11] sm:$0xff] %vm86_vm0, %v252_v11 }
 0x1a2   :  { %223 = vst.msk [vmem:[%s528_s10 + $0x8] sm:$0xff] %vm86_vm0, %v220_v13 }
 0x1a5   :  { %v184_v14 = vpop.f32.mrf.mxu3 }
 0x1a6   :  { %v185_v15 = vadd.f32 %v293_v3, %v184_v14  ;;  %v254_v16 = vpop.f32.mrf.mxu2 }
 0x1a7   :  { %v255_v17 = vadd.f32 %v295_v9, %v254_v16 }
 0x1a8   :  { %188 = vst.msk [vmem:[%s527_s9 + $0x8] sm:$0xff] %vm86_vm0, %v185_v15 }
 0x1a9   :  { %258 = vst.msk [vmem:[%s529_s11 + $0x8] sm:$0xff] %vm86_vm0, %v255_v17 }
 0x1aa   :  { %271 = vsyncpa [#allocation3], 1 }
 0x1ab   :  { %272 = vsyncpa [#allocation5], 1 }

// kernel: seva_forward.4
= control target key start
LH: loop header
LB: loop body
LE: loop exit
PB: predicated region body
PF: predicated region fallthrough
CT: control target
= control target key end

     0   :  { %vm119_vm0 = vcmask 64512   ;;  %s3012_s1 = inlined_call_operand.vmem [shape: f32[12,8,8], index: 1, kind: input, shape index: {}]   ;;  %s3013_s0 = inlined_call_operand.vmem [shape: f32[12,8,8], index: 0, kind: input, shape index: {}]   ;;  %s3014_s2 = inlined_call_operand.vmem [shape: f32[12,8,8], index: 2, kind: input, shape index: {}]   ;;  %s3015_s4 = inlined_call_operand.vmem [shape: f32[12,8,48], index: 4, kind: input, shape index: {}]   ;;  %s3016_s5 = inlined_call_operand.vmem [shape: f32[1,48], index: 5, kind: input, shape index: {}]   ;;  %s3017_s3 = inlined_call_operand.vmem [shape: f32[16,48], index: 3, kind: input, shape index: {}]   ;;  %s3018_s6 = inlined_call_operand.vmem [shape: f32[1,48], index: 6, kind: input, shape index: {}]   ;;  %s3019_s7 = inlined_call_operand.vmem [shape: f32[1,48], index: 7, kind: input, shape index: {}]   ;;  %s3020_s8 = inlined_call_operand.vmem [shape: f32[48,192], index: 8, kind: input, shape index: {}]   ;;  %s3021_s9 = inlined_call_operand.vmem [shape: f32[1,192], index: 9, kind: input, shape index: {}]   ;;  %s3022_s10 = inlined_call_operand.vmem [shape: f32[192,48], index: 10, kind: input, shape index: {}]   ;;  %s3023_s11 = inlined_call_operand.vmem [shape: f32[1,48], index: 11, kind: input, shape index: {}]   ;;  %s3024_s20 = inlined_call_operand.vmem [shape: f32[16,48], index: 20, kind: output, shape index: {0}]   ;;  %s3025_s12 = inlined_call_operand.vmem [shape: f32[1,48], index: 12, kind: input, shape index: {}]   ;;  %s3026_s13 = inlined_call_operand.vmem [shape: f32[1,48], index: 13, kind: input, shape index: {}]   ;;  %s3027_s15 = inlined_call_operand.vmem [shape: f32[1,48], index: 15, kind: input, shape index: {}]   ;;  %s3028_s14 = inlined_call_operand.vmem [shape: f32[48,48], index: 14, kind: input, shape index: {}]   ;;  %s3029_s16 = inlined_call_operand.vmem [shape: f32[48,48], index: 16, kind: input, shape index: {}]   ;;  %s3030_s18 = inlined_call_operand.vmem [shape: f32[48,48], index: 18, kind: input, shape index: {}]   ;;  %s3031_s17 = inlined_call_operand.vmem [shape: f32[1,48], index: 17, kind: input, shape index: {}]   ;;  %s3032_s19 = inlined_call_operand.vmem [shape: f32[1,48], index: 19, kind: input, shape index: {}]   ;;  %s3033_s21 = inlined_call_operand.vmem [shape: f32[16,48], index: 21, kind: output, shape index: {1}]   ;;  %s3034_s22 = inlined_call_operand.vmem [shape: f32[16,48], index: 22, kind: output, shape index: {2}]   ;;  %s3035_s23 = inlined_call_operand.vmem [shape: f32[16,48], index: 23, kind: output, shape index: {3}]  }
   0x1   :  { %3041 = sst [smem:[#allocation2_spill]] %s3012_s1 }
   0x2   :  { %3042 = sst [smem:[#allocation3_spill]] %s3013_s0 }
   0x3   :  { %3043 = sst [smem:[#allocation4_spill]] %s3014_s2 }
   0x4   :  { %3044 = sst [smem:[#allocation5_spill]] %s3015_s4 }
   0x5   :  { %3045 = sst [smem:[#allocation6_spill]] %s3016_s5 }
   0x6   :  { %3046 = sst [smem:[#allocation7_spill]] %s3017_s3 }
   0x7   :  { %3047 = sst [smem:[#allocation8_spill]] %s3018_s6 }
   0x8   :  { %3048 = sst [smem:[#allocation9_spill]] %s3019_s7 }
   0x9   :  { %s3049_s24 = sld [smem:[#allocation2_spill]] }
   0xa   :  { %s3050_s28 = sld [smem:[#allocation3_spill]] }
   0xb   :  { %s3051_s7 = sld [smem:[#allocation4_spill]] }
   0xc   :  { %s3078_s26 = sld [smem:[#allocation5_spill]] }
   0xd   :  { %s3079_s25 = sld [smem:[#allocation7_spill]] }
   0xe   :  { %s3081_s3 = sld [smem:[#allocation8_spill]] }
   0xf   :  { %v95_v0 = vld [vmem:[%s3049_s24] sm:$0xff]  ;;  %v96_v1 = vld [vmem:[%s3049_s24 + $0x8] sm:$0xff]  ;;  %v97_v2 = vld [vmem:[%s3049_s24 + $0x10] sm:$0xff]  ;;  %s3082_s0 = sld [smem:[#allocation9_spill]] }
  0x10   :  { %1866 = vmatpush.xpose.msk.msra.mxu0 %vm119_vm0, %v95_v0  ;;  %1868 = vmatpush.xpose.msk.msra.mxu1 %vm119_vm0, %v96_v1  ;;  %v98_v3 = vld [vmem:[%s3049_s24 + $0x18] sm:$0xff]  ;;  %v71_v4 = vld [vmem:[%s3050_s28] sm:$0xff]  ;;  %v72_v5 = vld [vmem:[%s3050_s28 + $0x8] sm:$0xff] }
  0x11   :  { %1870 = vmatpush.xpose.msk.msra.mxu2 %vm119_vm0, %v97_v2  ;;  %1872 = vmatpush.xpose.msk.msra.mxu3 %vm119_vm0, %v98_v3  ;;  %v83_v6 = vmul.f32 0.35355338, %v71_v4  ;;  %v84_v7 = vmul.f32 0.35355338, %v72_v5  ;;  %v73_v8 = vld [vmem:[%s3050_s28 + $0x10] sm:$0xff]  ;;  %v74_v9 = vld [vmem:[%s3050_s28 + $0x18] sm:$0xff] }
  0x12   :  { %v85_v10 = vmul.f32 0.35355338, %v73_v8  ;;  %v86_v11 = vmul.f32 0.35355338, %v74_v9  ;;  %v101_v12 = vld [vmem:[%s3049_s24 + $0x30] sm:$0xff]  ;;  %v102_v13 = vld [vmem:[%s3049_s24 + $0x38] sm:$0xff] }
  0x13   :  { %1867 = vmatmul.msk.f32.vlgmr.msra.gmra.mxu0 %vm119_vm0, %v83_v6  ;;  %1869 = vmatmul.msk.f32.vlgmr.msra.gmra.mxu1 %vm119_vm0, %v84_v7  ;;  %v105_v14 = vld [vmem:[%s3049_s24 + $0x50] sm:$0xff]  ;;  %v78_v16 = vld [vmem:[%s3050_s28 + $0x38] sm:$0xff]  ;;  %v99_v17 = vld [vmem:[%s3049_s24 + $0x20] sm:$0xff] }
  0x14   :  { %1871 = vmatmul.msk.f32.vlgmr.msra.gmra.mxu2 %vm119_vm0, %v85_v10  ;;  %1873 = vmatmul.msk.f32.vlgmr.msra.gmra.mxu3 %vm119_vm0, %v86_v11  ;;  %v77_v15 = vld [vmem:[%s3050_s28 + $0x30] sm:$0xff]  ;;  %v106_v18 = vld [vmem:[%s3049_s24 + $0x58] sm:$0xff]  ;;  %v100_v19 = vld [vmem:[%s3049_s24 + $0x28] sm:$0xff]  ;;  %v90_v27 = vmul.f32 0.35355338, %v78_v16 }
  0x15   :  { %1878 = vmatpush.xpose.msk.msrb.mxu2 %vm119_vm0, %v101_v12  ;;  %1880 = vmatpush.xpose.msk.msrb.mxu3 %vm119_vm0, %v102_v13  ;;  %v75_v20 = vld [vmem:[%s3050_s28 + $0x20] sm:$0xff]  ;;  %v76_v21 = vld [vmem:[%s3050_s28 + $0x28] sm:$0xff]  ;;  %v89_v26 = vmul.f32 0.35355338, %v77_v15  ;;  %v81_v30 = vld [vmem:[%s3050_s28 + $0x50] sm:$0xff] }
  0x16   :  { %1874 = vmatpush.xpose.msk.msrb.mxu0 %vm119_vm0, %v99_v17  ;;  %v103_v22 = vld [vmem:[%s3049_s24 + $0x40] sm:$0xff]  ;;  %1876 = vmatpush.xpose.msk.msrb.mxu1 %vm119_vm0, %v100_v19  ;;  %v87_v23 = vmul.f32 0.35355338, %v75_v20  ;;  %v88_v24 = vmul.f32 0.35355338, %v76_v21  ;;  %v104_v25 = vld [vmem:[%s3049_s24 + $0x48] sm:$0xff] }
  0x17   :  { %v79_v28 = vld [vmem:[%s3050_s28 + $0x40] sm:$0xff]  ;;  %v80_v29 = vld [vmem:[%s3050_s28 + $0x48] sm:$0xff]  ;;  %v82_v31 = vld [vmem:[%s3050_s28 + $0x58] sm:$0xff]  ;;  %v93_v34 = vmul.f32 0.35355338, %v81_v30 }
  0x18   :  { %v91_v32 = vmul.f32 0.35355338, %v79_v28  ;;  %v92_v33 = vmul.f32 0.35355338, %v80_v29  ;;  %v94_v35 = vmul.f32 0.35355338, %v82_v31 }
  0x19   :  { %1886 = vmatpush.xpose.msk.msra.mxu2 %vm119_vm0, %v105_v14  ;;  %1888 = vmatpush.xpose.msk.msra.mxu3 %vm119_vm0, %v106_v18 }
  0x1a   :  { %1882 = vmatpush.xpose.msk.msra.mxu0 %vm119_vm0, %v103_v22  ;;  %1884 = vmatpush.xpose.msk.msra.mxu1 %vm119_vm0, %v104_v25 }
  0x1b   :  { %1875 = vmatmul.msk.f32.vlgmr.msrb.gmra.mxu0 %vm119_vm0, %v87_v23  ;;  %1877 = vmatmul.msk.f32.vlgmr.msrb.gmra.mxu1 %vm119_vm0, %v88_v24 }
  0x1c   :  { %1879 = vmatmul.msk.f32.vlgmr.msrb.gmra.mxu2 %vm119_vm0, %v89_v26  ;;  %1881 = vmatmul.msk.f32.vlgmr.msrb.gmra.mxu3 %vm119_vm0, %v90_v27 }
  0x23   :  { %1883 = vmatmul.msk.f32.vlgmr.msra.gmra.mxu0 %vm119_vm0, %v91_v32  ;;  %1885 = vmatmul.msk.f32.vlgmr.msra.gmra.mxu1 %vm119_vm0, %v92_v33 }
  0x24   :  { %1887 = vmatmul.msk.f32.vlgmr.msra.gmra.mxu2 %vm119_vm0, %v93_v34  ;;  %1889 = vmatmul.msk.f32.vlgmr.msra.gmra.mxu3 %vm119_vm0, %v94_v35 }
  0x90   :  { %v143_v36 = vpop.f32.mrf.mxu0  ;;  %v169_v37 = vpop.f32.mrf.mxu1 }
  0x91   :  { %v435_v38 = vsel %vm119_vm0, %v169_v37, -inf  ;;  %v432_v39 = vsel %vm119_vm0, %v143_v36, -inf }
  0x92   :  { %436 = vmax.xlane.f32.xlu2 %v435_v38  ;;  %433 = vmax.xlane.f32.xlu1 %v432_v39 }
  0x97   :  { %v195_v40 = vpop.f32.mrf.mxu2  ;;  %v221_v41 = vpop.f32.mrf.mxu3 }
  0x98   :  { %v438_v42 = vsel %vm119_vm0, %v195_v40, -inf  ;;  %v441_v43 = vsel %vm119_vm0, %v221_v41, -inf  ;;  %v273_v48 = vpop.f32.mrf.mxu1  ;;  %v247_v49 = vpop.f32.mrf.mxu0 }
  0x99   :  { %439 = vmax.xlane.f32.xlu0 %v438_v42  ;;  %v447_v50 = vsel %vm119_vm0, %v273_v48, -inf  ;;  %v444_v51 = vsel %vm119_vm0, %v247_v49, -inf }
  0x9f   :  { %v299_v44 = vpop.f32.mrf.mxu2  ;;  %v325_v45 = vpop.f32.mrf.mxu3 }
  0xa0   :  { %v453_v46 = vsel %vm119_vm0, %v325_v45, -inf  ;;  %v450_v47 = vsel %vm119_vm0, %v299_v44, -inf  ;;  %v2244_v54 = vpop.f32.mrf.mxu1  ;;  %v2248_v56 = vpop.f32.mrf.mxu0 }
  0xa1   :  { %442 = vmax.xlane.f32.xlu0 %v441_v43  ;;  %454 = vmax.xlane.f32.xlu2 %v453_v46  ;;  %v459_v57 = vsel %vm119_vm0, %v2244_v54, -inf  ;;  %v456_v59 = vsel %vm119_vm0, %v2248_v56, -inf }
  0xa2   :  { %451 = vmax.xlane.f32.xlu1 %v450_v47 }
  0xa7   :  { %v403_v52 = vpop.f32.mrf.mxu2  ;;  %v2246_v55 = vpop.f32.mrf.mxu3 }
  0xa8   :  { %v462_v53 = vsel %vm119_vm0, %v403_v52, -inf  ;;  %v465_v58 = vsel %vm119_vm0, %v2246_v55, -inf }
  0xa9   :  { %448 = vmax.xlane.f32.xlu2 %v447_v50  ;;  %445 = vmax.xlane.f32.xlu0 %v444_v51 }
  0xaa   :  { %463 = vmax.xlane.f32.xlu1 %v462_v53 }
  0xb1   :  { %460 = vmax.xlane.f32.xlu2 %v459_v57  ;;  %466 = vmax.xlane.f32.xlu0 %v465_v58  ;;  %v109_v58 = vld [vmem:[%s3051_s7 + $0x10] sm:$0xff] }
  0xb2   :  { %457 = vmax.xlane.f32.xlu1 %v456_v59  ;;  %784 = vmatpush.msrb.mxu2 %v109_v58 }
 0x105   :  { %v434_v60 = vpop.xlane.xlu1 %433  ;;  %v437_v63 = vpop.xlane.xlu2 %436 }
 0x106   :  { %v468_v61 = vsub.f32 %v143_v36, %v434_v60  ;;  %v469_v12 = vsub.f32 %v169_v37, %v437_v63  ;;  %v110_v63 = vld [vmem:[%s3051_s7 + $0x18] sm:$0xff] }
 0x107   :  { %807 = vmatpush.msrb.mxu3 %v110_v63 }
 0x108   :  { %v480_v62 = vmul.f32 1.442695, %v468_v61  ;;  %v482_v17 = vmul.f32 1.442695, %v469_v12 }
 0x10a   :  { %1944 = vpow2.f32 %v480_v62 }
 0x10c   :  { %v440_v0 = vpop.xlane.xlu0 %439 }
 0x10d   :  { %v470_v1 = vsub.f32 %v195_v40, %v440_v0  ;;  %v113_v0 = vld [vmem:[%s3051_s7 + $0x30] sm:$0xff] }
 0x10e   :  { %876 = vmatpush.msra.mxu2 %v113_v0 }
 0x10f   :  { %v484_v2 = vmul.f32 1.442695, %v470_v1 }
 0x110   :  { %v2256_v3 = vpop.eup %1944 }
 0x111   :  { %1946 = vpow2.f32 %v484_v2  ;;  %v504_v4 = vsel %vm119_vm0, %v2256_v3, 0.0 }
 0x112   :  { %505 = vadd.xlane.f32.xlu2 %v504_v4 }
 0x114   :  { %v443_v5 = vpop.xlane.xlu0 %442  ;;  %v455_v6 = vpop.xlane.xlu2 %454 }
 0x115   :  { %v471_v7 = vsub.f32 %v221_v41, %v443_v5  ;;  %v475_v8 = vsub.f32 %v325_v45, %v455_v6  ;;  %v452_v9 = vpop.xlane.xlu1 %451 }
 0x116   :  { %v474_v10 = vsub.f32 %v299_v44, %v452_v9 }
 0x117   :  { %v2260_v11 = vpop.eup %1946  ;;  %v486_v13 = vmul.f32 1.442695, %v471_v7  ;;  %v494_v14 = vmul.f32 1.442695, %v475_v8 }
 0x118   :  { %v492_v15 = vmul.f32 1.442695, %v474_v10  ;;  %v510_v16 = vsel %vm119_vm0, %v2260_v11, 0.0 }
 0x119   :  { %1948 = vpow2.f32 %v486_v13  ;;  %511 = vadd.xlane.f32.xlu0 %v510_v16  ;;  %v108_v16 = vld [vmem:[%s3051_s7 + $0x8] sm:$0xff] }
 0x11a   :  { %1950 = vpow2.f32 %v494_v14  ;;  %761 = vmatpush.msrb.mxu1 %v108_v16 }
 0x11b   :  { %1952 = vpow2.f32 %v492_v15 }
 0x11c   :  { %v449_v18 = vpop.xlane.xlu2 %448  ;;  %v446_v19 = vpop.xlane.xlu0 %445  ;;  %1954 = vpow2.f32 %v482_v17  ;;  %v114_v17 = vld [vmem:[%s3051_s7 + $0x38] sm:$0xff] }
 0x11d   :  { %v473_v20 = vsub.f32 %v273_v48, %v449_v18  ;;  %v464_v21 = vpop.xlane.xlu1 %463  ;;  %v472_v22 = vsub.f32 %v247_v49, %v446_v19  ;;  %v111_v18 = vld [vmem:[%s3051_s7 + $0x20] sm:$0xff]  ;;  %899 = vmatpush.msra.mxu3 %v114_v17 }
 0x11e   :  { %v478_v25 = vsub.f32 %v403_v52, %v464_v21 }
 0x11f   :  { %v2264_v23 = vpop.eup %1948  ;;  %v490_v24 = vmul.f32 1.442695, %v473_v20  ;;  %v488_v26 = vmul.f32 1.442695, %v472_v22 }
 0x120   :  { %v2266_v27 = vpop.eup %1950  ;;  %v513_v28 = vsel %vm119_vm0, %v2264_v23, 0.0  ;;  %v500_v32 = vmul.f32 1.442695, %v478_v25 }
 0x121   :  { %v2270_v29 = vpop.eup %1952  ;;  %1956 = vpow2.f32 %v490_v24  ;;  %v525_v30 = vsel %vm119_vm0, %v2266_v27, 0.0  ;;  %514 = vadd.xlane.f32.xlu1 %v513_v28 }
 0x122   :  { %526 = vadd.xlane.f32.xlu2 %v525_v30  ;;  %v522_v31 = vsel %vm119_vm0, %v2270_v29, 0.0  ;;  %1958 = vpow2.f32 %v488_v26  ;;  %v2276_v35 = vpop.eup %1954 }
 0x123   :  { %523 = vadd.xlane.f32.xlu0 %v522_v31  ;;  %1960 = vpow2.f32 %v500_v32  ;;  %v507_v44 = vsel %vm119_vm0, %v2276_v35, 0.0 }
 0x124   :  { %v461_v33 = vpop.xlane.xlu2 %460  ;;  %v467_v34 = vpop.xlane.xlu0 %466 }
 0x125   :  { %v477_v36 = vsub.f32 %v2244_v54, %v461_v33  ;;  %v479_v37 = vsub.f32 %v2246_v55, %v467_v34  ;;  %v458_v38 = vpop.xlane.xlu1 %457 }
 0x126   :  { %v476_v42 = vsub.f32 %v2248_v56, %v458_v38  ;;  %v107_v56 = vld [vmem:[%s3051_s7] sm:$0xff] }
 0x127   :  { %v2280_v39 = vpop.eup %1956  ;;  %v498_v40 = vmul.f32 1.442695, %v477_v36  ;;  %v502_v41 = vmul.f32 1.442695, %v479_v37  ;;  %738 = vmatpush.msrb.mxu0 %v107_v56 }
 0x128   :  { %v519_v43 = vsel %vm119_vm0, %v2280_v39, 0.0  ;;  %v2287_v45 = vpop.eup %1958  ;;  %v496_v47 = vmul.f32 1.442695, %v476_v42 }
 0x129   :  { %1962 = vpow2.f32 %v498_v40  ;;  %508 = vadd.xlane.f32.xlu1 %v507_v44  ;;  %v516_v46 = vsel %vm119_vm0, %v2287_v45, 0.0  ;;  %v2291_v48 = vpop.eup %1960  ;;  %830 = vmatpush.msra.mxu0 %v111_v18 }
 0x12a   :  { %1964 = vpow2.f32 %v502_v41  ;;  %520 = vadd.xlane.f32.xlu2 %v519_v43  ;;  %v534_v52 = vsel %vm119_vm0, %v2291_v48, 0.0 }
 0x12b   :  { %517 = vadd.xlane.f32.xlu0 %v516_v46  ;;  %1966 = vpow2.f32 %v496_v47 }
 0x12f   :  { %v2293_v49 = vpop.eup %1962 }
 0x130   :  { %v2295_v50 = vpop.eup %1964  ;;  %v531_v51 = vsel %vm119_vm0, %v2293_v49, 0.0 }
 0x131   :  { %v537_v53 = vsel %vm119_vm0, %v2295_v50, 0.0  ;;  %535 = vadd.xlane.f32.xlu1 %v534_v52  ;;  %v2303_v54 = vpop.eup %1966 }
 0x132   :  { %532 = vadd.xlane.f32.xlu2 %v531_v51  ;;  %v528_v55 = vsel %vm119_vm0, %v2303_v54, 0.0 }
 0x133   :  { %538 = vadd.xlane.f32.xlu0 %v537_v53 }
 0x139   :  { %529 = vadd.xlane.f32.xlu1 %v528_v55  ;;  %v112_v55 = vld [vmem:[%s3051_s7 + $0x28] sm:$0xff] }
 0x13a   :  { %853 = vmatpush.msra.mxu1 %v112_v55 }
 0x185   :  { %v506_v57 = vpop.xlane.xlu2 %505 }
 0x186   :  { %1968 = vrcp.f32 %v506_v57  ;;  %v551_v1 = vand.u32 2147483648, %v506_v57  ;;  %v549_v4 = vand.u32 2147483647, %v506_v57  ;;  %vm545_vm2 = vweird.f32 %v506_v57 }
 0x188   :  { %v552_v9 = vor.u32 1.1754944e-38, %v551_v1  ;;  %vm550_vm4 = vcmp.eq.f32.partialorder %v549_v4, 8.507059e+37 }
 0x18c   :  { %v2313_v59 = vpop.xlane.xlu0 %511  ;;  %v1969_v60 = vpop.eup %1968 }
 0x18d   :  { %1970 = vrcp.f32 %v2313_v59  ;;  %v541_v61 = vmul.f32 %v1969_v60, %v506_v57  ;;  %vm546_vm1 = vweird.f32 %v1969_v60  ;;  %v579_v28 = vand.u32 2147483647, %v2313_v59 }
 0x18e   :  { %vm547_vm3 = vmor %vm545_vm2, %vm546_vm1  ;;  %vm575_vm6 = vweird.f32 %v2313_v59 }
 0x18f   :  { %v542_v62 = vsub.f32 1.0, %v541_v61  ;;  %vm2383_vm8 = vcmp.eq.f32.partialorder %v579_v28, 8.507059e+37 }
 0x191   :  { %v543_v2 = vmul.f32 %v1969_v60, %v542_v62 }
 0x193   :  { %v2322_v5 = vpop.eup %1970  ;;  %v544_v6 = vadd.f32 %v1969_v60, %v543_v2 }
 0x194   :  { %v571_v7 = vmul.f32 %v2322_v5, %v2313_v59  ;;  %v2326_v8 = vpop.xlane.xlu1 %514  ;;  %vm576_vm5 = vweird.f32 %v2322_v5 }
 0x195   :  { %v2328_v10 = vpop.xlane.xlu2 %526  ;;  %1972 = vrcp.f32 %v2326_v8  ;;  %v548_v12 = vsel %vm547_vm3, %v1969_v60, %v544_v6  ;;  %v594_v37 = vand.u32 2147483647, %v2326_v8  ;;  %v596_v38 = vand.u32 2147483648, %v2326_v8  ;;  %vm2379_vm7 = vmor %vm575_vm6, %vm576_vm5  ;;  %v115_v60 = vld [vmem:[%s3051_s7 + $0x40] sm:$0xff] }
 0x196   :  { %v572_v13 = vsub.f32 1.0, %v571_v7  ;;  %1974 = vrcp.f32 %v2328_v10  ;;  %v2332_v14 = vpop.xlane.xlu0 %523  ;;  %v553_v15 = vsel %vm550_vm4, %v552_v9, %v548_v12  ;;  %v654_v52 = vand.u32 2147483647, %v2328_v10 }
 0x197   :  { %1976 = vrcp.f32 %v2332_v14  ;;  %v554_v20 = vmul.f32 %v2256_v3, %v553_v15  ;;  %v581_v3 = vand.u32 2147483648, %v2313_v59  ;;  %v639_v41 = vand.u32 2147483647, %v2332_v14 }
 0x198   :  { %v573_v19 = vmul.f32 %v2322_v5, %v572_v13  ;;  %v641_v42 = vand.u32 2147483648, %v2332_v14  ;;  %vm590_vm9 = vweird.f32 %v2326_v8  ;;  %v656_v58 = vand.u32 2147483648, %v2328_v10 }
 0x199   :  { %1890 = vmatmul.msk.f32.vlgmr.msrb.gmra.mxu0 %vm119_vm0, %v554_v20  ;;  %v582_v46 = vor.u32 1.1754944e-38, %v581_v3  ;;  %vm635_vm10 = vweird.f32 %v2332_v14  ;;  %vm2401_vm11 = vcmp.eq.f32.partialorder %v594_v37, 8.507059e+37  ;;  %vm2410_vm12 = vcmp.eq.f32.partialorder %v639_v41, 8.507059e+37 }
 0x19a   :  { %v574_v31 = vadd.f32 %v2322_v5, %v573_v19  ;;  %v642_v63 = vor.u32 1.1754944e-38, %v641_v42  ;;  %v597_v0 = vor.u32 1.1754944e-38, %v596_v38  ;;  %922 = vmatpush.msrb.mxu0 %v115_v60  ;;  %vm650_vm1 = vweird.f32 %v2328_v10 }
 0x19b   :  { %v2346_v21 = vpop.eup %1972  ;;  %vm2470_vm6 = vcmp.eq.f32.partialorder %v654_v52, 8.507059e+37 }
 0x19c   :  { %v2348_v22 = vpop.eup %1974  ;;  %v586_v24 = vmul.f32 %v2346_v21, %v2326_v8  ;;  %v2353_v25 = vpop.xlane.xlu1 %508  ;;  %v578_v51 = vsel %vm2379_vm7, %v2322_v5, %v574_v31  ;;  %vm591_vm13 = vweird.f32 %v2346_v21  ;;  %v117_v31 = vld [vmem:[%s3051_s7 + $0x50] sm:$0xff] }
 0x19d   :  { %v2355_v26 = vpop.eup %1976  ;;  %v2360_v30 = vpop.xlane.xlu2 %520  ;;  %1978 = vrcp.f32 %v2353_v25  ;;  %v646_v36 = vmul.f32 %v2348_v22, %v2328_v10  ;;  %v583_v2 = vsel %vm2383_vm8, %v582_v46, %v578_v51  ;;  %vm651_vm14 = vweird.f32 %v2348_v22  ;;  %vm2439_vm2 = vmor %vm590_vm9, %vm591_vm13 }
 0x19e   :  { %v631_v32 = vmul.f32 %v2355_v26, %v2332_v14  ;;  %v587_v33 = vsub.f32 1.0, %v586_v24  ;;  %1980 = vrcp.f32 %v2360_v30  ;;  %v2367_v34 = vpop.xlane.xlu0 %517  ;;  %vm636_vm15 = vweird.f32 %v2355_v26 }
 0x19f   :  { %1982 = vrcp.f32 %v2367_v34  ;;  %v647_v57 = vsub.f32 1.0, %v646_v36  ;;  %v609_v18 = vand.u32 2147483647, %v2367_v34  ;;  %v611_v24 = vand.u32 2147483648, %v2367_v34  ;;  %vm2454_vm4 = vmor %vm635_vm10, %vm636_vm15 }
 0x1a0   :  { %v632_v40 = vsub.f32 1.0, %v631_v32  ;;  %v588_v47 = vmul.f32 %v2346_v21, %v587_v33  ;;  %vm560_vm3 = vweird.f32 %v2353_v25  ;;  %v584_v3 = vmul.f32 %v2260_v11, %v583_v2  ;;  %vm2513_vm15 = vmor %vm650_vm1, %vm651_vm14 }
 0x1a1   :  { %v648_v15 = vmul.f32 %v2348_v22, %v647_v57  ;;  %v566_v14 = vand.u32 2147483648, %v2353_v25  ;;  %v626_v42 = vand.u32 2147483648, %v2360_v30  ;;  %vm605_vm8 = vweird.f32 %v2367_v34 }
 0x1a2   :  { %v633_v53 = vmul.f32 %v2355_v26, %v632_v40  ;;  %v589_v4 = vadd.f32 %v2346_v21, %v588_v47  ;;  %1892 = vmatmul.msk.f32.vlgmr.msrb.gmra.mxu2 %vm119_vm0, %v584_v3  ;;  %v564_v40 = vand.u32 2147483647, %v2353_v25  ;;  %vm2491_vm10 = vcmp.eq.f32.partialorder %v609_v18, 8.507059e+37 }
 0x1a3   :  { %v2397_v56 = vpop.eup %1978  ;;  %968 = vmatpush.msrb.mxu2 %v117_v31  ;;  %v567_v51 = vor.u32 1.1754944e-38, %v566_v14  ;;  %v627_v18 = vor.u32 1.1754944e-38, %v626_v42 }
 0x1a4   :  { %v2408_v61 = vpop.eup %1980  ;;  %v556_v1 = vmul.f32 %v2397_v56, %v2353_v25  ;;  %v2422_v6 = vpop.xlane.xlu1 %535  ;;  %v634_v9 = vadd.f32 %v2355_v26, %v633_v53  ;;  %v593_v32 = vsel %vm2439_vm2, %v2346_v21, %v589_v4  ;;  %vm561_vm5 = vweird.f32 %v2397_v56 }
 0x1a5   :  { %v616_v5 = vmul.f32 %v2408_v61, %v2360_v30  ;;  %v1983_v7 = vpop.eup %1982  ;;  %v2427_v13 = vpop.xlane.xlu2 %532  ;;  %v598_v41 = vsel %vm2401_vm11, %v597_v0, %v593_v32  ;;  %vm2485_vm9 = vmor %vm560_vm3, %vm561_vm5  ;;  %vm621_vm11 = vweird.f32 %v2408_v61  ;;  %v612_v25 = vor.u32 1.1754944e-38, %v611_v24 }
 0x1a6   :  { %v557_v12 = vsub.f32 1.0, %v556_v1  ;;  %v601_v17 = vmul.f32 %v1983_v7, %v2367_v34  ;;  %v2433_v19 = vpop.xlane.xlu0 %538  ;;  %1984 = vrcp.f32 %v2427_v13  ;;  %v638_v11 = vsel %vm2454_vm4, %v2355_v26, %v634_v9  ;;  %v1005_v9 = vld [vmem:[%s3078_s26 + $0x48] sm:$0xff] }
 0x1a7   :  { %v617_v16 = vsub.f32 1.0, %v616_v5  ;;  %1986 = vrcp.f32 %v2433_v19  ;;  %vm606_vm7 = vweird.f32 %v1983_v7  ;;  %v649_v26 = vadd.f32 %v2348_v22, %v648_v15  ;;  %v116_v15 = vld [vmem:[%s3051_s7 + $0x48] sm:$0xff] }
 0x1a8   :  { %v558_v28 = vmul.f32 %v2397_v56, %v557_v12  ;;  %v602_v33 = vsub.f32 1.0, %v601_v17  ;;  %v643_v44 = vsel %vm2410_vm12, %v642_v63, %v638_v11  ;;  %vm607_vm13 = vmor %vm605_vm8, %vm606_vm7  ;;  %1988 = vrcp.f32 %v2422_v6 }
 0x1a9   :  { %v618_v21 = vmul.f32 %v2408_v61, %v617_v16  ;;  %vm565_vm12 = vcmp.eq.f32.partialorder %v564_v40, 8.507059e+37  ;;  %v599_v57 = vmul.f32 %v2264_v23, %v598_v41  ;;  %v644_v1 = vmul.f32 %v2270_v29, %v643_v44 }
 0x1aa   :  { %v559_v36 = vadd.f32 %v2397_v56, %v558_v28  ;;  %v603_v38 = vmul.f32 %v1983_v7, %v602_v33  ;;  %v653_v2 = vsel %vm2513_vm15, %v2348_v22, %v649_v26  ;;  %vm620_vm2 = vweird.f32 %v2360_v30 }
 0x1ab   :  { %v619_v53 = vadd.f32 %v2408_v61, %v618_v21  ;;  %v624_v4 = vand.u32 2147483647, %v2360_v30  ;;  %1893 = vmatmul.msk.f32.vlgmr.msrb.gmra.mxu3 %vm119_vm0, %v599_v57  ;;  %vm2533_vm14 = vmor %vm620_vm2, %vm621_vm11  ;;  %v714_v22 = vand.u32 2147483647, %v2433_v19  ;;  %1896 = vmatmul.msk.f32.vlgmr.msra.gmra.mxu2 %vm119_vm0, %v644_v1  ;;  %v716_v24 = vand.u32 2147483648, %v2433_v19  ;;  %v1001_v1 = vld [vmem:[%s3078_s26 + $0x28] sm:$0xff] }
 0x1ac   :  { %v604_v46 = vadd.f32 %v1983_v7, %v603_v38  ;;  %v563_v34 = vsel %vm2485_vm9, %v2397_v56, %v559_v36  ;;  %v2500_v52 = vpop.eup %1984  ;;  %v2504_v59 = vpop.xlane.xlu1 %529  ;;  %v118_v56 = vld [vmem:[%s3051_s7 + $0x58] sm:$0xff]  ;;  %vm680_vm4 = vweird.f32 %v2427_v13  ;;  %vm710_vm5 = vweird.f32 %v2433_v19  ;;  %s3080_s7 = sld [smem:[#allocation6_spill]] }
 0x1ad   :  { %v1987_v60 = vpop.eup %1986  ;;  %v568_v0 = vsel %vm565_vm12, %v567_v51, %v563_v34  ;;  %v676_v23 = vmul.f32 %v2500_v52, %v2427_v13  ;;  %1990 = vrcp.f32 %v2504_v59  ;;  %991 = vmatpush.msrb.mxu3 %v118_v56  ;;  %v623_v30 = vsel %vm2533_vm14, %v2408_v61, %v619_v53 }
 0x1ae   :  { %v608_v55 = vsel %vm607_vm13, %v1983_v7, %v604_v46  ;;  %v706_v5 = vmul.f32 %v1987_v60, %v2433_v19  ;;  %v657_v7 = vor.u32 1.1754944e-38, %v656_v58  ;;  %v569_v58 = vmul.f32 %v2276_v35, %v568_v0  ;;  %v1989_v16 = vpop.eup %1988  ;;  %v1000_v0 = vld [vmem:[%s3078_s26 + $0x20] sm:$0xff] }
 0x1af   :  { %v613_v63 = vsel %vm2491_vm10, %v612_v25, %v608_v55  ;;  %v677_v29 = vsub.f32 1.0, %v676_v23  ;;  %vm625_vm1 = vcmp.eq.f32.partialorder %v624_v4, 8.507059e+37  ;;  %vm711_vm3 = vweird.f32 %v1987_v60  ;;  %v1003_v23 = vld [vmem:[%s3078_s26 + $0x38] sm:$0xff]  ;;  %v1004_v4 = vld [vmem:[%s3078_s26 + $0x40] sm:$0xff] }
 0x1b0   :  { %v707_v10 = vsub.f32 1.0, %v706_v5  ;;  %v614_v12 = vmul.f32 %v2287_v45, %v613_v63  ;;  %v658_v17 = vsel %vm2470_vm6, %v657_v7, %v653_v2  ;;  %v691_v35 = vmul.f32 %v1989_v16, %v2422_v6  ;;  %1891 = vmatmul.msk.f32.vlgmr.msrb.gmra.mxu1 %vm119_vm0, %v569_v58  ;;  %vm712_vm8 = vmor %vm710_vm5, %vm711_vm3  ;;  %v1002_v63 = vld [vmem:[%s3078_s26 + $0x30] sm:$0xff] }
 0x1b1   :  { %v678_v20 = vmul.f32 %v2500_v52, %v677_v29  ;;  %v628_v45 = vsel %vm625_vm1, %v627_v18, %v623_v30  ;;  %vm2557_vm6 = vcmp.eq.f32.partialorder %v714_v22, 8.507059e+37  ;;  %945 = vmatpush.msrb.mxu1 %v116_v15  ;;  %v699_v8 = vand.u32 2147483647, %v2422_v6  ;;  %v1006_v5 = vld [vmem:[%s3078_s26 + $0x50] sm:$0xff]  ;;  %v1007_v30 = vld [vmem:[%s3078_s26 + $0x58] sm:$0xff] }
 0x1b2   :  { %v708_v61 = vmul.f32 %v1987_v60, %v707_v10  ;;  %1894 = vmatmul.msk.f32.vlgmr.msra.gmra.mxu0 %vm119_vm0, %v614_v12  ;;  %v692_v31 = vsub.f32 1.0, %v691_v35  ;;  %v659_v32 = vmul.f32 %v2266_v27, %v658_v17  ;;  %vm681_vm7 = vweird.f32 %v2500_v52 }
 0x1b3   :  { %v1991_v33 = vpop.eup %1990  ;;  %v679_v11 = vadd.f32 %v2500_v52, %v678_v20  ;;  %v717_v36 = vor.u32 1.1754944e-38, %v716_v24  ;;  %v701_v19 = vand.u32 2147483648, %v2422_v6  ;;  %vm696_vm9 = vweird.f32 %v1989_v16  ;;  %vm2576_vm11 = vmor %vm680_vm4, %vm681_vm7 }
 0x1b4   :  { %v709_v3 = vadd.f32 %v1987_v60, %v708_v61  ;;  %v693_v37 = vmul.f32 %v1989_v16, %v692_v31  ;;  %v661_v21 = vmul.f32 %v1991_v33, %v2504_v59  ;;  %1897 = vmatmul.msk.f32.vlgmr.msra.gmra.mxu3 %vm119_vm0, %v659_v32  ;;  %v684_v38 = vand.u32 2147483647, %v2427_v13 }
 0x1b5   :  { %v686_v27 = vand.u32 2147483648, %v2427_v13  ;;  %vm695_vm10 = vweird.f32 %v2422_v6  ;;  %vm700_vm13 = vcmp.eq.f32.partialorder %v699_v8, 8.507059e+37  ;;  %v629_v43 = vmul.f32 %v2280_v39, %v628_v45 }
 0x1b6   :  { %v713_v14 = vsel %vm712_vm8, %v1987_v60, %v709_v3  ;;  %v694_v41 = vadd.f32 %v1989_v16, %v693_v37  ;;  %v662_v42 = vsub.f32 1.0, %v661_v21  ;;  %v683_v44 = vsel %vm2576_vm11, %v2500_v52, %v679_v11  ;;  %vm697_vm12 = vmor %vm695_vm10, %vm696_vm9  ;;  %v69_v11 = vld [vmem:[%s3079_s25] sm:$0xff] }
 0x1b7   :  { %v718_v40 = vsel %vm2557_vm6, %v717_v36, %v713_v14  ;;  %v702_v46 = vor.u32 1.1754944e-38, %v701_v19  ;;  %v669_v47 = vand.u32 2147483647, %v2504_v59  ;;  %v671_v6 = vand.u32 2147483648, %v2504_v59  ;;  %v1935_v19 = vld [vmem:[%s3080_s7] ss:$0 sm:$0xff] }
 0x1b8   :  { %v698_v13 = vsel %vm697_vm12, %v1989_v16, %v694_v41  ;;  %v663_v34 = vmul.f32 %v1991_v33, %v662_v42  ;;  %vm666_vm15 = vweird.f32 %v1991_v33  ;;  %1895 = vmatmul.msk.f32.vlgmr.msra.gmra.mxu1 %vm119_vm0, %v629_v43  ;;  %v719_v25 = vmul.f32 %v2295_v50, %v718_v40 }
 0x1b9   :  { %v687_v51 = vor.u32 1.1754944e-38, %v686_v27  ;;  %v703_v53 = vsel %vm700_vm13, %v702_v46, %v698_v13  ;;  %vm685_vm2 = vcmp.eq.f32.partialorder %v684_v38, 8.507059e+37  ;;  %vm665_vm14 = vweird.f32 %v2504_v59  ;;  %v998_v59 = vld [vmem:[%s3078_s26 + $0x10] sm:$0xff] }
 0x1ba   :  { %v664_v39 = vadd.f32 %v1991_v33, %v663_v34  ;;  %v704_v52 = vmul.f32 %v2291_v48, %v703_v53  ;;  %vm667_vm1 = vmor %vm665_vm14, %vm666_vm15  ;;  %v672_v57 = vor.u32 1.1754944e-38, %v671_v6  ;;  %vm670_vm3 = vcmp.eq.f32.partialorder %v669_v47, 8.507059e+37  ;;  %v996_v48 = vld [vmem:[%s3078_s26] sm:$0xff]  ;;  %1072 = vmatpush.msra.mxu2 %v998_v59  ;;  %v70_v47 = vld [vmem:[%s3079_s25 + $0x8] sm:$0xff] }
 0x1bb   :  { %v688_v55 = vsel %vm685_vm2, %v687_v51, %v683_v44  ;;  %1026 = vmatpush.msra.mxu0 %v996_v48  ;;  %v2018_v53 = vmov 48.0  }
 0x1bc   :  { %v668_v56 = vsel %vm667_vm1, %v1991_v33, %v664_v39  ;;  %1900 = vmatmul.msk.f32.vlgmr.msrb.gmra.mxu2 %vm119_vm0, %v704_v52  ;;  %1901 = vmatmul.msk.f32.vlgmr.msrb.gmra.mxu3 %vm119_vm0, %v719_v25  ;;  %v689_v62 = vmul.f32 %v2293_v49, %v688_v55  ;;  %v997_v49 = vld [vmem:[%s3078_s26 + $0x8] sm:$0xff]  ;;  %1992 = vrcp.f32 %v2018_v53 }
 0x1bd   :  { %v673_v60 = vsel %vm670_vm3, %v672_v57, %v668_v56  ;;  %1049 = vmatpush.msra.mxu1 %v997_v49  ;;  %1164 = vmatpush.msrb.mxu2 %v1002_v63 }
 0x1be   :  { %v674_v50 = vmul.f32 %v2303_v54, %v673_v60  ;;  %v999_v54 = vld [vmem:[%s3078_s26 + $0x18] sm:$0xff] }
 0x1bf   :  { %1095 = vmatpush.msra.mxu3 %v999_v54 }
 0x1c0   :  { %1898 = vmatmul.msk.f32.vlgmr.msrb.gmra.mxu0 %vm119_vm0, %v674_v50  ;;  %1899 = vmatmul.msk.f32.vlgmr.msrb.gmra.mxu1 %vm119_vm0, %v689_v62 }
 0x1c1   :  { %1118 = vmatpush.msrb.mxu0 %v1000_v0  ;;  %1187 = vmatpush.msrb.mxu3 %v1003_v23 }
 0x1c2   :  { %1141 = vmatpush.msrb.mxu1 %v1001_v1  ;;  %v1993_v39 = vpop.eup %1992 }
 0x1c3   :  { %v1312_v52 = vmul.f32 48.0, %v1993_v39  ;;  %vm1316_vm4 = vweird.f32 %v1993_v39 }
 0x1c5   :  { %v1313_v55 = vsub.f32 1.0, %v1312_v52 }
 0x1c7   :  { %v1314_v57 = vmul.f32 %v1993_v39, %v1313_v55 }
 0x1c9   :  { %v1315_v56 = vadd.f32 %v1993_v39, %v1314_v57  ;;  %v1609_v57 = vld [vmem:[%s3022_s10 + $0x68] sm:$0xff] }
 0x1cb   :  { %v2661_v60 = vsel %vm1316_vm4, %v1993_v39, %v1315_v56  ;;  %v1610_v39 = vld [vmem:[%s3022_s10 + $0x70] sm:$0xff] }
 0x216   :  { %v740_v2 = vpop.f32.mrf.mxu0 }
 0x217   :  { %1902 = vmatmul.msk.f32.vlgmr.msra.gmra.mxu0 %vm119_vm0, %v740_v2  ;;  %v1376_v2 = vld [vmem:[%s3020_s8 + $0x50] sm:$0xff] }
 0x218   :  { %1210 = vmatpush.msra.mxu0 %v1004_v4  ;;  %v1377_v4 = vld [vmem:[%s3020_s8 + $0x58] sm:$0xff] }
 0x225   :  { %v786_v7 = vpop.f32.mrf.mxu2 }
 0x226   :  { %1904 = vmatmul.msk.f32.vlgmr.msra.gmra.mxu2 %vm119_vm0, %v786_v7  ;;  %v1375_v7 = vld [vmem:[%s3020_s8 + $0x48] sm:$0xff] }
 0x227   :  { %1256 = vmatpush.msra.mxu2 %v1006_v5  ;;  %v1374_v5 = vld [vmem:[%s3020_s8 + $0x40] sm:$0xff] }
 0x22d   :  { %v763_v29 = vpop.f32.mrf.mxu1 }
 0x22e   :  { %1903 = vmatmul.msk.f32.vlgmr.msra.gmra.mxu1 %vm119_vm0, %v763_v29  ;;  %v809_v10 = vpop.f32.mrf.mxu3  ;;  %v878_v58 = vpop.f32.mrf.mxu2  ;;  %v1373_v29 = vld [vmem:[%s3020_s8 + $0x38] sm:$0xff] }
 0x22f   :  { %v832_v22 = vpop.f32.mrf.mxu0  ;;  %1233 = vmatpush.msra.mxu1 %v1005_v9  ;;  %1905 = vmatmul.msk.f32.vlgmr.msra.gmra.mxu3 %vm119_vm0, %v809_v10  ;;  %v1372_v9 = vld [vmem:[%s3020_s8 + $0x30] sm:$0xff] }
 0x230   :  { %1906 = vmatmul.msk.f32.vlgmr.msrb.gmra.mxu0 %vm119_vm0, %v832_v22  ;;  %1908 = vmatmul.msk.f32.vlgmr.msrb.gmra.mxu2 %vm119_vm0, %v878_v58  ;;  %v1370_v22 = vld [vmem:[%s3020_s8 + $0x20] sm:$0xff]  ;;  %v1368_v10 = vld [vmem:[%s3020_s8 + $0x10] sm:$0xff]  ;;  %v1369_v58 = vld [vmem:[%s3020_s8 + $0x18] sm:$0xff] }
 0x231   :  { %1279 = vmatpush.msra.mxu3 %v1007_v30  ;;  %1400 = vmatpush.msrb.mxu0 %v1376_v2  ;;  %v1371_v30 = vld [vmem:[%s3020_s8 + $0x28] sm:$0xff] }
 0x232   :  { %v1605_v2 = vld [vmem:[%s3022_s10 + $0x48] sm:$0xff] }
 0x233   :  { %1401 = vmatpush.msrb.mxu0 %v1374_v5 }
 0x235   :  { %v855_v12 = vpop.f32.mrf.mxu1  ;;  %1402 = vmatpush.msrb.mxu0 %v1372_v9  ;;  %v1603_v9 = vld [vmem:[%s3022_s10 + $0x38] sm:$0xff] }
 0x236   :  { %1907 = vmatmul.msk.f32.vlgmr.msrb.gmra.mxu1 %vm119_vm0, %v855_v12 }
 0x237   :  { %v901_v15 = vpop.f32.mrf.mxu3  ;;  %1423 = vmatpush.msrb.mxu1 %v1377_v4  ;;  %1403 = vmatpush.msrb.mxu0 %v1370_v22  ;;  %v1604_v4 = vld [vmem:[%s3022_s10 + $0x40] sm:$0xff] }
 0x238   :  { %1909 = vmatmul.msk.f32.vlgmr.msrb.gmra.mxu3 %vm119_vm0, %v901_v15  ;;  %v1366_v15 = vld [vmem:[%s3020_s8] sm:$0xff] }
 0x239   :  { %1424 = vmatpush.msrb.mxu1 %v1375_v7  ;;  %1404 = vmatpush.msrb.mxu0 %v1368_v10 }
 0x23b   :  { %1425 = vmatpush.msrb.mxu1 %v1373_v29  ;;  %1405 = vmatpush.msrb.mxu0 %v1366_v15  ;;  %v1619_v29 = vld [vmem:[%s3022_s10 + $0xb8] sm:$0xff] }
 0x23c   :  { %1658 = vmatpush.msrb.mxu3 %v1619_v29 }
 0x23d   :  { %v924_v16 = vpop.f32.mrf.mxu0  ;;  %v947_v17 = vpop.f32.mrf.mxu1  ;;  %1426 = vmatpush.msrb.mxu1 %v1371_v30 }
 0x23e   :  { %1910 = vmatmul.msk.f32.vlgmr.msra.gmra.mxu0 %vm119_vm0, %v924_v16  ;;  %1911 = vmatmul.msk.f32.vlgmr.msra.gmra.mxu1 %vm119_vm0, %v947_v17  ;;  %v1367_v16 = vld [vmem:[%s3020_s8 + $0x8] sm:$0xff] }
 0x23f   :  { %v970_v18 = vpop.f32.mrf.mxu2  ;;  %v993_v20 = vpop.f32.mrf.mxu3  ;;  %1427 = vmatpush.msrb.mxu1 %v1369_v58  ;;  %v1602_v58 = vld [vmem:[%s3022_s10 + $0x30] sm:$0xff] }
 0x240   :  { %1912 = vmatmul.msk.f32.vlgmr.msra.gmra.mxu2 %vm119_vm0, %v970_v18  ;;  %1913 = vmatmul.msk.f32.vlgmr.msra.gmra.mxu3 %vm119_vm0, %v993_v20  ;;  %vm1304_vm0 = vcmask 392192  }
 0x241   :  { %1428 = vmatpush.msrb.mxu1 %v1367_v16 }
 0x294   :  { %v1028_v24 = vpop.f32.mrf.mxu0 }
 0x2a9   :  { %v1074_v45 = vpop.f32.mrf.mxu2 }
 0x2ab   :  { %v1051_v61 = vpop.f32.mrf.mxu1 }
 0x2ac   :  { %v1284_v35 = vadd.f32 %v1051_v61, %v1028_v24 }
 0x2ad   :  { %v1120_v31 = vpop.f32.mrf.mxu0 }
 0x2ae   :  { %v1286_v28 = vadd.f32 %v1284_v35, %v1074_v45 }
 0x2b2   :  { %v1097_v3 = vpop.f32.mrf.mxu3 }
 0x2b3   :  { %v1288_v8 = vadd.f32 %v1286_v28, %v1097_v3  ;;  %v1143_v32 = vpop.f32.mrf.mxu1  ;;  %v1166_v37 = vpop.f32.mrf.mxu2 }
 0x2b5   :  { %v1290_v33 = vadd.f32 %v1288_v8, %v1120_v31 }
 0x2b7   :  { %v1292_v36 = vadd.f32 %v1290_v33, %v1143_v32  ;;  %v1936_v32 = vld [vmem:[%s3081_s3] ss:$0 sm:$0xff] }
 0x2b9   :  { %v1294_v14 = vadd.f32 %v1292_v36, %v69_v11  ;;  %v1937_v36 = vld [vmem:[%s3082_s0] ss:$0 sm:$0xff] }
 0x2bb   :  { %v1189_v21 = vpop.f32.mrf.mxu3  ;;  %v2650_v38 = vadd.f32 %v1935_v19, %v1294_v14  ;;  %v1212_v40 = vpop.f32.mrf.mxu0 }
 0x2bc   :  { %v1285_v27 = vadd.f32 %v1189_v21, %v1166_v37  ;;  %v1235_v42 = vpop.f32.mrf.mxu1 }
 0x2bd   :  { %v1305_v26 = vsel %vm1304_vm0, %v2650_v38, 0.0 }
 0x2be   :  { %v1287_v41 = vadd.f32 %v1285_v27, %v1212_v40  ;;  %1306 = vadd.xlane.f32.xlu0 %v1305_v26 }
 0x2c0   :  { %v1289_v43 = vadd.f32 %v1287_v41, %v1235_v42 }
 0x2c3   :  { %v1258_v44 = vpop.f32.mrf.mxu2  ;;  %v1281_v6 = vpop.f32.mrf.mxu3 }
 0x2c4   :  { %v1291_v46 = vadd.f32 %v1289_v43, %v1258_v44 }
 0x2c6   :  { %v1293_v13 = vadd.f32 %v1291_v46, %v1281_v6 }
 0x2c8   :  { %v1295_v34 = vadd.f32 %v1293_v13, %v70_v47  ;;  %v1378_v47 = vld [vmem:[%s3021_s9] sm:$0x3] }
 0x2c9   :  { %v1380_v6 = vperm.slane %v1378_v47, 0  ;;  %v1381_v13 = vperm.slane %v1378_v47, 1 }
 0x2ca   :  { %v2657_v25 = vadd.f32 %v1935_v19, %v1295_v34  ;;  %v1611_v34 = vld [vmem:[%s3022_s10 + $0x78] sm:$0xff] }
 0x2cb   :  { %1627 = vmatpush.msrb.mxu2 %v1611_v34  ;;  %v1597_v34 = vld [vmem:[%s3022_s10 + $0x8] sm:$0xff] }
 0x2cc   :  { %v1308_v51 = vsel %vm1304_vm0, %v2657_v25, 0.0 }
 0x2cd   :  { %1309 = vadd.xlane.f32.xlu1 %v1308_v51  ;;  %1628 = vmatpush.msrb.mxu2 %v1610_v39 }
 0x2cf   :  { %1629 = vmatpush.msrb.mxu2 %v1609_v57  ;;  %v1613_v57 = vld [vmem:[%s3022_s10 + $0x88] sm:$0xff] }
 0x331   :  { %v1307_v50 = vpop.xlane.xlu0 %1306 }
 0x332   :  { %v1318_v62 = vmul.f32 %v2661_v60, %v1307_v50 }
 0x334   :  { %v1320_v48 = vsub.f32 %v2650_v38, %v1318_v62  ;;  %v1608_v62 = vld [vmem:[%s3022_s10 + $0x60] sm:$0xff] }
 0x335   :  { %1630 = vmatpush.msrb.mxu2 %v1608_v62 }
 0x336   :  { %v1322_v59 = vmul.f32 %v1320_v48, %v1320_v48 }
 0x338   :  { %v1324_v54 = vsel %vm1304_vm0, %v1322_v59, 0.0 }
 0x339   :  { %1325 = vadd.xlane.f32.xlu2 %v1324_v54  ;;  %v1607_v54 = vld [vmem:[%s3022_s10 + $0x58] sm:$0xff] }
 0x33a   :  { %1631 = vmatpush.msrb.mxu2 %v1607_v54  ;;  %v1612_v54 = vld [vmem:[%s3022_s10 + $0x80] sm:$0xff] }
 0x340   :  { %v1310_v49 = vpop.xlane.xlu1 %1309 }
 0x341   :  { %v1319_v63 = vmul.f32 %v2661_v60, %v1310_v49 }
 0x343   :  { %v2668_v0 = vsub.f32 %v2657_v25, %v1319_v63 }
 0x345   :  { %v1323_v23 = vmul.f32 %v2668_v0, %v2668_v0 }
 0x347   :  { %v1327_v1 = vsel %vm1304_vm0, %v1323_v23, 0.0 }
 0x348   :  { %1328 = vadd.xlane.f32.xlu0 %v1327_v1 }
 0x3ac   :  { %v1326_v12 = vpop.xlane.xlu2 %1325 }
 0x3ad   :  { %v1330_v17 = vmul.f32 %v1326_v12, %v2661_v60  ;;  %v1618_v12 = vld [vmem:[%s3022_s10 + $0xb0] sm:$0xff] }
 0x3ae   :  { %1659 = vmatpush.msrb.mxu3 %v1618_v12 }
 0x3af   :  { %v1332_v18 = vadd.f32 1e-05, %v1330_v17 }
 0x3b1   :  { %1994 = vrsqrt.f32 %v1332_v18  ;;  %vm1340_vm6 = vweird.f32 %v1332_v18 }
 0x3b7   :  { %v1995_v20 = vpop.eup %1994 }
 0x3b8   :  { %v1335_v24 = vmul.f32 %v1995_v20, %v1332_v18  ;;  %vm1341_vm5 = vweird.f32 %v1995_v20 }
 0x3b9   :  { %vm1342_vm7 = vmor %vm1340_vm6, %vm1341_vm5 }
 0x3ba   :  { %v1336_v61 = vmul.f32 %v1995_v20, %v1335_v24  ;;  %v1601_v24 = vld [vmem:[%s3022_s10 + $0x28] sm:$0xff] }
 0x3bb   :  { %v1329_v35 = vpop.xlane.xlu0 %1328 }
 0x3bc   :  { %v1331_v45 = vmul.f32 %v1329_v35, %v2661_v60  ;;  %v1337_v28 = vmul.f32 0.5, %v1336_v61  ;;  %v1617_v61 = vld [vmem:[%s3022_s10 + $0xa8] sm:$0xff] }
 0x3bd   :  { %1660 = vmatpush.msrb.mxu3 %v1617_v61 }
 0x3be   :  { %v1333_v3 = vadd.f32 1e-05, %v1331_v45  ;;  %v1338_v31 = vsub.f32 1.5, %v1337_v28 }
 0x3c0   :  { %1996 = vrsqrt.f32 %v1333_v3  ;;  %v1339_v8 = vmul.f32 %v1995_v20, %v1338_v31  ;;  %vm1350_vm9 = vweird.f32 %v1333_v3 }
 0x3c2   :  { %v1343_v33 = vsel %vm1342_vm7, %v1995_v20, %v1339_v8 }
 0x3c3   :  { %v1354_v11 = vmul.f32 %v1343_v33, %v1320_v48  ;;  %v1616_v33 = vld [vmem:[%s3022_s10 + $0xa0] sm:$0xff] }
 0x3c4   :  { %1661 = vmatpush.msrb.mxu3 %v1616_v33 }
 0x3c5   :  { %v1359_v14 = vmul.f32 %v1936_v32, %v1354_v11 }
 0x3c6   :  { %v1997_v19 = vpop.eup %1996 }
 0x3c7   :  { %v1345_v37 = vmul.f32 %v1997_v19, %v1333_v3  ;;  %v1364_v21 = vadd.f32 %v1937_v36, %v1359_v14  ;;  %vm1351_vm8 = vweird.f32 %v1997_v19 }
 0x3c8   :  { %vm1352_vm10 = vmor %vm1350_vm9, %vm1351_vm8 }
 0x3c9   :  { %v1346_v27 = vmul.f32 %v1997_v19, %v1345_v37  ;;  %1914 = vmatmul.msk.f32.vlgmr.msrb.gmra.mxu0 %vm1304_vm0, %v1364_v21  ;;  %1916 = vmatmul.msk.f32.vlgmr.msrb.gmra.mxu1 %vm1304_vm0, %v1364_v21 }
 0x3cb   :  { %v1347_v40 = vmul.f32 0.5, %v1346_v27 }
 0x3cd   :  { %v1348_v26 = vsub.f32 1.5, %v1347_v40  ;;  %v1599_v40 = vld [vmem:[%s3022_s10 + $0x18] sm:$0xff] }
 0x3cf   :  { %v1349_v41 = vmul.f32 %v1997_v19, %v1348_v26  ;;  %v1615_v26 = vld [vmem:[%s3022_s10 + $0x98] sm:$0xff] }
 0x3d0   :  { %1662 = vmatpush.msrb.mxu3 %v1615_v26 }
 0x3d1   :  { %v1353_v42 = vsel %vm1352_vm10, %v1997_v19, %v1349_v41 }
 0x3d2   :  { %v1355_v43 = vmul.f32 %v1353_v42, %v2668_v0  ;;  %v1606_v0 = vld [vmem:[%s3022_s10 + $0x50] sm:$0xff] }
 0x3d3   :  { %1632 = vmatpush.msrb.mxu2 %v1606_v0 }
 0x3d4   :  { %v1360_v44 = vmul.f32 %v1936_v32, %v1355_v43  ;;  %v1600_v32 = vld [vmem:[%s3022_s10 + $0x20] sm:$0xff] }
 0x3d5   :  { %1633 = vmatpush.msrb.mxu2 %v1605_v2 }
 0x3d6   :  { %v1365_v46 = vadd.f32 %v1937_v36, %v1360_v44 }
 0x3d7   :  { %1634 = vmatpush.msrb.mxu2 %v1604_v4 }
 0x3d8   :  { %1915 = vmatmul.msk.f32.gmra.mxu0 %vm1304_vm0, %v1365_v46  ;;  %1917 = vmatmul.msk.f32.gmra.mxu1 %vm1304_vm0, %v1365_v46 }
 0x3d9   :  { %1635 = vmatpush.msrb.mxu2 %v1603_v9 }
 0x3db   :  { %1636 = vmatpush.msrb.mxu2 %v1602_v58 }
 0x3dd   :  { %1637 = vmatpush.msrb.mxu2 %v1601_v24 }
 0x3df   :  { %1638 = vmatpush.msrb.mxu2 %v1600_v32 }
 0x3e1   :  { %1639 = vmatpush.msrb.mxu2 %v1599_v40 }
 0x446   :  { %v1407_v51 = vpop.f32.mrf.mxu0  ;;  %v1430_v53 = vpop.f32.mrf.mxu1 }
 0x447   :  { %v2731_v52 = vadd.f32 %v1407_v51, %v1380_v6  ;;  %v2733_v55 = vadd.f32 %v1430_v53, %v1381_v13 }
 0x449   :  { %v2739_v56 = vmul.f32 0.70710677, %v2731_v52  ;;  %v2742_v50 = vmul.f32 0.70710677, %v2733_v55 }
 0x44b   :  { %v1444_v48 = vand.u32 2147483647, %v2739_v56  ;;  %v2749_v59 = vand.u32 2147483647, %v2742_v50 }
 0x44d   :  { %v1448_v49 = vmul.f32 0.3275911, %v1444_v48  ;;  %v1449_v63 = vmul.f32 0.3275911, %v2749_v59  ;;  %v1552_v10 = vsub.f32 0.0, %v1444_v48  ;;  %v1553_v31 = vsub.f32 0.0, %v2749_v59 }
 0x44f   :  { %v2758_v23 = vadd.f32 1.0, %v1448_v49  ;;  %v2760_v1 = vadd.f32 1.0, %v1449_v63  ;;  %v1556_v3 = vmul.f32 %v1552_v10, %v1444_v48  ;;  %v1557_v46 = vmul.f32 %v1553_v31, %v2749_v59  ;;  %v1596_v59 = vld [vmem:[%s3022_s10] sm:$0xff] }
 0x451   :  { %1998 = vrcp.f32 %v2758_v23  ;;  %v1465_v11 = vand.u32 2147483647, %v2758_v23  ;;  %v1467_v36 = vand.u32 2147483648, %v2758_v23  ;;  %v1482_v21 = vand.u32 2147483648, %v2760_v1 }
 0x452   :  { %2000 = vrcp.f32 %v2760_v1  ;;  %v1480_v42 = vand.u32 2147483647, %v2760_v1  ;;  %vm1461_vm12 = vweird.f32 %v2758_v23  ;;  %vm1476_vm2 = vweird.f32 %v2760_v1 }
 0x453   :  { %v1468_v53 = vor.u32 1.1754944e-38, %v1467_v36  ;;  %vm1466_vm14 = vcmp.eq.f32.partialorder %v1465_v11, 8.507059e+37  ;;  %v1483_v48 = vor.u32 1.1754944e-38, %v1482_v21 }
 0x454   :  { %vm1481_vm3 = vcmp.eq.f32.partialorder %v1480_v42, 8.507059e+37 }
 0x455   :  { %v1410_v5 = vpop.f32.mrf.mxu0  ;;  %v1433_v7 = vpop.f32.mrf.mxu1 }
 0x456   :  { %v2776_v22 = vadd.f32 %v1410_v5, %v1380_v6  ;;  %v2778_v30 = vadd.f32 %v1433_v7, %v1381_v13  ;;  %v1598_v6 = vld [vmem:[%s3022_s10 + $0x10] sm:$0xff]  ;;  %v1562_v5 = vmul.f32 1.442695, %v1557_v46 }
 0x457   :  { %v1999_v15 = vpop.eup %1998  ;;  %v1614_v13 = vld [vmem:[%s3022_s10 + $0x90] sm:$0xff]  ;;  %1640 = vmatpush.msrb.mxu2 %v1598_v6 }
 0x458   :  { %v2787_v16 = vmul.f32 0.70710677, %v2776_v22  ;;  %v2790_v17 = vmul.f32 0.70710677, %v2778_v30  ;;  %v2001_v18 = vpop.eup %2000  ;;  %v1457_v20 = vmul.f32 %v1999_v15, %v2758_v23  ;;  %vm1462_vm11 = vweird.f32 %v1999_v15  ;;  %1663 = vmatpush.msrb.mxu3 %v1614_v13 }
 0x459   :  { %v1472_v35 = vmul.f32 %v2001_v18, %v2760_v1  ;;  %vm1477_vm13 = vweird.f32 %v2001_v18  ;;  %vm2841_vm15 = vmor %vm1461_vm12, %vm1462_vm11  ;;  %1641 = vmatpush.msrb.mxu2 %v1597_v34  ;;  %v1560_v1 = vmul.f32 1.442695, %v1556_v3  ;;  %vm1577_vm12 = vcmp.ge.f32.partialorder %v2742_v50, 0.0 }
 0x45a   :  { %v2801_v45 = vand.u32 2147483647, %v2787_v16  ;;  %v1458_v28 = vsub.f32 1.0, %v1457_v20  ;;  %v2805_v8 = vand.u32 2147483647, %v2790_v17  ;;  %vm1478_vm1 = vmor %vm1476_vm2, %vm1477_vm13  ;;  %1664 = vmatpush.msrb.mxu3 %v1613_v57  ;;  %vm1576_vm13 = vcmp.ge.f32.partialorder %v2739_v56, 0.0 }
 0x45b   :  { %v1473_v19 = vsub.f32 1.0, %v1472_v35  ;;  %1642 = vmatpush.msrb.mxu2 %v1596_v59  ;;  %vm1578_vm2 = vcmp.ge.f32.partialorder %v2787_v16, 0.0  ;;  %v1938_v16 = vld [vmem:[%s3023_s11] ss:$0 sm:$0xff] }
 0x45c   :  { %v1450_v14 = vmul.f32 0.3275911, %v2801_v45  ;;  %v1459_v37 = vmul.f32 %v1999_v15, %v1458_v28  ;;  %v1451_v27 = vmul.f32 0.3275911, %v2805_v8  ;;  %1665 = vmatpush.msrb.mxu3 %v1612_v54  ;;  %v1555_v51 = vsub.f32 0.0, %v2805_v8 }
 0x45d   :  { %v1474_v41 = vmul.f32 %v2001_v18, %v1473_v19 }
 0x45e   :  { %v2825_v43 = vadd.f32 1.0, %v1450_v14  ;;  %v1460_v44 = vadd.f32 %v1999_v15, %v1459_v37  ;;  %v2829_v47 = vadd.f32 1.0, %v1451_v27  ;;  %v1554_v14 = vsub.f32 0.0, %v2801_v45 }
 0x45f   :  { %v1475_v39 = vadd.f32 %v2001_v18, %v1474_v41 }
 0x460   :  { %2002 = vrcp.f32 %v2825_v43  ;;  %v1464_v62 = vsel %vm2841_vm15, %v1999_v15, %v1460_v44  ;;  %v1512_v35 = vand.u32 2147483648, %v2829_v47  ;;  %v1497_v28 = vand.u32 2147483648, %v2825_v43 }
 0x461   :  { %2004 = vrcp.f32 %v2829_v47  ;;  %v1469_v49 = vsel %vm1466_vm14, %v1468_v53, %v1464_v62  ;;  %v1479_v63 = vsel %vm1478_vm1, %v2001_v18, %v1475_v39  ;;  %v1495_v32 = vand.u32 2147483647, %v2825_v43 }
 0x462   :  { %v1516_v0 = vmul.f32 1.0614054, %v1469_v49  ;;  %v1484_v23 = vsel %vm1481_vm3, %v1483_v48, %v1479_v63  ;;  %2006 = vpow2.f32 %v1560_v1  ;;  %v1510_v36 = vand.u32 2147483647, %v2829_v47 }
 0x463   :  { %v1517_v2 = vmul.f32 1.0614054, %v1484_v23  ;;  %2008 = vpow2.f32 %v1562_v5  ;;  %vm1491_vm6 = vweird.f32 %v2825_v43  ;;  %vm1506_vm7 = vweird.f32 %v2829_v47 }
 0x464   :  { %v1918_v4 = vadd.f32 -1.4531521, %v1516_v0  ;;  %v1498_v40 = vor.u32 1.1754944e-38, %v1497_v28  ;;  %v1513_v44 = vor.u32 1.1754944e-38, %v1512_v35  ;;  %vm1496_vm10 = vcmp.eq.f32.partialorder %v1495_v32, 8.507059e+37 }
 0x465   :  { %v1919_v9 = vadd.f32 -1.4531521, %v1517_v2  ;;  %vm1511_vm11 = vcmp.eq.f32.partialorder %v1510_v36, 8.507059e+37  ;;  %v1558_v54 = vmul.f32 %v1554_v14, %v2801_v45  ;;  %v1559_v1 = vmul.f32 %v1555_v51, %v2805_v8 }
 0x466   :  { %v2003_v7 = vpop.eup %2002  ;;  %v1524_v10 = vmul.f32 %v1918_v4, %v1469_v49  ;;  %v1436_v45 = vmul.f32 0.5, %v2731_v52  ;;  %v1437_v28 = vmul.f32 0.5, %v2733_v55  ;;  %vm1620_vm15 = vcmask 523264  }
 0x467   :  { %v2005_v29 = vpop.eup %2004  ;;  %v1487_v58 = vmul.f32 %v2003_v7, %v2825_v43  ;;  %v1525_v12 = vmul.f32 %v1919_v9, %v1484_v23  ;;  %vm1492_vm4 = vweird.f32 %v2003_v7  ;;  %vm1579_vm14 = vcmp.ge.f32.partialorder %v2790_v17, 0.0 }
 0x468   :  { %v1502_v15 = vmul.f32 %v2005_v29, %v2829_v47  ;;  %v1528_v18 = vadd.f32 1.4214138, %v1524_v10  ;;  %vm1507_vm5 = vweird.f32 %v2005_v29  ;;  %v2007_v21 = vpop.eup %2006  ;;  %vm1493_vm8 = vmor %vm1491_vm6, %vm1492_vm4  ;;  %v1564_v10 = vmul.f32 1.442695, %v1558_v54 }
 0x469   :  { %v1488_v20 = vsub.f32 1.0, %v1487_v58  ;;  %v1529_v24 = vadd.f32 1.4214138, %v1525_v12  ;;  %v2009_v41 = vpop.eup %2008  ;;  %vm1508_vm9 = vmor %vm1506_vm7, %vm1507_vm5 }
 0x46a   :  { %v1503_v61 = vsub.f32 1.0, %v1502_v15  ;;  %v1532_v3 = vmul.f32 %v1528_v18, %v1469_v49  ;;  %v1566_v15 = vmul.f32 1.442695, %v1559_v1  ;;  %2010 = vpow2.f32 %v1564_v10  ;;  %v1785_v10 = vld [vmem:[%s3029_s16 + $0x28] sm:$0xff] }
 0x46b   :  { %v1489_v31 = vmul.f32 %v2003_v7, %v1488_v20  ;;  %v1533_v33 = vmul.f32 %v1529_v24, %v1484_v23  ;;  %1800 = vmatpush.msra.mxu1 %v1785_v10 }
 0x46c   :  { %v1504_v11 = vmul.f32 %v2005_v29, %v1503_v61  ;;  %v1922_v19 = vadd.f32 -0.28449672, %v1532_v3  ;;  %2012 = vpow2.f32 %v1566_v15  ;;  %v1784_v15 = vld [vmem:[%s3029_s16 + $0x20] sm:$0xff] }
 0x46d   :  { %v1490_v37 = vadd.f32 %v2003_v7, %v1489_v31  ;;  %v1923_v27 = vadd.f32 -0.28449672, %v1533_v33  ;;  %1801 = vmatpush.msra.mxu1 %v1784_v15 }
 0x46e   :  { %v1505_v26 = vadd.f32 %v2005_v29, %v1504_v11  ;;  %v1540_v42 = vmul.f32 %v1922_v19, %v1469_v49 }
 0x46f   :  { %v1494_v46 = vsel %vm1493_vm8, %v2003_v7, %v1490_v37  ;;  %v1541_v6 = vmul.f32 %v1923_v27, %v1484_v23 }
 0x470   :  { %v1499_v13 = vsel %vm1496_vm10, %v1498_v40, %v1494_v46  ;;  %v1509_v34 = vsel %vm1508_vm9, %v2005_v29, %v1505_v26  ;;  %v1544_v43 = vadd.f32 0.2548296, %v1540_v42  ;;  %v2011_v36 = vpop.eup %2010  ;;  %v1438_v42 = vmul.f32 0.5, %v2776_v22 }
 0x471   :  { %v1518_v53 = vmul.f32 1.0614054, %v1499_v13  ;;  %v1514_v39 = vsel %vm1511_vm11, %v1513_v44, %v1509_v34  ;;  %v1545_v57 = vadd.f32 0.2548296, %v1541_v6  ;;  %v1439_v6 = vmul.f32 0.5, %v2778_v30 }
 0x472   :  { %v1519_v47 = vmul.f32 1.0614054, %v1514_v39  ;;  %v1548_v62 = vmul.f32 %v1544_v43, %v1469_v49  ;;  %v2013_v14 = vpop.eup %2012 }
 0x473   :  { %v1920_v48 = vadd.f32 -1.4531521, %v1518_v53  ;;  %v1549_v59 = vmul.f32 %v1545_v57, %v1484_v23 }
 0x474   :  { %v1921_v63 = vadd.f32 -1.4531521, %v1519_v47  ;;  %v1568_v0 = vmul.f32 %v2007_v21, %v1548_v62 }
 0x475   :  { %v1526_v2 = vmul.f32 %v1920_v48, %v1499_v13  ;;  %v1569_v4 = vmul.f32 %v2009_v41, %v1549_v59 }
 0x476   :  { %v1527_v5 = vmul.f32 %v1921_v63, %v1514_v39  ;;  %v1572_v7 = vsub.f32 1.0, %v1568_v0 }
 0x477   :  { %v1530_v9 = vadd.f32 1.4214138, %v1526_v2  ;;  %v1573_v29 = vsub.f32 1.0, %v1569_v4 }
 0x478   :  { %v1531_v58 = vadd.f32 1.4214138, %v1527_v5  ;;  %v1580_v12 = vsub.f32 0.0, %v1572_v7 }
 0x479   :  { %v1534_v18 = vmul.f32 %v1530_v9, %v1499_v13  ;;  %v1581_v49 = vsub.f32 0.0, %v1573_v29 }
 0x47a   :  { %v1535_v23 = vmul.f32 %v1531_v58, %v1514_v39  ;;  %v1584_v20 = vsel %vm1576_vm13, %v1572_v7, %v1580_v12  ;;  %v1820_v58 = vld [vmem:[%s3030_s18 + $0x28] sm:$0xff]  ;;  %v1743_v12 = vld [vmem:[%s3028_s14 + $0x20] sm:$0xff] }
 0x47b   :  { %v1924_v8 = vadd.f32 -0.28449672, %v1534_v18  ;;  %v1588_v24 = vadd.f32 1.0, %v1584_v20  ;;  %v1585_v61 = vsel %vm1577_vm12, %v1573_v29, %v1581_v49  ;;  %v1744_v29 = vld [vmem:[%s3028_s14 + $0x28] sm:$0xff]  ;;  %1835 = vmatpush.msra.mxu3 %v1820_v58  ;;  %v1819_v18 = vld [vmem:[%s3030_s18 + $0x20] sm:$0xff]  ;;  %v1742_v49 = vld [vmem:[%s3028_s14 + $0x18] sm:$0xff] }
 0x47c   :  { %v1925_v35 = vadd.f32 -0.28449672, %v1535_v23  ;;  %v1589_v3 = vadd.f32 1.0, %v1585_v61  ;;  %1765 = vmatpush.msra.mxu0 %v1744_v29  ;;  %v1783_v23 = vld [vmem:[%s3029_s16 + $0x18] sm:$0xff]  ;;  %v1741_v20 = vld [vmem:[%s3028_s14 + $0x10] sm:$0xff]  ;;  %v1740_v61 = vld [vmem:[%s3028_s14 + $0x8] sm:$0xff] }
 0x47d   :  { %v1542_v31 = vmul.f32 %v1924_v8, %v1499_v13  ;;  %v1592_v32 = vmul.f32 %v1588_v24, %v1436_v45  ;;  %1836 = vmatpush.msra.mxu3 %v1819_v18  ;;  %v1818_v45 = vld [vmem:[%s3030_s18 + $0x18] sm:$0xff]  ;;  %1802 = vmatpush.msra.mxu1 %v1783_v23  ;;  %v1782_v8 = vld [vmem:[%s3029_s16 + $0x10] sm:$0xff] }
 0x47e   :  { %v1543_v56 = vmul.f32 %v1925_v35, %v1514_v39  ;;  %v1593_v33 = vmul.f32 %v1589_v3, %v1437_v28  ;;  %1766 = vmatpush.msra.mxu0 %v1743_v12  ;;  %v1817_v24 = vld [vmem:[%s3030_s18 + $0x10] sm:$0xff]  ;;  %v1781_v35 = vld [vmem:[%s3029_s16 + $0x8] sm:$0xff]  ;;  %v1739_v3 = vld [vmem:[%s3028_s14] sm:$0xff] }
 0x47f   :  { %v1546_v11 = vadd.f32 0.2548296, %v1542_v31  ;;  %1643 = vmatmul.f32.vlgmr.msrb.gmra.mxu2 %v1592_v32  ;;  %1837 = vmatpush.msra.mxu3 %v1818_v45  ;;  %v1816_v28 = vld [vmem:[%s3030_s18 + $0x8] sm:$0xff]  ;;  %v1780_v31 = vld [vmem:[%s3029_s16] sm:$0xff] }
 0x480   :  { %v1547_v52 = vadd.f32 0.2548296, %v1543_v56  ;;  %1926 = vmatmul.msk.f32.vlgmr.msrb.gmra.mxu3 %vm1620_vm15, %v1593_v33  ;;  %1767 = vmatpush.msra.mxu0 %v1742_v49  ;;  %v1815_v32 = vld [vmem:[%s3030_s18] sm:$0xff] }
 0x481   :  { %v1550_v50 = vmul.f32 %v1546_v11, %v1499_v13  ;;  %1803 = vmatpush.msra.mxu1 %v1782_v8  ;;  %1838 = vmatpush.msra.mxu3 %v1817_v24 }
 0x482   :  { %v1551_v19 = vmul.f32 %v1547_v52, %v1514_v39  ;;  %1768 = vmatpush.msra.mxu0 %v1741_v20 }
 0x483   :  { %v1570_v37 = vmul.f32 %v2011_v36, %v1550_v50  ;;  %1804 = vmatpush.msra.mxu1 %v1781_v35  ;;  %1839 = vmatpush.msra.mxu3 %v1816_v28 }
 0x484   :  { %v1571_v21 = vmul.f32 %v2013_v14, %v1551_v19  ;;  %1769 = vmatpush.msra.mxu0 %v1740_v61 }
 0x485   :  { %v1574_v27 = vsub.f32 1.0, %v1570_v37  ;;  %1805 = vmatpush.msra.mxu1 %v1780_v31  ;;  %1840 = vmatpush.msra.mxu3 %v1815_v32 }
 0x486   :  { %v1575_v55 = vsub.f32 1.0, %v1571_v21  ;;  %1770 = vmatpush.msra.mxu0 %v1739_v3 }
 0x487   :  { %v1582_v40 = vsub.f32 0.0, %v1574_v27 }
 0x488   :  { %v1583_v26 = vsub.f32 0.0, %v1575_v55 }
 0x489   :  { %v1586_v41 = vsel %vm1578_vm2, %v1574_v27, %v1582_v40  ;;  %v1939_v40 = vld [vmem:[%s3025_s12] ss:$0 sm:$0xff] }
 0x48a   :  { %v1590_v44 = vadd.f32 1.0, %v1586_v41  ;;  %v1587_v46 = vsel %vm1579_vm14, %v1575_v55, %v1583_v26 }
 0x48b   :  { %v1591_v13 = vadd.f32 1.0, %v1587_v46 }
 0x48c   :  { %v1594_v34 = vmul.f32 %v1590_v44, %v1438_v42  ;;  %v1940_v42 = vld [vmem:[%s3026_s13] ss:$0 sm:$0xff] }
 0x48d   :  { %v1595_v43 = vmul.f32 %v1591_v13, %v1439_v6 }
 0x48e   :  { %1646 = vmatmul.f32.gmra.mxu2 %v1594_v34 }
 0x48f   :  { %1927 = vmatmul.msk.f32.gmra.mxu3 %vm1620_vm15, %v1595_v43 }
 0x502   :  { %v1644_v51 = vpop.f32.mrf.mxu2 }
 0x503   :  { %v1667_v53 = vpop.f32.mrf.mxu3 }
 0x504   :  { %v1668_v39 = vadd.f32 %v1667_v53, %v1644_v51 }
 0x506   :  { %v1673_v17 = vadd.f32 %v1668_v39, %v2650_v38 }
 0x508   :  { %v1679_v22 = vadd.f32 %v1938_v16, %v1673_v17 }
 0x50a   :  { %1681 = vst.msk [vmem:[%s3024_s20] sm:$0xff] %vm1304_vm0, %v1679_v22  ;;  %v1685_v30 = vsel %vm1304_vm0, %v1679_v22, 0.0 }
 0x50b   :  { %1686 = vadd.xlane.f32.xlu1 %v1685_v30  ;;  %v1942_v30 = vld [vmem:[%s3031_s17] ss:$0 sm:$0xff] }
 0x511   :  { %v1647_v57 = vpop.f32.mrf.mxu2 }
 0x512   :  { %v1670_v47 = vpop.f32.mrf.mxu3 }
 0x513   :  { %v1671_v62 = vadd.f32 %v1670_v47, %v1647_v57 }
 0x515   :  { %v1674_v48 = vadd.f32 %v1671_v62, %v2657_v25 }
 0x517   :  { %v1680_v59 = vadd.f32 %v1938_v16, %v1674_v48 }
 0x519   :  { %1682 = vst.msk [vmem:[%s3024_s20 + $0x8] sm:$0xff] %vm1304_vm0, %v1680_v59  ;;  %v1688_v38 = vsel %vm1304_vm0, %v1680_v59, 0.0 }
 0x51a   :  { %1689 = vadd.xlane.f32.xlu2 %v1688_v38 }
 0x57e   :  { %v1687_v54 = vpop.xlane.xlu1 %1686 }
 0x57f   :  { %v1691_v63 = vmul.f32 %v1687_v54, %v2661_v60 }
 0x581   :  { %v2898_v0 = vsub.f32 %v1679_v22, %v1691_v63  ;;  %v1941_v22 = vld [vmem:[%s3027_s15] ss:$0 sm:$0xff] }
 0x583   :  { %v1695_v1 = vmul.f32 %v2898_v0, %v2898_v0 }
 0x585   :  { %v1697_v2 = vsel %vm1304_vm0, %v1695_v1, 0.0 }
 0x586   :  { %1698 = vadd.xlane.f32.xlu0 %v1697_v2 }
 0x58d   :  { %v1690_v25 = vpop.xlane.xlu2 %1689 }
 0x58e   :  { %v1692_v4 = vmul.f32 %v1690_v25, %v2661_v60 }
 0x590   :  { %v2904_v5 = vsub.f32 %v1680_v59, %v1692_v4  ;;  %v1943_v59 = vld [vmem:[%s3032_s19] ss:$0 sm:$0xff] }
 0x592   :  { %v1696_v7 = vmul.f32 %v2904_v5, %v2904_v5 }
 0x594   :  { %v1700_v9 = vsel %vm1304_vm0, %v1696_v7, 0.0 }
 0x595   :  { %1701 = vadd.xlane.f32.xlu1 %v1700_v9 }
 0x5f9   :  { %v1699_v56 = vpop.xlane.xlu0 %1698 }
 0x5fa   :  { %v1703_v33 = vmul.f32 %v1699_v56, %v2661_v60 }
 0x5fc   :  { %v1705_v11 = vadd.f32 1e-05, %v1703_v33 }
 0x5fe   :  { %2014 = vrsqrt.f32 %v1705_v11  ;;  %vm1713_vm3 = vweird.f32 %v1705_v11 }
 0x604   :  { %v2015_v52 = vpop.eup %2014 }
 0x605   :  { %v1708_v50 = vmul.f32 %v2015_v52, %v1705_v11  ;;  %vm1714_vm1 = vweird.f32 %v2015_v52 }
 0x606   :  { %vm1715_vm4 = vmor %vm1713_vm3, %vm1714_vm1 }
 0x607   :  { %v1709_v36 = vmul.f32 %v2015_v52, %v1708_v50 }
 0x608   :  { %v1702_v19 = vpop.xlane.xlu1 %1701 }
 0x609   :  { %v1704_v14 = vmul.f32 %v1702_v19, %v2661_v60  ;;  %v1710_v37 = vmul.f32 0.5, %v1709_v36 }
 0x60b   :  { %v1706_v21 = vadd.f32 1e-05, %v1704_v14  ;;  %v1711_v27 = vsub.f32 1.5, %v1710_v37 }
 0x60d   :  { %2016 = vrsqrt.f32 %v1706_v21  ;;  %v1712_v55 = vmul.f32 %v2015_v52, %v1711_v27  ;;  %vm1723_vm6 = vweird.f32 %v1706_v21 }
 0x60f   :  { %v1716_v26 = vsel %vm1715_vm4, %v2015_v52, %v1712_v55 }
 0x610   :  { %v1727_v41 = vmul.f32 %v1716_v26, %v2898_v0 }
 0x612   :  { %v1732_v44 = vmul.f32 %v1939_v40, %v1727_v41 }
 0x613   :  { %v2017_v60 = vpop.eup %2016 }
 0x614   :  { %v1718_v46 = vmul.f32 %v2017_v60, %v1706_v21  ;;  %v1737_v6 = vadd.f32 %v1940_v42, %v1732_v44  ;;  %vm1724_vm5 = vweird.f32 %v2017_v60 }
 0x615   :  { %vm1725_vm7 = vmor %vm1723_vm6, %vm1724_vm5 }
 0x616   :  { %v1719_v13 = vmul.f32 %v2017_v60, %v1718_v46  ;;  %1928 = vmatmul.msk.f32.vlgmr.msra.gmra.mxu0 %vm1304_vm0, %v1737_v6  ;;  %1930 = vmatmul.msk.f32.vlgmr.msra.gmra.mxu1 %vm1304_vm0, %v1737_v6 }
 0x617   :  { %1932 = vmatmul.msk.f32.vlgmr.msra.gmra.mxu3 %vm1304_vm0, %v1737_v6 }
 0x618   :  { %v1720_v34 = vmul.f32 0.5, %v1719_v13 }
 0x61a   :  { %v1721_v43 = vsub.f32 1.5, %v1720_v34 }
 0x61c   :  { %v1722_v51 = vmul.f32 %v2017_v60, %v1721_v43 }
 0x61e   :  { %v1726_v53 = vsel %vm1725_vm7, %v2017_v60, %v1722_v51 }
 0x61f   :  { %v1728_v39 = vmul.f32 %v1726_v53, %v2904_v5 }
 0x621   :  { %v1733_v16 = vmul.f32 %v1939_v40, %v1728_v39 }
 0x623   :  { %v1738_v17 = vadd.f32 %v1940_v42, %v1733_v16 }
 0x625   :  { %1929 = vmatmul.msk.f32.gmra.mxu0 %vm1304_vm0, %v1738_v17  ;;  %1931 = vmatmul.msk.f32.gmra.mxu1 %vm1304_vm0, %v1738_v17 }
 0x626   :  { %1933 = vmatmul.msk.f32.gmra.mxu3 %vm1304_vm0, %v1738_v17 }
 0x693   :  { %v1772_v57 = vpop.f32.mrf.mxu0  ;;  %v1807_v47 = vpop.f32.mrf.mxu1 }
 0x694   :  { %v1773_v62 = vadd.f32 %v1941_v22, %v1772_v57  ;;  %v1808_v48 = vadd.f32 %v1942_v30, %v1807_v47 }
 0x696   :  { %1778 = vst.msk [vmem:[%s3033_s21] sm:$0xff] %vm1304_vm0, %v1773_v62 }
 0x697   :  { %1813 = vst.msk [vmem:[%s3034_s22] sm:$0xff] %vm1304_vm0, %v1808_v48 }
 0x69a   :  { %v1842_v38 = vpop.f32.mrf.mxu3 }
 0x69b   :  { %v1843_v54 = vadd.f32 %v1943_v59, %v1842_v38 }
 0x69d   :  { %1848 = vst.msk [vmem:[%s3035_s23] sm:$0xff] %vm1304_vm0, %v1843_v54 }
 0x6a2   :  { %v1775_v63 = vpop.f32.mrf.mxu0  ;;  %v1810_v0 = vpop.f32.mrf.mxu1 }
 0x6a3   :  { %v1776_v1 = vadd.f32 %v1941_v22, %v1775_v63  ;;  %v1811_v2 = vadd.f32 %v1942_v30, %v1810_v0 }
 0x6a5   :  { %1779 = vst.msk [vmem:[%s3033_s21 + $0x8] sm:$0xff] %vm1304_vm0, %v1776_v1 }
 0x6a6   :  { %1814 = vst.msk [vmem:[%s3034_s22 + $0x8] sm:$0xff] %vm1304_vm0, %v1811_v2 }
 0x6a9   :  { %v1845_v25 = vpop.f32.mrf.mxu3 }
 0x6aa   :  { %v1846_v4 = vadd.f32 %v1943_v59, %v1845_v25 }
 0x6ac   :  { %1849 = vst.msk [vmem:[%s3035_s23 + $0x8] sm:$0xff] %vm1304_vm0, %v1846_v4 }

// kernel: seva_forward.5
= control target key start
LH: loop header
LB: loop body
LE: loop exit
PB: predicated region body
PF: predicated region fallthrough
CT: control target
= control target key end

     0   :  { %s3600_s0 = inlined_call_operand.vmem [shape: f32[12,8,8], index: 0, kind: input, shape index: {}]   ;;  %s3601_s1 = inlined_call_operand.vmem [shape: f32[12,8,8], index: 1, kind: input, shape index: {}]   ;;  %s3602_s2 = inlined_call_operand.vmem [shape: f32[12,8,8], index: 2, kind: input, shape index: {}]   ;;  %s3603_s3 = inlined_call_operand.vmem [shape: f32[16,48], index: 3, kind: input, shape index: {}]   ;;  %s3604_s4 = inlined_call_operand.vmem [shape: f32[12,8,48], index: 4, kind: input, shape index: {}]   ;;  %s3605_s5 = inlined_call_operand.vmem [shape: f32[1,48], index: 5, kind: input, shape index: {}]   ;;  %s3606_s6 = inlined_call_operand.vmem [shape: f32[1,48], index: 6, kind: input, shape index: {}]   ;;  %s3607_s7 = inlined_call_operand.vmem [shape: f32[1,48], index: 7, kind: input, shape index: {}]   ;;  %s3608_s8 = inlined_call_operand.vmem [shape: f32[48,192], index: 8, kind: input, shape index: {}]   ;;  %s3609_s9 = inlined_call_operand.vmem [shape: f32[1,192], index: 9, kind: input, shape index: {}]   ;;  %s3610_s10 = inlined_call_operand.vmem [shape: f32[192,48], index: 10, kind: input, shape index: {}]   ;;  %s3611_s11 = inlined_call_operand.vmem [shape: f32[1,48], index: 11, kind: input, shape index: {}]   ;;  %s3612_s12 = inlined_call_operand.vmem [shape: f32[1,48], index: 12, kind: input, shape index: {}]   ;;  %s3613_s13 = inlined_call_operand.vmem [shape: f32[1,48], index: 13, kind: input, shape index: {}]   ;;  %s3614_s14 = inlined_call_operand.vmem [shape: f32[48,512], index: 14, kind: input, shape index: {}]   ;;  %s3615_s15 = inlined_call_operand.vmem [shape: f32[1,512], index: 15, kind: input, shape index: {}]   ;;  %s3616_s16 = inlined_call_operand.hbm [shape: f32[512,256], index: 16, kind: input, shape index: {}]   ;;  %s3617_s17 = inlined_call_operand.vmem [shape: f32[1,256], index: 17, kind: input, shape index: {}]   ;;  %s3618_s18 = inlined_call_operand.vmem [shape: f32[256,3], index: 18, kind: input, shape index: {}]   ;;  %s3619_s19 = inlined_call_operand.vmem [shape: f32[1,3], index: 19, kind: input, shape index: {}]   ;;  %s3620_s20 = inlined_call_operand.hbm [shape: f32[2,3], index: 20, kind: output, shape index: {0}]   ;;  %s3621_s21 = inlined_call_operand.hbm [shape: f32[12,8,8], index: 21, kind: output, shape index: {1}]  }
   0x1   :  { %3627 = sst [smem:[#allocation11_spill]] %s3600_s0 }
   0x2   :  { %3628 = sst [smem:[#allocation12_spill]] %s3601_s1 }
   0x3   :  { %3629 = sst [smem:[#allocation13_spill]] %s3602_s2 }
   0x4   :  { %3630 = sst [smem:[#allocation14_spill]] %s3603_s3 }
   0x5   :  { %3631 = sst [smem:[#allocation15_spill]] %s3604_s4 }
   0x6   :  { %3632 = sst [smem:[#allocation16_spill]] %s3605_s5 }
   0x7   :  { %27 = vsyncpa [#allocation3], 0 }
   0x8   :  { %28 = vsyncpa [#allocation4], 0 }
   0x9   :  { %29 = vsyncpa [#allocation7], 0  ;;  %s66_s26 = sshll.u32 %s3616_s16, 4  ;;  %s2539_s27 = smov [#allocation2]   ;;  %s67_s26 = int_to_ptr.hbm [resolvable:$true] %s66_s26 }
   0xa   :  { %s68_s3 = sshll.u32 %s2539_s27, 4  ;;  %s2540_s28 = smov 256   ;;  %s69_s3 = int_to_ptr.vmem [resolvable:$true] %s68_s3 }
   0xb   :  { %s2541_s29 = smov 16  }
   0xc   :  { %74 = dma.hbm_to_vmem [thread:$0]  %s67_s26, 16384, %s69_s3, [#allocation3], %s2540_s28, %s2540_s28, %s2541_s29  }
   0xd   :  { %2533 = dma.done.wait [#allocation3], 16384  }
   0xe   :  { %2534 = vsyncadd [#allocation3], 4294950912  ;;  %vm135_vm0 = vcmask 64512   ;;  %s3633_s30 = sld [smem:[#allocation12_spill]]  ;;  %s2545_s23 = smov 8  }
   0xf   :  { %s3634_s1 = sld [smem:[#allocation11_spill]]  ;;  %s2546_s16 = smov [#allocation5]  }
  0x10   :  { %s3635_s24 = sld [smem:[#allocation13_spill]] }
  0x11   :  { %s3658_s4 = sld [smem:[#allocation15_spill]] }
  0x12   :  { %s3659_s26 = sld [smem:[#allocation14_spill]] }
  0x13   :  { %s3660_s28 = sld [smem:[#allocation16_spill]] }
  0x14   :  { %v111_v0 = vld [vmem:[%s3633_s30] sm:$0xff]  ;;  %v113_v1 = vld [vmem:[%s3633_s30 + $0x10] sm:$0xff]  ;;  %v114_v5 = vld [vmem:[%s3633_s30 + $0x18] sm:$0xff] }
  0x15   :  { %v87_v2 = vld [vmem:[%s3634_s1] sm:$0xff]  ;;  %2308 = vmatpush.xpose.msk.msra.mxu0 %vm135_vm0, %v111_v0  ;;  %2312 = vmatpush.xpose.msk.msra.mxu3 %vm135_vm0, %v113_v1  ;;  %v89_v4 = vld [vmem:[%s3634_s1 + $0x10] sm:$0xff]  ;;  %v112_v6 = vld [vmem:[%s3633_s30 + $0x8] sm:$0xff] }
  0x16   :  { %v99_v3 = vmul.f32 0.35355338, %v87_v2  ;;  %v101_v7 = vmul.f32 0.35355338, %v89_v4  ;;  %v117_v8 = vld [vmem:[%s3633_s30 + $0x30] sm:$0xff]  ;;  %v88_v9 = vld [vmem:[%s3634_s1 + $0x8] sm:$0xff] }
  0x17   :  { %v115_v10 = vld [vmem:[%s3633_s30 + $0x20] sm:$0xff]  ;;  %v121_v11 = vld [vmem:[%s3633_s30 + $0x50] sm:$0xff]  ;;  %v90_v12 = vld [vmem:[%s3634_s1 + $0x18] sm:$0xff]  ;;  %v100_v16 = vmul.f32 0.35355338, %v88_v9 }
  0x18   :  { %2309 = vmatmul.msk.f32.vlgmr.msra.gmra.mxu0 %vm135_vm0, %v99_v3  ;;  %2313 = vmatmul.msk.f32.vlgmr.msra.gmra.mxu3 %vm135_vm0, %v101_v7  ;;  %v97_v13 = vld [vmem:[%s3634_s1 + $0x50] sm:$0xff]  ;;  %v116_v15 = vld [vmem:[%s3633_s30 + $0x28] sm:$0xff]  ;;  %v102_v18 = vmul.f32 0.35355338, %v90_v12  ;;  %v118_v19 = vld [vmem:[%s3633_s30 + $0x38] sm:$0xff] }
  0x19   :  { %2314 = vmatpush.xpose.msk.msrb.mxu3 %vm135_vm0, %v114_v5  ;;  %2310 = vmatpush.xpose.msk.msrb.mxu0 %vm135_vm0, %v112_v6  ;;  %v109_v14 = vmul.f32 0.35355338, %v97_v13  ;;  %v92_v17 = vld [vmem:[%s3634_s1 + $0x28] sm:$0xff]  ;;  %v119_v22 = vld [vmem:[%s3633_s30 + $0x40] sm:$0xff]  ;;  %v93_v24 = vld [vmem:[%s3634_s1 + $0x30] sm:$0xff] }
  0x1a   :  { %2328 = vmatpush.xpose.msk.msra.mxu2 %vm135_vm0, %v121_v11  ;;  %2318 = vmatpush.xpose.msk.msra.mxu1 %vm135_vm0, %v116_v15  ;;  %v104_v20 = vmul.f32 0.35355338, %v92_v17  ;;  %v120_v21 = vld [vmem:[%s3633_s30 + $0x48] sm:$0xff]  ;;  %v91_v25 = vld [vmem:[%s3634_s1 + $0x20] sm:$0xff]  ;;  %v105_v27 = vmul.f32 0.35355338, %v93_v24 }
  0x1b   :  { %v96_v23 = vld [vmem:[%s3634_s1 + $0x48] sm:$0xff]  ;;  %v103_v28 = vmul.f32 0.35355338, %v91_v25  ;;  %v122_v29 = vld [vmem:[%s3633_s30 + $0x58] sm:$0xff]  ;;  %v95_v31 = vld [vmem:[%s3634_s1 + $0x40] sm:$0xff]  ;;  %s2544_s30 = smov 128  }
  0x1c   :  { %v108_v26 = vmul.f32 0.35355338, %v96_v23  ;;  %v94_v30 = vld [vmem:[%s3634_s1 + $0x38] sm:$0xff]  ;;  %v107_v33 = vmul.f32 0.35355338, %v95_v31 }
  0x1d   :  { %2320 = vmatpush.xpose.msk.msra.mxu3 %vm135_vm0, %v117_v8  ;;  %2316 = vmatpush.xpose.msk.msra.mxu0 %vm135_vm0, %v115_v10  ;;  %v106_v32 = vmul.f32 0.35355338, %v94_v30  ;;  %v98_v34 = vld [vmem:[%s3634_s1 + $0x58] sm:$0xff] }
  0x1e   :  { %2329 = vmatmul.msk.f32.vlgmr.msra.gmra.mxu2 %vm135_vm0, %v109_v14  ;;  %2326 = vmatpush.xpose.msk.msrb.mxu1 %vm135_vm0, %v120_v21  ;;  %v110_v35 = vmul.f32 0.35355338, %v98_v34 }
  0x1f   :  { %2319 = vmatmul.msk.f32.vlgmr.msra.gmra.mxu1 %vm135_vm0, %v104_v20 }
  0x20   :  { %2311 = vmatmul.msk.f32.vlgmr.msrb.gmra.mxu0 %vm135_vm0, %v100_v16  ;;  %2315 = vmatmul.msk.f32.vlgmr.msrb.gmra.mxu3 %vm135_vm0, %v102_v18 }
  0x21   :  { %2322 = vmatpush.xpose.msk.msrb.mxu3 %vm135_vm0, %v118_v19  ;;  %2324 = vmatpush.xpose.msk.msrb.mxu0 %vm135_vm0, %v119_v22 }
  0x27   :  { %2327 = vmatmul.msk.f32.vlgmr.msrb.gmra.mxu1 %vm135_vm0, %v108_v26 }
  0x28   :  { %2321 = vmatmul.msk.f32.vlgmr.msra.gmra.mxu3 %vm135_vm0, %v105_v27  ;;  %2317 = vmatmul.msk.f32.vlgmr.msra.gmra.mxu0 %vm135_vm0, %v103_v28 }
  0x29   :  { %2330 = vmatpush.xpose.msk.msra.mxu3 %vm135_vm0, %v122_v29 }
  0x30   :  { %2323 = vmatmul.msk.f32.vlgmr.msrb.gmra.mxu3 %vm135_vm0, %v106_v32  ;;  %2325 = vmatmul.msk.f32.vlgmr.msrb.gmra.mxu0 %vm135_vm0, %v107_v33 }
  0x38   :  { %2331 = vmatmul.msk.f32.vlgmr.msra.gmra.mxu3 %vm135_vm0, %v110_v35 }
  0x95   :  { %v159_v36 = vpop.f32.mrf.mxu0 }
  0x96   :  { %v448_v37 = vsel %vm135_vm0, %v159_v36, -inf }
  0x97   :  { %449 = vmax.xlane.f32.xlu1 %v448_v37 }
  0x9b   :  { %v211_v38 = vpop.f32.mrf.mxu3 }
  0x9c   :  { %v454_v39 = vsel %vm135_vm0, %v211_v38, -inf  ;;  %v2764_v52 = vpop.f32.mrf.mxu1 }
  0x9d   :  { %455 = vmax.xlane.f32.xlu0 %v454_v39  ;;  %v185_v40 = vpop.f32.mrf.mxu0  ;;  %v463_v54 = vsel %vm135_vm0, %v2764_v52, -inf }
  0x9e   :  { %v451_v41 = vsel %vm135_vm0, %v185_v40, -inf }
  0x9f   :  { %452 = vmax.xlane.f32.xlu2 %v451_v41 }
  0xa1   :  { %v419_v48 = vpop.f32.mrf.mxu2 }
  0xa2   :  { %v478_v49 = vsel %vm135_vm0, %v419_v48, -inf }
  0xa3   :  { %v237_v42 = vpop.f32.mrf.mxu3 }
  0xa4   :  { %v457_v43 = vsel %vm135_vm0, %v237_v42, -inf  ;;  %v2776_v58 = vpop.f32.mrf.mxu1 }
  0xa5   :  { %458 = vmax.xlane.f32.xlu0 %v457_v43  ;;  %v263_v44 = vpop.f32.mrf.mxu0  ;;  %v475_v59 = vsel %vm135_vm0, %v2776_v58, -inf }
  0xa6   :  { %v460_v45 = vsel %vm135_vm0, %v263_v44, -inf }
  0xab   :  { %v315_v46 = vpop.f32.mrf.mxu3 }
  0xac   :  { %v466_v47 = vsel %vm135_vm0, %v315_v46, -inf }
  0xad   :  { %467 = vmax.xlane.f32.xlu1 %v466_v47  ;;  %461 = vmax.xlane.f32.xlu0 %v460_v45  ;;  %v2766_v53 = vpop.f32.mrf.mxu0 }
  0xae   :  { %v472_v56 = vsel %vm135_vm0, %v2766_v53, -inf }
  0xb3   :  { %v341_v50 = vpop.f32.mrf.mxu3 }
  0xb4   :  { %v469_v51 = vsel %vm135_vm0, %v341_v50, -inf }
  0xb5   :  { %479 = vmax.xlane.f32.xlu1 %v478_v49  ;;  %470 = vmax.xlane.f32.xlu2 %v469_v51 }
  0xbb   :  { %v2770_v55 = vpop.f32.mrf.mxu3 }
  0xbc   :  { %v481_v57 = vsel %vm135_vm0, %v2770_v55, -inf }
  0xbd   :  { %464 = vmax.xlane.f32.xlu2 %v463_v54  ;;  %482 = vmax.xlane.f32.xlu0 %v481_v57  ;;  %v125_v57 = vld [vmem:[%s3635_s24 + $0x10] sm:$0xff] }
  0xbe   :  { %473 = vmax.xlane.f32.xlu1 %v472_v56  ;;  %v123_v56 = vld [vmem:[%s3635_s24] sm:$0xff]  ;;  %812 = vmatpush.msrb.mxu2 %v125_v57 }
  0xbf   :  { %766 = vmatpush.msra.mxu0 %v123_v56 }
  0xc5   :  { %476 = vmax.xlane.f32.xlu2 %v475_v59 }
 0x10a   :  { %v450_v60 = vpop.xlane.xlu1 %449 }
 0x10b   :  { %v484_v61 = vsub.f32 %v159_v36, %v450_v60 }
 0x10d   :  { %v496_v62 = vmul.f32 1.442695, %v484_v61  ;;  %v126_v61 = vld [vmem:[%s3635_s24 + $0x18] sm:$0xff] }
 0x10e   :  { %835 = vmatpush.msrb.mxu3 %v126_v61 }
 0x10f   :  { %2389 = vpow2.f32 %v496_v62 }
 0x110   :  { %v456_v63 = vpop.xlane.xlu0 %455 }
 0x111   :  { %v486_v0 = vsub.f32 %v211_v38, %v456_v63 }
 0x112   :  { %v453_v4 = vpop.xlane.xlu2 %452 }
 0x113   :  { %v500_v1 = vmul.f32 1.442695, %v486_v0  ;;  %v485_v8 = vsub.f32 %v185_v40, %v453_v4 }
 0x115   :  { %v2780_v2 = vpop.eup %2389  ;;  %2391 = vpow2.f32 %v500_v1  ;;  %v498_v11 = vmul.f32 1.442695, %v485_v8 }
 0x116   :  { %v520_v3 = vsel %vm135_vm0, %v2780_v2, 0.0 }
 0x117   :  { %521 = vadd.xlane.f32.xlu2 %v520_v3 }
 0x118   :  { %v459_v5 = vpop.xlane.xlu0 %458 }
 0x119   :  { %v487_v6 = vsub.f32 %v237_v42, %v459_v5 }
 0x11b   :  { %v2784_v7 = vpop.eup %2391  ;;  %v502_v9 = vmul.f32 1.442695, %v487_v6 }
 0x11c   :  { %v526_v10 = vsel %vm135_vm0, %v2784_v7, 0.0 }
 0x11d   :  { %2393 = vpow2.f32 %v502_v9  ;;  %527 = vadd.xlane.f32.xlu0 %v526_v10 }
 0x11e   :  { %2395 = vpow2.f32 %v498_v11 }
 0x120   :  { %v468_v12 = vpop.xlane.xlu1 %467  ;;  %v462_v13 = vpop.xlane.xlu0 %461 }
 0x121   :  { %v490_v14 = vsub.f32 %v315_v46, %v468_v12  ;;  %v488_v17 = vsub.f32 %v263_v44, %v462_v13  ;;  %v129_v13 = vld [vmem:[%s3635_s24 + $0x30] sm:$0xff] }
 0x122   :  { %904 = vmatpush.msra.mxu2 %v129_v13 }
 0x123   :  { %v2788_v15 = vpop.eup %2393  ;;  %v508_v16 = vmul.f32 1.442695, %v490_v14  ;;  %v504_v19 = vmul.f32 1.442695, %v488_v17  ;;  %v124_v14 = vld [vmem:[%s3635_s24 + $0x8] sm:$0xff] }
 0x124   :  { %v529_v18 = vsel %vm135_vm0, %v2788_v15, 0.0  ;;  %v2792_v22 = vpop.eup %2395  ;;  %789 = vmatpush.msra.mxu1 %v124_v14 }
 0x125   :  { %2397 = vpow2.f32 %v508_v16  ;;  %530 = vadd.xlane.f32.xlu1 %v529_v18  ;;  %v523_v29 = vsel %vm135_vm0, %v2792_v22, 0.0 }
 0x126   :  { %2399 = vpow2.f32 %v504_v19 }
 0x128   :  { %v480_v20 = vpop.xlane.xlu1 %479  ;;  %v471_v21 = vpop.xlane.xlu2 %470 }
 0x129   :  { %v494_v23 = vsub.f32 %v419_v48, %v480_v20  ;;  %v491_v24 = vsub.f32 %v341_v50, %v471_v21 }
 0x12b   :  { %v2794_v25 = vpop.eup %2397  ;;  %v516_v26 = vmul.f32 1.442695, %v494_v23  ;;  %v510_v27 = vmul.f32 1.442695, %v491_v24 }
 0x12c   :  { %v538_v28 = vsel %vm135_vm0, %v2794_v25, 0.0  ;;  %v2800_v32 = vpop.eup %2399 }
 0x12d   :  { %2401 = vpow2.f32 %v516_v26  ;;  %539 = vadd.xlane.f32.xlu0 %v538_v28  ;;  %524 = vadd.xlane.f32.xlu1 %v523_v29  ;;  %v532_v42 = vsel %vm135_vm0, %v2800_v32, 0.0 }
 0x12e   :  { %2403 = vpow2.f32 %v510_v27 }
 0x130   :  { %v465_v30 = vpop.xlane.xlu2 %464  ;;  %v483_v31 = vpop.xlane.xlu0 %482 }
 0x131   :  { %v489_v33 = vsub.f32 %v2764_v52, %v465_v30  ;;  %v495_v34 = vsub.f32 %v2770_v55, %v483_v31  ;;  %v474_v35 = vpop.xlane.xlu1 %473 }
 0x132   :  { %v492_v36 = vsub.f32 %v2766_v53, %v474_v35  ;;  %v127_v35 = vld [vmem:[%s3635_s24 + $0x20] sm:$0xff] }
 0x133   :  { %v2805_v37 = vpop.eup %2401  ;;  %v506_v38 = vmul.f32 1.442695, %v489_v33  ;;  %v518_v39 = vmul.f32 1.442695, %v495_v34  ;;  %v130_v34 = vld [vmem:[%s3635_s24 + $0x38] sm:$0xff]  ;;  %858 = vmatpush.msrb.mxu0 %v127_v35 }
 0x134   :  { %v2807_v40 = vpop.eup %2403  ;;  %v512_v41 = vmul.f32 1.442695, %v492_v36  ;;  %v550_v43 = vsel %vm135_vm0, %v2805_v37, 0.0  ;;  %v133_v36 = vld [vmem:[%s3635_s24 + $0x50] sm:$0xff]  ;;  %927 = vmatpush.msra.mxu3 %v130_v34 }
 0x135   :  { %2405 = vpow2.f32 %v506_v38  ;;  %v541_v44 = vsel %vm135_vm0, %v2807_v40, 0.0  ;;  %533 = vadd.xlane.f32.xlu0 %v532_v42  ;;  %551 = vadd.xlane.f32.xlu1 %v550_v43 }
 0x136   :  { %2407 = vpow2.f32 %v518_v39  ;;  %542 = vadd.xlane.f32.xlu2 %v541_v44 }
 0x137   :  { %2409 = vpow2.f32 %v512_v41 }
 0x138   :  { %v477_v45 = vpop.xlane.xlu2 %476 }
 0x139   :  { %v493_v46 = vsub.f32 %v2776_v58, %v477_v45 }
 0x13b   :  { %v2816_v47 = vpop.eup %2405  ;;  %v514_v48 = vmul.f32 1.442695, %v493_v46 }
 0x13c   :  { %v2818_v49 = vpop.eup %2407  ;;  %v535_v50 = vsel %vm135_vm0, %v2816_v47, 0.0 }
 0x13d   :  { %v2822_v51 = vpop.eup %2409  ;;  %2411 = vpow2.f32 %v514_v48  ;;  %v553_v52 = vsel %vm135_vm0, %v2818_v49, 0.0 }
 0x13e   :  { %536 = vadd.xlane.f32.xlu2 %v535_v50  ;;  %554 = vadd.xlane.f32.xlu0 %v553_v52  ;;  %v544_v53 = vsel %vm135_vm0, %v2822_v51, 0.0 }
 0x13f   :  { %545 = vadd.xlane.f32.xlu1 %v544_v53 }
 0x143   :  { %v2828_v54 = vpop.eup %2411 }
 0x144   :  { %v547_v55 = vsel %vm135_vm0, %v2828_v54, 0.0 }
 0x146   :  { %548 = vadd.xlane.f32.xlu2 %v547_v55 }
 0x18a   :  { %v522_v58 = vpop.xlane.xlu2 %521 }
 0x18b   :  { %2413 = vrcp.f32 %v522_v58  ;;  %v567_v0 = vand.u32 2147483648, %v522_v58  ;;  %v565_v3 = vand.u32 2147483647, %v522_v58  ;;  %vm561_vm2 = vweird.f32 %v522_v58 }
 0x18d   :  { %v568_v9 = vor.u32 1.1754944e-38, %v567_v0  ;;  %vm566_vm4 = vcmp.eq.f32.partialorder %v565_v3, 8.507059e+37  ;;  %v131_v0 = vld [vmem:[%s3635_s24 + $0x40] sm:$0xff] }
 0x190   :  { %v528_v59 = vpop.xlane.xlu0 %527 }
 0x191   :  { %v2414_v60 = vpop.eup %2413  ;;  %2415 = vrcp.f32 %v528_v59  ;;  %v597_v18 = vand.u32 2147483648, %v528_v59  ;;  %vm591_vm6 = vweird.f32 %v528_v59  ;;  %v595_v20 = vand.u32 2147483647, %v528_v59 }
 0x192   :  { %v557_v62 = vmul.f32 %v2414_v60, %v522_v58  ;;  %vm562_vm1 = vweird.f32 %v2414_v60 }
 0x193   :  { %vm563_vm3 = vmor %vm561_vm2, %vm562_vm1  ;;  %v598_v28 = vor.u32 1.1754944e-38, %v597_v18  ;;  %vm596_vm8 = vcmp.eq.f32.partialorder %v595_v20, 8.507059e+37 }
 0x194   :  { %v558_v63 = vsub.f32 1.0, %v557_v62 }
 0x196   :  { %v559_v1 = vmul.f32 %v2414_v60, %v558_v63  ;;  %v128_v63 = vld [vmem:[%s3635_s24 + $0x28] sm:$0xff] }
 0x197   :  { %v2416_v4 = vpop.eup %2415  ;;  %881 = vmatpush.msrb.mxu1 %v128_v63 }
 0x198   :  { %v560_v5 = vadd.f32 %v2414_v60, %v559_v1  ;;  %v587_v6 = vmul.f32 %v2416_v4, %v528_v59  ;;  %v531_v8 = vpop.xlane.xlu1 %530  ;;  %vm592_vm5 = vweird.f32 %v2416_v4 }
 0x199   :  { %2417 = vrcp.f32 %v531_v8  ;;  %vm593_vm7 = vmor %vm591_vm6, %vm592_vm5  ;;  %v610_v33 = vand.u32 2147483647, %v531_v8  ;;  %v612_v39 = vand.u32 2147483648, %v531_v8  ;;  %vm606_vm10 = vweird.f32 %v531_v8 }
 0x19a   :  { %v564_v10 = vsel %vm563_vm3, %v2414_v60, %v560_v5  ;;  %v588_v11 = vsub.f32 1.0, %v587_v6 }
 0x19b   :  { %v569_v12 = vsel %vm566_vm4, %v568_v9, %v564_v10  ;;  %vm611_vm12 = vcmp.eq.f32.partialorder %v610_v33, 8.507059e+37  ;;  %v613_v52 = vor.u32 1.1754944e-38, %v612_v39 }
 0x19c   :  { %v589_v16 = vmul.f32 %v2416_v4, %v588_v11  ;;  %v570_v17 = vmul.f32 %v2780_v2, %v569_v12  ;;  %v134_v11 = vld [vmem:[%s3635_s24 + $0x58] sm:$0xff] }
 0x19e   :  { %v590_v19 = vadd.f32 %v2416_v4, %v589_v16  ;;  %736 = vst.msk [vmem:[#allocation6] sm:$0xff] %vm135_vm0, %v570_v17  ;;  %2332 = vmatmul.msk.f32.vlgmr.msra.gmra.mxu0 %vm135_vm0, %v570_v17 }
 0x19f   :  { %v2418_v21 = vpop.eup %2417  ;;  %950 = vmatpush.msra.mxu0 %v131_v0 }
 0x1a0   :  { %v602_v23 = vmul.f32 %v2418_v21, %v531_v8  ;;  %v2850_v24 = vpop.xlane.xlu0 %539  ;;  %v2852_v26 = vpop.xlane.xlu1 %524  ;;  %v594_v27 = vsel %vm593_vm7, %v2416_v4, %v590_v19  ;;  %vm607_vm9 = vweird.f32 %v2418_v21 }
 0x1a1   :  { %2419 = vrcp.f32 %v2850_v24  ;;  %v599_v29 = vsel %vm596_vm8, %v598_v28, %v594_v27  ;;  %vm2873_vm11 = vmor %vm606_vm10, %vm607_vm9  ;;  %v657_v55 = vand.u32 2147483648, %v2850_v24  ;;  %v655_v56 = vand.u32 2147483647, %v2850_v24 }
 0x1a2   :  { %v603_v2 = vsub.f32 1.0, %v602_v23  ;;  %2421 = vrcp.f32 %v2852_v26  ;;  %v600_v31 = vmul.f32 %v2784_v7, %v599_v29  ;;  %v580_v58 = vand.u32 2147483647, %v2852_v26 }
 0x1a3   :  { %v582_v59 = vand.u32 2147483648, %v2852_v26  ;;  %vm651_vm13 = vweird.f32 %v2850_v24  ;;  %v658_v1 = vor.u32 1.1754944e-38, %v657_v55  ;;  %vm576_vm14 = vweird.f32 %v2852_v26 }
 0x1a4   :  { %v604_v30 = vmul.f32 %v2418_v21, %v603_v2  ;;  %738 = vst.msk [vmem:[#allocation6 + $0x10] sm:$0xff] %vm135_vm0, %v600_v31  ;;  %2334 = vmatmul.msk.f32.vlgmr.msrb.gmra.mxu2 %vm135_vm0, %v600_v31  ;;  %vm2910_vm1 = vcmp.eq.f32.partialorder %v655_v56, 8.507059e+37  ;;  %vm2914_vm2 = vcmp.eq.f32.partialorder %v580_v58, 8.507059e+37  ;;  %v1027_v56 = vld [vmem:[%s3658_s4 + $0x18] sm:$0xff] }
 0x1a5   :  { %996 = vmatpush.msrb.mxu2 %v133_v36  ;;  %v583_v8 = vor.u32 1.1754944e-38, %v582_v59 }
 0x1a6   :  { %v605_v38 = vadd.f32 %v2418_v21, %v604_v30 }
 0x1a7   :  { %v2868_v7 = vpop.eup %2419 }
 0x1a8   :  { %v2870_v41 = vpop.eup %2421  ;;  %v647_v43 = vmul.f32 %v2868_v7, %v2850_v24  ;;  %v2879_v44 = vpop.xlane.xlu0 %533  ;;  %v609_v45 = vsel %vm2873_vm11, %v2418_v21, %v605_v38  ;;  %vm652_vm15 = vweird.f32 %v2868_v7 }
 0x1a9   :  { %v572_v46 = vmul.f32 %v2870_v41, %v2852_v26  ;;  %v2885_v48 = vpop.xlane.xlu2 %542  ;;  %2423 = vrcp.f32 %v2879_v44  ;;  %v2888_v50 = vpop.xlane.xlu1 %551  ;;  %v614_v60 = vsel %vm611_vm12, %v613_v52, %v609_v45  ;;  %vm577_vm3 = vweird.f32 %v2870_v41  ;;  %vm2947_vm6 = vmor %vm651_vm13, %vm652_vm15 }
 0x1aa   :  { %v648_v53 = vsub.f32 1.0, %v647_v43  ;;  %2425 = vrcp.f32 %v2885_v48  ;;  %v672_v3 = vand.u32 2147483648, %v2885_v48  ;;  %v670_v9 = vand.u32 2147483647, %v2885_v48  ;;  %vm2965_vm8 = vmor %vm576_vm14, %vm577_vm3 }
 0x1ab   :  { %v573_v57 = vsub.f32 1.0, %v572_v46  ;;  %2427 = vrcp.f32 %v2888_v50  ;;  %v615_v10 = vmul.f32 %v2788_v15, %v614_v60  ;;  %vm666_vm4 = vweird.f32 %v2885_v48 }
 0x1ac   :  { %v649_v61 = vmul.f32 %v2868_v7, %v648_v53  ;;  %vm621_vm5 = vweird.f32 %v2879_v44  ;;  %v625_v17 = vand.u32 2147483647, %v2879_v44  ;;  %v673_v21 = vor.u32 1.1754944e-38, %v672_v3 }
 0x1ad   :  { %v574_v62 = vmul.f32 %v2870_v41, %v573_v57  ;;  %739 = vst.msk [vmem:[#allocation6 + $0x18] sm:$0xff] %vm135_vm0, %v615_v10  ;;  %2335 = vmatmul.msk.f32.vlgmr.msrb.gmra.mxu3 %vm135_vm0, %v615_v10  ;;  %v627_v27 = vand.u32 2147483648, %v2879_v44  ;;  %vm2951_vm7 = vcmp.eq.f32.partialorder %v670_v9, 8.507059e+37  ;;  %v715_v31 = vand.u32 2147483647, %v2888_v50  ;;  %v1030_v57 = vld [vmem:[%s3658_s4 + $0x30] sm:$0xff] }
 0x1ae   :  { %v650_v13 = vadd.f32 %v2868_v7, %v649_v61  ;;  %1019 = vmatpush.msrb.mxu3 %v134_v11  ;;  %v717_v33 = vand.u32 2147483648, %v2888_v50  ;;  %vm2980_vm11 = vcmp.eq.f32.partialorder %v625_v17, 8.507059e+37  ;;  %vm711_vm12 = vweird.f32 %v2888_v50 }
 0x1af   :  { %v2907_v4 = vpop.eup %2423  ;;  %v575_v16 = vadd.f32 %v2870_v41, %v574_v62  ;;  %v628_v43 = vor.u32 1.1754944e-38, %v627_v27  ;;  %vm3006_vm3 = vcmp.eq.f32.partialorder %v715_v31, 8.507059e+37  ;;  %v1032_v62 = vld [vmem:[%s3658_s4 + $0x40] sm:$0xff] }
 0x1b0   :  { %v2923_v12 = vpop.eup %2425  ;;  %v617_v14 = vmul.f32 %v2907_v4, %v2879_v44  ;;  %v654_v34 = vsel %vm2947_vm6, %v2868_v7, %v650_v13  ;;  %vm622_vm9 = vweird.f32 %v2907_v4  ;;  %v718_v60 = vor.u32 1.1754944e-38, %v717_v33 }
 0x1b1   :  { %v662_v15 = vmul.f32 %v2923_v12, %v2885_v48  ;;  %v2937_v18 = vpop.xlane.xlu2 %536  ;;  %v2939_v19 = vpop.xlane.xlu0 %554  ;;  %v579_v38 = vsel %vm2965_vm8, %v2870_v41, %v575_v16  ;;  %vm667_vm10 = vweird.f32 %v2923_v12  ;;  %vm2988_vm13 = vmor %vm621_vm5, %vm622_vm9  ;;  %v659_v53 = vsel %vm2910_vm1, %v658_v1, %v654_v34  ;;  %v132_v16 = vld [vmem:[%s3635_s24 + $0x48] sm:$0xff] }
 0x1b2   :  { %v2428_v20 = vpop.eup %2427  ;;  %v618_v23 = vsub.f32 1.0, %v617_v14  ;;  %2429 = vrcp.f32 %v2937_v18  ;;  %v2972_v36 = vpop.xlane.xlu1 %545  ;;  %v584_v55 = vsel %vm2914_vm2, %v583_v8, %v579_v38  ;;  %vm2999_vm15 = vmor %vm666_vm4, %vm667_vm10  ;;  %vm636_vm2 = vweird.f32 %v2937_v18 }
 0x1b3   :  { %v663_v2 = vsub.f32 1.0, %v662_v15  ;;  %v707_v30 = vmul.f32 %v2428_v20, %v2888_v50  ;;  %2431 = vrcp.f32 %v2939_v19  ;;  %vm712_vm14 = vweird.f32 %v2428_v20 }
 0x1b4   :  { %v619_v35 = vmul.f32 %v2907_v4, %v618_v23  ;;  %2433 = vrcp.f32 %v2972_v36  ;;  %vm3016_vm1 = vmor %vm711_vm12, %vm712_vm14  ;;  %v640_v63 = vand.u32 2147483647, %v2937_v18  ;;  %v642_v0 = vand.u32 2147483648, %v2937_v18 }
 0x1b5   :  { %v664_v39 = vmul.f32 %v2923_v12, %v663_v2  ;;  %v708_v26 = vsub.f32 1.0, %v707_v30  ;;  %v732_v1 = vand.u32 2147483648, %v2939_v19  ;;  %v585_v9 = vmul.f32 %v2792_v22, %v584_v55  ;;  %v1026_v55 = vld [vmem:[%s3658_s4 + $0x10] sm:$0xff] }
 0x1b6   :  { %v620_v7 = vadd.f32 %v2907_v4, %v619_v35  ;;  %v660_v10 = vmul.f32 %v2794_v25, %v659_v53  ;;  %vm726_vm5 = vweird.f32 %v2939_v19  ;;  %v730_v15 = vand.u32 2147483647, %v2939_v19 }
 0x1b7   :  { %v665_v45 = vadd.f32 %v2923_v12, %v664_v39  ;;  %v709_v46 = vmul.f32 %v2428_v20, %v708_v26  ;;  %737 = vst.msk [vmem:[#allocation6 + $0x8] sm:$0xff] %vm135_vm0, %v585_v9  ;;  %2333 = vmatmul.msk.f32.vlgmr.msra.gmra.mxu1 %vm135_vm0, %v585_v9  ;;  %vm641_vm8 = vcmp.eq.f32.partialorder %v640_v63, 8.507059e+37  ;;  %v643_v23 = vor.u32 1.1754944e-38, %v642_v0  ;;  %v1035_v63 = vld [vmem:[%s3658_s4 + $0x58] sm:$0xff] }
 0x1b8   :  { %v2430_v52 = vpop.eup %2429  ;;  %v624_v44 = vsel %vm2988_vm13, %v2907_v4, %v620_v7  ;;  %2338 = vmatmul.msk.f32.vlgmr.msra.gmra.mxu2 %vm135_vm0, %v660_v10  ;;  %742 = vst.msk [vmem:[#allocation6 + $0x30] sm:$0xff] %vm135_vm0, %v660_v10  ;;  %973 = vmatpush.msra.mxu1 %v132_v16  ;;  %v733_v30 = vor.u32 1.1754944e-38, %v732_v1  ;;  %v687_v31 = vand.u32 2147483648, %v2972_v36  ;;  %vm681_vm12 = vweird.f32 %v2972_v36  ;;  %v1033_v1 = vld [vmem:[%s3658_s4 + $0x48] sm:$0xff] }
 0x1b9   :  { %v669_v58 = vsel %vm2999_vm15, %v2923_v12, %v665_v45  ;;  %v710_v59 = vadd.f32 %v2428_v20, %v709_v46  ;;  %v632_v48 = vmul.f32 %v2430_v52, %v2937_v18  ;;  %v2432_v61 = vpop.eup %2431  ;;  %v3024_v3 = vpop.xlane.xlu2 %548  ;;  %v629_v4 = vsel %vm2980_vm11, %v628_v43, %v624_v44  ;;  %1100 = vmatpush.msra.mxu2 %v1026_v55  ;;  %v1025_v44 = vld [vmem:[%s3658_s4 + $0x8] sm:$0xff] }
 0x1ba   :  { %v722_v6 = vmul.f32 %v2432_v61, %v2939_v19  ;;  %v674_v8 = vsel %vm2951_vm7, %v673_v21, %v669_v58  ;;  %vm637_vm4 = vweird.f32 %v2430_v52  ;;  %v2434_v11 = vpop.eup %2433  ;;  %2435 = vrcp.f32 %v3024_v3  ;;  %v1028_v58 = vld [vmem:[%s3658_s4 + $0x20] sm:$0xff] }
 0x1bb   :  { %v714_v50 = vsel %vm3016_vm1, %v2428_v20, %v710_v59  ;;  %v633_v5 = vsub.f32 1.0, %v632_v48  ;;  %vm727_vm6 = vweird.f32 %v2432_v61  ;;  %v677_v22 = vmul.f32 %v2434_v11, %v2972_v36  ;;  %vm638_vm7 = vmor %vm636_vm2, %vm637_vm4  ;;  %v1031_v59 = vld [vmem:[%s3658_s4 + $0x38] sm:$0xff]  ;;  %v1034_v48 = vld [vmem:[%s3658_s4 + $0x50] sm:$0xff] }
 0x1bc   :  { %v719_v12 = vsel %vm3006_vm3, %v718_v60, %v714_v50  ;;  %v723_v14 = vsub.f32 1.0, %v722_v6  ;;  %v630_v20 = vmul.f32 %v2800_v32, %v629_v4  ;;  %v675_v21 = vmul.f32 %v2807_v40, %v674_v8  ;;  %vm728_vm9 = vmor %vm726_vm5, %vm727_vm6  ;;  %v1029_v60 = vld [vmem:[%s3658_s4 + $0x28] sm:$0xff] }
 0x1bd   :  { %v634_v13 = vmul.f32 %v2430_v52, %v633_v5  ;;  %v678_v27 = vsub.f32 1.0, %v677_v22  ;;  %v720_v28 = vmul.f32 %v2805_v37, %v719_v12  ;;  %vm682_vm10 = vweird.f32 %v2434_v11 }
 0x1be   :  { %v724_v17 = vmul.f32 %v2432_v61, %v723_v14  ;;  %740 = vst.msk [vmem:[#allocation6 + $0x20] sm:$0xff] %vm135_vm0, %v630_v20  ;;  %2336 = vmatmul.msk.f32.vlgmr.msrb.gmra.mxu0 %vm135_vm0, %v630_v20  ;;  %2339 = vmatmul.msk.f32.vlgmr.msra.gmra.mxu3 %vm135_vm0, %v675_v21  ;;  %v685_v37 = vand.u32 2147483647, %v2972_v36  ;;  %vm731_vm11 = vcmp.eq.f32.partialorder %v730_v15, 8.507059e+37  ;;  %vm683_vm13 = vmor %vm681_vm12, %vm682_vm10  ;;  %v688_v38 = vor.u32 1.1754944e-38, %v687_v31 }
 0x1bf   :  { %v635_v25 = vadd.f32 %v2430_v52, %v634_v13  ;;  %v679_v40 = vmul.f32 %v2434_v11, %v678_v27  ;;  %743 = vst.msk [vmem:[#allocation6 + $0x38] sm:$0xff] %vm135_vm0, %v675_v21  ;;  %v702_v42 = vand.u32 2147483648, %v3024_v3  ;;  %v700_v43 = vand.u32 2147483647, %v3024_v3  ;;  %1123 = vmatpush.msra.mxu3 %v1027_v56  ;;  %v85_v21 = vld [vmem:[%s3659_s26] sm:$0xff] }
 0x1c0   :  { %v725_v29 = vadd.f32 %v2432_v61, %v724_v17  ;;  %v2436_v18 = vpop.eup %2435  ;;  %746 = vst.msk [vmem:[#allocation6 + $0x50] sm:$0xff] %vm135_vm0, %v720_v28  ;;  %vm686_vm14 = vcmp.eq.f32.partialorder %v685_v37, 8.507059e+37  ;;  %2342 = vmatmul.msk.f32.vlgmr.msrb.gmra.mxu2 %vm135_vm0, %v720_v28  ;;  %vm696_vm3 = vweird.f32 %v3024_v3  ;;  %v2382_v28 = vld [vmem:[%s3660_s28] ss:$0 sm:$0xff] }
 0x1c1   :  { %v639_v2 = vsel %vm638_vm7, %v2430_v52, %v635_v25  ;;  %v680_v35 = vadd.f32 %v2434_v11, %v679_v40  ;;  %v692_v19 = vmul.f32 %v2436_v18, %v3024_v3  ;;  %vm697_vm15 = vweird.f32 %v2436_v18  ;;  %1192 = vmatpush.msrb.mxu2 %v1030_v57 }
 0x1c2   :  { %v644_v32 = vsel %vm641_vm8, %v643_v23, %v639_v2  ;;  %v729_v33 = vsel %vm728_vm9, %v2432_v61, %v725_v29  ;;  %vm698_vm1 = vmor %vm696_vm3, %vm697_vm15  ;;  %v703_v41 = vor.u32 1.1754944e-38, %v702_v42  ;;  %vm701_vm2 = vcmp.eq.f32.partialorder %v700_v43, 8.507059e+37 }
 0x1c3   :  { %v645_v34 = vmul.f32 %v2816_v47, %v644_v32  ;;  %v734_v24 = vsel %vm731_vm11, %v733_v30, %v729_v33  ;;  %v684_v26 = vsel %vm683_vm13, %v2434_v11, %v680_v35  ;;  %v693_v7 = vsub.f32 1.0, %v692_v19  ;;  %v86_v19 = vld [vmem:[%s3659_s26 + $0x8] sm:$0xff] }
 0x1c4   :  { %v735_v39 = vmul.f32 %v2818_v49, %v734_v24  ;;  %v689_v47 = vsel %vm686_vm14, %v688_v38, %v684_v26  ;;  %v2542_v42 = vmov 48.0  }
 0x1c5   :  { %741 = vst.msk [vmem:[#allocation6 + $0x28] sm:$0xff] %vm135_vm0, %v645_v34  ;;  %2337 = vmatmul.msk.f32.vlgmr.msrb.gmra.mxu1 %vm135_vm0, %v645_v34  ;;  %v694_v36 = vmul.f32 %v2436_v18, %v693_v7  ;;  %v690_v45 = vmul.f32 %v2822_v51, %v689_v47  ;;  %v1024_v51 = vld [vmem:[%s3658_s4] sm:$0xff]  ;;  %2437 = vrcp.f32 %v2542_v42  ;;  %s2280_s4 = sshll.u32 %s3620_s20, 4  ;;  %s2281_s4 = int_to_ptr.hbm [resolvable:$true] %s2280_s4 }
 0x1c6   :  { %747 = vst.msk [vmem:[#allocation6 + $0x58] sm:$0xff] %vm135_vm0, %v735_v39  ;;  %2343 = vmatmul.msk.f32.vlgmr.msrb.gmra.mxu3 %vm135_vm0, %v735_v39  ;;  %1054 = vmatpush.msrb.mxu0 %v1024_v51 }
 0x1c7   :  { %v695_v49 = vadd.f32 %v2436_v18, %v694_v36  ;;  %744 = vst.msk [vmem:[#allocation6 + $0x40] sm:$0xff] %vm135_vm0, %v690_v45  ;;  %2340 = vmatmul.msk.f32.vlgmr.msra.gmra.mxu0 %vm135_vm0, %v690_v45  ;;  %1077 = vmatpush.msrb.mxu1 %v1025_v44 }
 0x1c8   :  { %1146 = vmatpush.msra.mxu0 %v1028_v58  ;;  %1215 = vmatpush.msrb.mxu3 %v1031_v59 }
 0x1c9   :  { %v699_v46 = vsel %vm698_vm1, %v2436_v18, %v695_v49 }
 0x1ca   :  { %v704_v52 = vsel %vm701_vm2, %v703_v41, %v699_v46 }
 0x1cb   :  { %v705_v53 = vmul.f32 %v2828_v54, %v704_v52  ;;  %v2438_v36 = vpop.eup %2437 }
 0x1cc   :  { %v1340_v43 = vmul.f32 48.0, %v2438_v36  ;;  %vm1344_vm4 = vweird.f32 %v2438_v36 }
 0x1cd   :  { %745 = vst.msk [vmem:[#allocation6 + $0x48] sm:$0xff] %vm135_vm0, %v705_v53  ;;  %2341 = vmatmul.msk.f32.vlgmr.msra.gmra.mxu1 %vm135_vm0, %v705_v53 }
 0x1ce   :  { %1169 = vmatpush.msra.mxu1 %v1029_v60  ;;  %v1341_v45 = vsub.f32 1.0, %v1340_v43  ;;  %v1404_v60 = vld [vmem:[%s3608_s8 + $0x50] sm:$0xff]  ;;  %v1639_v43 = vld [vmem:[%s3610_s10 + $0x78] sm:$0xff] }
 0x1d0   :  { %v1342_v49 = vmul.f32 %v2438_v36, %v1341_v45 }
 0x1d2   :  { %v1343_v41 = vadd.f32 %v2438_v36, %v1342_v49 }
 0x1d4   :  { %v3147_v46 = vsel %vm1344_vm4, %v2438_v36, %v1343_v41  ;;  %v1638_v41 = vld [vmem:[%s3610_s10 + $0x70] sm:$0xff] }
 0x21b   :  { %v768_v54 = vpop.f32.mrf.mxu0 }
 0x21c   :  { %2344 = vmatmul.msk.f32.vlgmr.msrb.gmra.mxu0 %vm135_vm0, %v768_v54 }
 0x21d   :  { %1238 = vmatpush.msrb.mxu0 %v1032_v62  ;;  %v1403_v62 = vld [vmem:[%s3608_s8 + $0x48] sm:$0xff] }
 0x227   :  { %v814_v61 = vpop.f32.mrf.mxu2 }
 0x228   :  { %2346 = vmatmul.msk.f32.vlgmr.msra.gmra.mxu2 %vm135_vm0, %v814_v61  ;;  %v1402_v61 = vld [vmem:[%s3608_s8 + $0x40] sm:$0xff] }
 0x229   :  { %1284 = vmatpush.msra.mxu2 %v1034_v48  ;;  %v1405_v48 = vld [vmem:[%s3608_s8 + $0x58] sm:$0xff] }
 0x230   :  { %v837_v0 = vpop.f32.mrf.mxu3 }
 0x231   :  { %2347 = vmatmul.msk.f32.vlgmr.msra.gmra.mxu3 %vm135_vm0, %v837_v0  ;;  %v1401_v0 = vld [vmem:[%s3608_s8 + $0x38] sm:$0xff] }
 0x232   :  { %1307 = vmatpush.msra.mxu3 %v1035_v63  ;;  %v1400_v63 = vld [vmem:[%s3608_s8 + $0x30] sm:$0xff] }
 0x234   :  { %v791_v3 = vpop.f32.mrf.mxu1 }
 0x235   :  { %2345 = vmatmul.msk.f32.vlgmr.msrb.gmra.mxu1 %vm135_vm0, %v791_v3  ;;  %v1398_v3 = vld [vmem:[%s3608_s8 + $0x20] sm:$0xff] }
 0x236   :  { %1261 = vmatpush.msrb.mxu1 %v1033_v1 }
 0x23b   :  { %v860_v4 = vpop.f32.mrf.mxu0  ;;  %v906_v50 = vpop.f32.mrf.mxu2 }
 0x23c   :  { %2348 = vmatmul.msk.f32.vlgmr.msra.gmra.mxu0 %vm135_vm0, %v860_v4  ;;  %2350 = vmatmul.msk.f32.vlgmr.msrb.gmra.mxu2 %vm135_vm0, %v906_v50  ;;  %v1399_v4 = vld [vmem:[%s3608_s8 + $0x28] sm:$0xff] }
 0x23d   :  { %1428 = vmatpush.msra.mxu0 %v1404_v60  ;;  %1655 = vmatpush.msrb.mxu2 %v1639_v43  ;;  %v1633_v60 = vld [vmem:[%s3610_s10 + $0x48] sm:$0xff] }
 0x23f   :  { %1429 = vmatpush.msra.mxu0 %v1402_v61  ;;  %1656 = vmatpush.msrb.mxu2 %v1638_v41  ;;  %v1626_v41 = vld [vmem:[%s3610_s10 + $0x10] sm:$0xff] }
 0x241   :  { %v929_v6 = vpop.f32.mrf.mxu3  ;;  %1430 = vmatpush.msra.mxu0 %v1400_v63 }
 0x242   :  { %v883_v5 = vpop.f32.mrf.mxu1  ;;  %2351 = vmatmul.msk.f32.vlgmr.msrb.gmra.mxu3 %vm135_vm0, %v929_v6  ;;  %v1397_v6 = vld [vmem:[%s3608_s8 + $0x18] sm:$0xff] }
 0x243   :  { %2349 = vmatmul.msk.f32.vlgmr.msra.gmra.mxu1 %vm135_vm0, %v883_v5  ;;  %v998_v9 = vpop.f32.mrf.mxu2  ;;  %1431 = vmatpush.msra.mxu0 %v1398_v3  ;;  %v1396_v5 = vld [vmem:[%s3608_s8 + $0x10] sm:$0xff] }
 0x244   :  { %v952_v8 = vpop.f32.mrf.mxu0  ;;  %2354 = vmatmul.msk.f32.vlgmr.msra.gmra.mxu2 %vm135_vm0, %v998_v9  ;;  %1451 = vmatpush.msra.mxu1 %v1405_v48  ;;  %v1394_v9 = vld [vmem:[%s3608_s8] sm:$0xff] }
 0x245   :  { %2352 = vmatmul.msk.f32.vlgmr.msrb.gmra.mxu0 %vm135_vm0, %v952_v8 }
 0x246   :  { %1452 = vmatpush.msra.mxu1 %v1403_v62  ;;  %1432 = vmatpush.msra.mxu0 %v1396_v5 }
 0x248   :  { %1453 = vmatpush.msra.mxu1 %v1401_v0  ;;  %1433 = vmatpush.msra.mxu0 %v1394_v9 }
 0x249   :  { %v1021_v10 = vpop.f32.mrf.mxu3 }
 0x24a   :  { %2355 = vmatmul.msk.f32.vlgmr.msra.gmra.mxu3 %vm135_vm0, %v1021_v10  ;;  %v975_v11 = vpop.f32.mrf.mxu1  ;;  %1454 = vmatpush.msra.mxu1 %v1399_v4  ;;  %v1395_v10 = vld [vmem:[%s3608_s8 + $0x8] sm:$0xff] }
 0x24b   :  { %2353 = vmatmul.msk.f32.vlgmr.msrb.gmra.mxu1 %vm135_vm0, %v975_v11  ;;  %vm1332_vm0 = vcmask 392192  }
 0x24c   :  { %1455 = vmatpush.msra.mxu1 %v1397_v6  ;;  %v1631_v6 = vld [vmem:[%s3610_s10 + $0x38] sm:$0xff] }
 0x24e   :  { %1456 = vmatpush.msra.mxu1 %v1395_v10 }
 0x299   :  { %v1056_v12 = vpop.f32.mrf.mxu0 }
 0x2ab   :  { %v1102_v16 = vpop.f32.mrf.mxu2 }
 0x2b2   :  { %v1079_v13 = vpop.f32.mrf.mxu1 }
 0x2b3   :  { %v1312_v14 = vadd.f32 %v1079_v13, %v1056_v12 }
 0x2b4   :  { %v1125_v15 = vpop.f32.mrf.mxu3 }
 0x2b5   :  { %v1314_v22 = vadd.f32 %v1312_v14, %v1102_v16 }
 0x2b7   :  { %v1316_v17 = vadd.f32 %v1314_v22, %v1125_v15 }
 0x2b9   :  { %v1148_v25 = vpop.f32.mrf.mxu0 }
 0x2ba   :  { %v1318_v20 = vadd.f32 %v1316_v17, %v1148_v25 }
 0x2bf   :  { %v1194_v29 = vpop.f32.mrf.mxu2 }
 0x2c0   :  { %v1171_v23 = vpop.f32.mrf.mxu1 }
 0x2c1   :  { %v1320_v27 = vadd.f32 %v1318_v20, %v1171_v23  ;;  %v2383_v20 = vld [vmem:[%s3606_s6] ss:$0 sm:$0xff] }
 0x2c2   :  { %v1240_v37 = vpop.f32.mrf.mxu0 }
 0x2c3   :  { %v1322_v2 = vadd.f32 %v1320_v27, %v85_v21  ;;  %v2384_v27 = vld [vmem:[%s3607_s7] ss:$0 sm:$0xff] }
 0x2c5   :  { %v3136_v30 = vadd.f32 %v2382_v28, %v1322_v2  ;;  %v1217_v31 = vpop.f32.mrf.mxu3 }
 0x2c6   :  { %v1313_v40 = vadd.f32 %v1217_v31, %v1194_v29 }
 0x2c7   :  { %v1333_v32 = vsel %vm1332_vm0, %v3136_v30, 0.0  ;;  %v1286_v24 = vpop.f32.mrf.mxu2 }
 0x2c8   :  { %1334 = vadd.xlane.f32.xlu0 %v1333_v32  ;;  %v1263_v18 = vpop.f32.mrf.mxu1  ;;  %v1315_v33 = vadd.f32 %v1313_v40, %v1240_v37 }
 0x2ca   :  { %v1317_v34 = vadd.f32 %v1315_v33, %v1263_v18 }
 0x2cc   :  { %v1319_v35 = vadd.f32 %v1317_v34, %v1286_v24 }
 0x2cd   :  { %v1309_v38 = vpop.f32.mrf.mxu3 }
 0x2ce   :  { %v1321_v39 = vadd.f32 %v1319_v35, %v1309_v38 }
 0x2d0   :  { %v1323_v26 = vadd.f32 %v1321_v39, %v86_v19  ;;  %v1406_v19 = vld [vmem:[%s3609_s9] sm:$0x3] }
 0x2d1   :  { %v1408_v38 = vperm.slane %v1406_v19, 0  ;;  %v1409_v39 = vperm.slane %v1406_v19, 1 }
 0x2d2   :  { %v3143_v7 = vadd.f32 %v2382_v28, %v1323_v26 }
 0x2d4   :  { %v1336_v47 = vsel %vm1332_vm0, %v3143_v7, 0.0 }
 0x2d5   :  { %1337 = vadd.xlane.f32.xlu1 %v1336_v47 }
 0x33b   :  { %v1335_v52 = vpop.xlane.xlu0 %1334 }
 0x33c   :  { %v1346_v53 = vmul.f32 %v3147_v46, %v1335_v52 }
 0x33e   :  { %v1348_v51 = vsub.f32 %v3136_v30, %v1346_v53 }
 0x340   :  { %v1350_v55 = vmul.f32 %v1348_v51, %v1348_v51 }
 0x342   :  { %v1352_v56 = vsel %vm1332_vm0, %v1350_v55, 0.0 }
 0x343   :  { %1353 = vadd.xlane.f32.xlu2 %v1352_v56 }
 0x348   :  { %v1338_v54 = vpop.xlane.xlu1 %1337 }
 0x349   :  { %v1347_v44 = vmul.f32 %v3147_v46, %v1338_v54  ;;  %v1636_v54 = vld [vmem:[%s3610_s10 + $0x60] sm:$0xff] }
 0x34b   :  { %v3154_v57 = vsub.f32 %v3143_v7, %v1347_v44 }
 0x34d   :  { %v1351_v58 = vmul.f32 %v3154_v57, %v3154_v57 }
 0x34f   :  { %v1355_v59 = vsel %vm1332_vm0, %v1351_v58, 0.0  ;;  %v1635_v58 = vld [vmem:[%s3610_s10 + $0x58] sm:$0xff] }
 0x350   :  { %1356 = vadd.xlane.f32.xlu0 %v1355_v59  ;;  %v1634_v59 = vld [vmem:[%s3610_s10 + $0x50] sm:$0xff] }
 0x3b6   :  { %v1354_v1 = vpop.xlane.xlu2 %1353 }
 0x3b7   :  { %v1358_v50 = vmul.f32 %v1354_v1, %v3147_v46  ;;  %v1632_v1 = vld [vmem:[%s3610_s10 + $0x40] sm:$0xff] }
 0x3b9   :  { %v1360_v8 = vadd.f32 1e-05, %v1358_v50 }
 0x3bb   :  { %2439 = vrsqrt.f32 %v1360_v8  ;;  %vm1368_vm6 = vweird.f32 %v1360_v8 }
 0x3c1   :  { %v2440_v11 = vpop.eup %2439 }
 0x3c2   :  { %v1363_v12 = vmul.f32 %v2440_v11, %v1360_v8  ;;  %vm1369_vm5 = vweird.f32 %v2440_v11  ;;  %v1647_v8 = vld [vmem:[%s3610_s10 + $0xb8] sm:$0xff] }
 0x3c3   :  { %v1357_v14 = vpop.xlane.xlu0 %1356  ;;  %vm1370_vm7 = vmor %vm1368_vm6, %vm1369_vm5  ;;  %1686 = vmatpush.msrb.mxu3 %v1647_v8 }
 0x3c4   :  { %v1364_v13 = vmul.f32 %v2440_v11, %v1363_v12  ;;  %v1359_v15 = vmul.f32 %v1357_v14, %v3147_v46 }
 0x3c6   :  { %v1365_v16 = vmul.f32 0.5, %v1364_v13  ;;  %v1361_v25 = vadd.f32 1e-05, %v1359_v15  ;;  %v1646_v15 = vld [vmem:[%s3610_s10 + $0xb0] sm:$0xff] }
 0x3c7   :  { %1687 = vmatpush.msrb.mxu3 %v1646_v15 }
 0x3c8   :  { %v1366_v22 = vsub.f32 1.5, %v1365_v16  ;;  %2441 = vrsqrt.f32 %v1361_v25  ;;  %vm1378_vm9 = vweird.f32 %v1361_v25  ;;  %v1630_v16 = vld [vmem:[%s3610_s10 + $0x30] sm:$0xff] }
 0x3ca   :  { %v1367_v17 = vmul.f32 %v2440_v11, %v1366_v22 }
 0x3cc   :  { %v1371_v21 = vsel %vm1370_vm7, %v2440_v11, %v1367_v17 }
 0x3cd   :  { %v1382_v23 = vmul.f32 %v1371_v21, %v1348_v51  ;;  %v1637_v51 = vld [vmem:[%s3610_s10 + $0x68] sm:$0xff] }
 0x3ce   :  { %v2442_v2 = vpop.eup %2441  ;;  %1657 = vmatpush.msrb.mxu2 %v1637_v51 }
 0x3cf   :  { %v1387_v28 = vmul.f32 %v2383_v20, %v1382_v23  ;;  %v1373_v29 = vmul.f32 %v2442_v2, %v1361_v25  ;;  %vm1379_vm8 = vweird.f32 %v2442_v2 }
 0x3d0   :  { %vm1380_vm10 = vmor %vm1378_vm9, %vm1379_vm8  ;;  %1658 = vmatpush.msrb.mxu2 %v1636_v54  ;;  %v1625_v54 = vld [vmem:[%s3610_s10 + $0x8] sm:$0xff] }
 0x3d1   :  { %v1392_v31 = vadd.f32 %v2384_v27, %v1387_v28  ;;  %v1374_v32 = vmul.f32 %v2442_v2, %v1373_v29  ;;  %v1629_v28 = vld [vmem:[%s3610_s10 + $0x28] sm:$0xff] }
 0x3d2   :  { %1659 = vmatpush.msrb.mxu2 %v1635_v58 }
 0x3d3   :  { %2356 = vmatmul.msk.f32.vlgmr.msra.gmra.mxu0 %vm1332_vm0, %v1392_v31  ;;  %2358 = vmatmul.msk.f32.vlgmr.msra.gmra.mxu1 %vm1332_vm0, %v1392_v31  ;;  %v1375_v40 = vmul.f32 0.5, %v1374_v32 }
 0x3d4   :  { %1660 = vmatpush.msrb.mxu2 %v1634_v59 }
 0x3d5   :  { %v1376_v37 = vsub.f32 1.5, %v1375_v40 }
 0x3d6   :  { %1661 = vmatpush.msrb.mxu2 %v1633_v60  ;;  %v1624_v60 = vld [vmem:[%s3610_s10] sm:$0xff] }
 0x3d7   :  { %v1377_v18 = vmul.f32 %v2442_v2, %v1376_v37 }
 0x3d8   :  { %1662 = vmatpush.msrb.mxu2 %v1632_v1 }
 0x3d9   :  { %v1381_v33 = vsel %vm1380_vm10, %v2442_v2, %v1377_v18  ;;  %v1645_v2 = vld [vmem:[%s3610_s10 + $0xa8] sm:$0xff] }
 0x3da   :  { %v1383_v34 = vmul.f32 %v1381_v33, %v3154_v57  ;;  %1663 = vmatpush.msrb.mxu2 %v1631_v6  ;;  %1688 = vmatpush.msrb.mxu3 %v1645_v2  ;;  %v1628_v33 = vld [vmem:[%s3610_s10 + $0x20] sm:$0xff] }
 0x3dc   :  { %v1388_v24 = vmul.f32 %v2383_v20, %v1383_v34  ;;  %1664 = vmatpush.msrb.mxu2 %v1630_v16  ;;  %v1644_v34 = vld [vmem:[%s3610_s10 + $0xa0] sm:$0xff] }
 0x3dd   :  { %1689 = vmatpush.msrb.mxu3 %v1644_v34 }
 0x3de   :  { %v1393_v35 = vadd.f32 %v2384_v27, %v1388_v24  ;;  %1665 = vmatpush.msrb.mxu2 %v1629_v28  ;;  %v1627_v24 = vld [vmem:[%s3610_s10 + $0x18] sm:$0xff] }
 0x3e0   :  { %2357 = vmatmul.msk.f32.gmra.mxu0 %vm1332_vm0, %v1393_v35  ;;  %2359 = vmatmul.msk.f32.gmra.mxu1 %vm1332_vm0, %v1393_v35 }
 0x3e1   :  { %1666 = vmatpush.msrb.mxu2 %v1628_v33 }
 0x3e3   :  { %1667 = vmatpush.msrb.mxu2 %v1627_v24 }
 0x3e5   :  { %1668 = vmatpush.msrb.mxu2 %v1626_v41 }
 0x3e7   :  { %1669 = vmatpush.msrb.mxu2 %v1625_v54 }
 0x3e9   :  { %1670 = vmatpush.msrb.mxu2 %v1624_v60 }
 0x450   :  { %v1435_v26 = vpop.f32.mrf.mxu0  ;;  %v1458_v47 = vpop.f32.mrf.mxu1 }
 0x451   :  { %v3211_v42 = vadd.f32 %v1435_v26, %v1408_v38  ;;  %v3213_v36 = vadd.f32 %v1458_v47, %v1409_v39  ;;  %v1643_v26 = vld [vmem:[%s3610_s10 + $0x98] sm:$0xff] }
 0x452   :  { %1690 = vmatpush.msrb.mxu3 %v1643_v26 }
 0x453   :  { %v3219_v45 = vmul.f32 0.70710677, %v3211_v42  ;;  %v3222_v49 = vmul.f32 0.70710677, %v3213_v36 }
 0x455   :  { %v1472_v52 = vand.u32 2147483647, %v3219_v45  ;;  %v1473_v53 = vand.u32 2147483647, %v3222_v49 }
 0x457   :  { %v1476_v55 = vmul.f32 0.3275911, %v1472_v52  ;;  %v1477_v56 = vmul.f32 0.3275911, %v1473_v53  ;;  %v1580_v62 = vsub.f32 0.0, %v1472_v52  ;;  %v1581_v13 = vsub.f32 0.0, %v1473_v53 }
 0x459   :  { %v3235_v44 = vadd.f32 1.0, %v1476_v55  ;;  %v3237_v57 = vadd.f32 1.0, %v1477_v56  ;;  %v1584_v12 = vmul.f32 %v1580_v62, %v1472_v52  ;;  %v1585_v37 = vmul.f32 %v1581_v13, %v1473_v53  ;;  %v1642_v52 = vld [vmem:[%s3610_s10 + $0x90] sm:$0xff] }
 0x45a   :  { %1691 = vmatpush.msrb.mxu3 %v1642_v52 }
 0x45b   :  { %2443 = vrcp.f32 %v3235_v44  ;;  %v1493_v22 = vand.u32 2147483647, %v3235_v44  ;;  %v1495_v25 = vand.u32 2147483648, %v3235_v44  ;;  %v1510_v23 = vand.u32 2147483648, %v3237_v57 }
 0x45c   :  { %2445 = vrcp.f32 %v3237_v57  ;;  %v1508_v31 = vand.u32 2147483647, %v3237_v57  ;;  %vm1489_vm13 = vweird.f32 %v3235_v44  ;;  %vm1504_vm15 = vweird.f32 %v3237_v57 }
 0x45d   :  { %v1438_v48 = vpop.f32.mrf.mxu0  ;;  %v1461_v61 = vpop.f32.mrf.mxu1  ;;  %v1496_v19 = vor.u32 1.1754944e-38, %v1495_v25  ;;  %vm1494_vm3 = vcmp.eq.f32.partialorder %v1493_v22, 8.507059e+37  ;;  %v1511_v43 = vor.u32 1.1754944e-38, %v1510_v23  ;;  %v1588_v59 = vmul.f32 1.442695, %v1584_v12 }
 0x45e   :  { %v3250_v63 = vadd.f32 %v1438_v48, %v1408_v38  ;;  %v3252_v0 = vadd.f32 %v1461_v61, %v1409_v39  ;;  %vm1509_vm2 = vcmp.eq.f32.partialorder %v1508_v31, 8.507059e+37  ;;  %v1640_v48 = vld [vmem:[%s3610_s10 + $0x80] sm:$0xff]  ;;  %v1590_v62 = vmul.f32 1.442695, %v1585_v37 }
 0x460   :  { %v3261_v5 = vmul.f32 0.70710677, %v3250_v63  ;;  %v3272_v10 = vmul.f32 0.70710677, %v3252_v0 }
 0x461   :  { %v2444_v3 = vpop.eup %2443 }
 0x462   :  { %v3257_v4 = vpop.eup %2445  ;;  %v1485_v50 = vmul.f32 %v2444_v3, %v3235_v44  ;;  %v3275_v14 = vand.u32 2147483647, %v3261_v5  ;;  %v3286_v20 = vand.u32 2147483647, %v3272_v10  ;;  %vm1490_vm11 = vweird.f32 %v2444_v3  ;;  %v1641_v44 = vld [vmem:[%s3610_s10 + $0x88] sm:$0xff] }
 0x463   :  { %v1500_v9 = vmul.f32 %v3257_v4, %v3237_v57  ;;  %vm1505_vm12 = vweird.f32 %v3257_v4  ;;  %vm3313_vm14 = vmor %vm1489_vm13, %vm1490_vm11  ;;  %1692 = vmatpush.msrb.mxu3 %v1641_v44  ;;  %vm1605_vm13 = vcmp.ge.f32.partialorder %v3222_v49, 0.0 }
 0x464   :  { %v1486_v11 = vsub.f32 1.0, %v1485_v50  ;;  %v1478_v27 = vmul.f32 0.3275911, %v3275_v14  ;;  %v1479_v32 = vmul.f32 0.3275911, %v3286_v20  ;;  %vm1506_vm1 = vmor %vm1504_vm15, %vm1505_vm12  ;;  %vm1604_vm12 = vcmp.ge.f32.partialorder %v3219_v45, 0.0 }
 0x465   :  { %v1501_v17 = vsub.f32 1.0, %v1500_v9  ;;  %1693 = vmatpush.msrb.mxu3 %v1640_v48  ;;  %vm1606_vm15 = vcmp.ge.f32.partialorder %v3261_v5, 0.0  ;;  %v2385_v5 = vld [vmem:[%s3611_s11] ss:$0 sm:$0xff]  ;;  %s2290_s11 = sshll.u32 %s3621_s21, 4  ;;  %s2291_s11 = int_to_ptr.hbm [resolvable:$true] %s2290_s11 }
 0x466   :  { %v1487_v21 = vmul.f32 %v2444_v3, %v1486_v11  ;;  %v3301_v18 = vadd.f32 1.0, %v1478_v27  ;;  %v3319_v39 = vadd.f32 1.0, %v1479_v32 }
 0x467   :  { %v1502_v29 = vmul.f32 %v3257_v4, %v1501_v17 }
 0x468   :  { %v1488_v40 = vadd.f32 %v2444_v3, %v1487_v21  ;;  %2447 = vrcp.f32 %v3301_v18  ;;  %v1540_v15 = vand.u32 2147483648, %v3319_v39  ;;  %v1525_v22 = vand.u32 2147483648, %v3301_v18 }
 0x469   :  { %v1503_v38 = vadd.f32 %v3257_v4, %v1502_v29  ;;  %2449 = vrcp.f32 %v3319_v39  ;;  %v1523_v21 = vand.u32 2147483647, %v3301_v18  ;;  %v1538_v28 = vand.u32 2147483647, %v3319_v39 }
 0x46a   :  { %v1492_v47 = vsel %vm3313_vm14, %v2444_v3, %v1488_v40  ;;  %2451 = vpow2.f32 %v1588_v59  ;;  %vm1519_vm6 = vweird.f32 %v3301_v18  ;;  %v1582_v29 = vsub.f32 0.0, %v3275_v14 }
 0x46b   :  { %v3335_v53 = vsel %vm1494_vm3, %v1496_v19, %v1492_v47  ;;  %v1507_v51 = vsel %vm1506_vm1, %v3257_v4, %v1503_v38  ;;  %2453 = vpow2.f32 %v1590_v62  ;;  %vm1534_vm7 = vweird.f32 %v3319_v39 }
 0x46c   :  { %v1544_v55 = vmul.f32 1.0614054, %v3335_v53  ;;  %v3340_v56 = vsel %vm1509_vm2, %v1511_v43, %v1507_v51  ;;  %v1526_v37 = vor.u32 1.1754944e-38, %v1525_v22  ;;  %v1541_v35 = vor.u32 1.1754944e-38, %v1540_v15 }
 0x46d   :  { %v1545_v57 = vmul.f32 1.0614054, %v3340_v56  ;;  %vm1524_vm10 = vcmp.eq.f32.partialorder %v1523_v21, 8.507059e+37  ;;  %vm1539_vm11 = vcmp.eq.f32.partialorder %v1538_v28, 8.507059e+37  ;;  %v1583_v43 = vsub.f32 0.0, %v3286_v20 }
 0x46e   :  { %v2360_v58 = vadd.f32 -1.4531521, %v1544_v55  ;;  %v2448_v1 = vpop.eup %2447  ;;  %vm1648_vm14 = vcmask 523264   ;;  %vm1607_vm3 = vcmp.ge.f32.partialorder %v3272_v10, 0.0  ;;  %vm1729_vm1 = vcmask 1041409  }
 0x46f   :  { %v2361_v61 = vadd.f32 -1.4531521, %v1545_v57  ;;  %v2450_v4 = vpop.eup %2449  ;;  %v1515_v6 = vmul.f32 %v2448_v1, %v3301_v18  ;;  %vm1520_vm4 = vweird.f32 %v2448_v1  ;;  %v1586_v57 = vmul.f32 %v1582_v29, %v3275_v14 }
 0x470   :  { %v1552_v3 = vmul.f32 %v2360_v58, %v3335_v53  ;;  %v1530_v9 = vmul.f32 %v2450_v4, %v3319_v39  ;;  %vm1535_vm5 = vweird.f32 %v2450_v4  ;;  %v2452_v32 = vpop.eup %2451  ;;  %vm1521_vm8 = vmor %vm1519_vm6, %vm1520_vm4  ;;  %v1587_v60 = vmul.f32 %v1583_v43, %v3286_v20 }
 0x471   :  { %v1553_v50 = vmul.f32 %v2361_v61, %v3340_v56  ;;  %v1516_v12 = vsub.f32 1.0, %v1515_v6  ;;  %v2454_v34 = vpop.eup %2453  ;;  %vm1536_vm9 = vmor %vm1534_vm7, %vm1535_vm5  ;;  %vm1732_vm2 = vcmask 386048  }
 0x472   :  { %v1556_v8 = vadd.f32 1.4214138, %v1552_v3  ;;  %v1531_v16 = vsub.f32 1.0, %v1530_v9 }
 0x473   :  { %v1557_v11 = vadd.f32 1.4214138, %v1553_v50  ;;  %v1517_v17 = vmul.f32 %v2448_v1, %v1516_v12  ;;  %v1592_v50 = vmul.f32 1.442695, %v1586_v57 }
 0x474   :  { %v1560_v13 = vmul.f32 %v1556_v8, %v3335_v53  ;;  %v1532_v27 = vmul.f32 %v2450_v4, %v1531_v16  ;;  %v1465_v16 = vmul.f32 0.5, %v3213_v36 }
 0x475   :  { %v1561_v25 = vmul.f32 %v1557_v11, %v3340_v56  ;;  %v1518_v31 = vadd.f32 %v2448_v1, %v1517_v17  ;;  %v1464_v11 = vmul.f32 0.5, %v3211_v42  ;;  %2455 = vpow2.f32 %v1592_v50 }
 0x476   :  { %v2364_v23 = vadd.f32 -0.28449672, %v1560_v13  ;;  %v1533_v33 = vadd.f32 %v2450_v4, %v1532_v27 }
 0x477   :  { %v2365_v2 = vadd.f32 -0.28449672, %v1561_v25  ;;  %v1522_v19 = vsel %vm1521_vm8, %v2448_v1, %v1518_v31 }
 0x478   :  { %v1568_v40 = vmul.f32 %v2364_v23, %v3335_v53  ;;  %v1527_v18 = vsel %vm1524_vm10, %v1526_v37, %v1522_v19  ;;  %v1537_v26 = vsel %vm1536_vm9, %v2450_v4, %v1533_v33  ;;  %v1467_v19 = vmul.f32 0.5, %v3252_v0 }
 0x479   :  { %v1569_v24 = vmul.f32 %v2365_v2, %v3340_v56  ;;  %v1546_v41 = vmul.f32 1.0614054, %v1527_v18  ;;  %v1542_v52 = vsel %vm1539_vm11, %v1541_v35, %v1537_v26 }
 0x47a   :  { %v1572_v38 = vadd.f32 0.2548296, %v1568_v40  ;;  %v1547_v51 = vmul.f32 1.0614054, %v1542_v52 }
 0x47b   :  { %v1573_v47 = vadd.f32 0.2548296, %v1569_v24  ;;  %v2362_v54 = vadd.f32 -1.4531521, %v1546_v41  ;;  %v2456_v27 = vpop.eup %2455 }
 0x47c   :  { %v1576_v39 = vmul.f32 %v1572_v38, %v3335_v53  ;;  %v2363_v58 = vadd.f32 -1.4531521, %v1547_v51 }
 0x47d   :  { %v1577_v55 = vmul.f32 %v1573_v47, %v3340_v56  ;;  %v1554_v48 = vmul.f32 %v2362_v54, %v1527_v18  ;;  %v1594_v56 = vmul.f32 1.442695, %v1587_v60 }
 0x47e   :  { %v1596_v44 = vmul.f32 %v2452_v32, %v1576_v39  ;;  %v1555_v62 = vmul.f32 %v2363_v58, %v1542_v52 }
 0x47f   :  { %v1597_v59 = vmul.f32 %v2454_v34, %v1577_v55  ;;  %v1558_v3 = vadd.f32 1.4214138, %v1554_v48  ;;  %2457 = vpow2.f32 %v1594_v56  ;;  %v1466_v34 = vmul.f32 0.5, %v3250_v63 }
 0x480   :  { %v1600_v61 = vsub.f32 1.0, %v1596_v44  ;;  %v1559_v6 = vadd.f32 1.4214138, %v1555_v62 }
 0x481   :  { %v1601_v1 = vsub.f32 1.0, %v1597_v59  ;;  %v1562_v8 = vmul.f32 %v1558_v3, %v1527_v18 }
 0x482   :  { %v1608_v4 = vsub.f32 0.0, %v1600_v61  ;;  %v1563_v14 = vmul.f32 %v1559_v6, %v1542_v52 }
 0x483   :  { %v1609_v53 = vsub.f32 0.0, %v1601_v1  ;;  %v2366_v13 = vadd.f32 -0.28449672, %v1562_v8 }
 0x484   :  { %v1612_v9 = vsel %vm1604_vm12, %v1600_v61, %v1608_v4  ;;  %v2367_v22 = vadd.f32 -0.28449672, %v1563_v14 }
 0x485   :  { %v1616_v20 = vadd.f32 1.0, %v1612_v9  ;;  %v1613_v12 = vsel %vm1605_vm13, %v1601_v1, %v1609_v53  ;;  %v1570_v45 = vmul.f32 %v2366_v13, %v1527_v18  ;;  %v2458_v2 = vpop.eup %2457 }
 0x486   :  { %v1617_v15 = vadd.f32 1.0, %v1613_v12  ;;  %v1571_v21 = vmul.f32 %v2367_v22, %v1542_v52 }
 0x487   :  { %v1620_v25 = vmul.f32 %v1616_v20, %v1464_v11  ;;  %v1574_v23 = vadd.f32 0.2548296, %v1570_v45  ;;  %v1803_v45 = vld [vmem:[%s3614_s14 + $0xb0] sm:$0xff] }
 0x488   :  { %v1621_v17 = vmul.f32 %v1617_v15, %v1465_v16  ;;  %v1575_v49 = vadd.f32 0.2548296, %v1571_v21  ;;  %v1797_v21 = vld [vmem:[%s3614_s14 + $0x80] sm:$0xff]  ;;  %1871 = vmatpush.msra.mxu3 %v1803_v45 }
 0x489   :  { %1671 = vmatmul.f32.vlgmr.msrb.gmra.mxu2 %v1620_v25  ;;  %v1578_v42 = vmul.f32 %v1574_v23, %v1527_v18  ;;  %v1801_v25 = vld [vmem:[%s3614_s14 + $0xa0] sm:$0xff]  ;;  %v1802_v23 = vld [vmem:[%s3614_s14 + $0xa8] sm:$0xff] }
 0x48a   :  { %2368 = vmatmul.msk.f32.vlgmr.msrb.gmra.mxu3 %vm1648_vm14, %v1621_v17  ;;  %v1579_v28 = vmul.f32 %v1575_v49, %v1542_v52  ;;  %1831 = vmatpush.msrb.mxu0 %v1801_v25  ;;  %v1799_v17 = vld [vmem:[%s3614_s14 + $0x90] sm:$0xff]  ;;  %v1793_v49 = vld [vmem:[%s3614_s14 + $0x60] sm:$0xff] }
 0x48b   :  { %v1598_v29 = vmul.f32 %v2456_v27, %v1578_v42  ;;  %1851 = vmatpush.msrb.mxu1 %v1802_v23  ;;  %v1795_v42 = vld [vmem:[%s3614_s14 + $0x70] sm:$0xff]  ;;  %v1798_v27 = vld [vmem:[%s3614_s14 + $0x88] sm:$0xff]  ;;  %1872 = vmatpush.msra.mxu3 %v1799_v17  ;;  %v1981_v45 = vld [vmem:[#allocation2 + $0x280] sm:$0xff] }
 0x48c   :  { %v1599_v36 = vmul.f32 %v2458_v2, %v1579_v28  ;;  %1832 = vmatpush.msrb.mxu0 %v1797_v21  ;;  %v1789_v28 = vld [vmem:[%s3614_s14 + $0x40] sm:$0xff]  ;;  %v1794_v2 = vld [vmem:[%s3614_s14 + $0x68] sm:$0xff] }
 0x48d   :  { %v1602_v31 = vsub.f32 1.0, %v1598_v29  ;;  %1852 = vmatpush.msrb.mxu1 %v1798_v27  ;;  %v1791_v29 = vld [vmem:[%s3614_s14 + $0x50] sm:$0xff]  ;;  %1873 = vmatpush.msra.mxu3 %v1795_v42  ;;  %v1913_v17 = vld [vmem:[#allocation2 + $0x60] sm:$0xff] }
 0x48e   :  { %v1603_v32 = vsub.f32 1.0, %v1599_v36  ;;  %1833 = vmatpush.msrb.mxu0 %v1793_v49  ;;  %v1785_v36 = vld [vmem:[%s3614_s14 + $0x20] sm:$0xff]  ;;  %v1979_v42 = vld [vmem:[#allocation2 + $0x270] sm:$0xff] }
 0x48f   :  { %v1610_v40 = vsub.f32 0.0, %v1602_v31  ;;  %1853 = vmatpush.msrb.mxu1 %v1794_v2  ;;  %1874 = vmatpush.msra.mxu3 %v1791_v29  ;;  %v1945_v21 = vld [vmem:[#allocation2 + $0x160] sm:$0xff]  ;;  %v1911_v27 = vld [vmem:[#allocation2 + $0x50] sm:$0xff] }
 0x490   :  { %v1611_v37 = vsub.f32 0.0, %v1603_v32  ;;  %1834 = vmatpush.msrb.mxu0 %v1789_v28  ;;  %v1943_v28 = vld [vmem:[#allocation2 + $0x150] sm:$0xff]  ;;  %v1909_v29 = vld [vmem:[#allocation2 + $0x40] sm:$0xff] }
 0x491   :  { %v1614_v33 = vsel %vm1606_vm15, %v1602_v31, %v1610_v40  ;;  %v1790_v31 = vld [vmem:[%s3614_s14 + $0x48] sm:$0xff] }
 0x492   :  { %v1618_v24 = vadd.f32 1.0, %v1614_v33  ;;  %v1615_v35 = vsel %vm1607_vm3, %v1603_v32, %v1611_v37  ;;  %v1787_v32 = vld [vmem:[%s3614_s14 + $0x30] sm:$0xff]  ;;  %v1781_v37 = vld [vmem:[%s3614_s14] sm:$0xff]  ;;  %v1786_v33 = vld [vmem:[%s3614_s14 + $0x28] sm:$0xff]  ;;  %1835 = vmatpush.msrb.mxu0 %v1785_v36  ;;  %1854 = vmatpush.msrb.mxu1 %v1790_v31 }
 0x493   :  { %v1619_v38 = vadd.f32 1.0, %v1615_v35  ;;  %v1783_v35 = vld [vmem:[%s3614_s14 + $0x10] sm:$0xff]  ;;  %1875 = vmatpush.msra.mxu3 %v1787_v32  ;;  %v1941_v36 = vld [vmem:[#allocation2 + $0x140] sm:$0xff] }
 0x494   :  { %v1622_v18 = vmul.f32 %v1618_v24, %v1466_v34  ;;  %v1804_v24 = vld [vmem:[%s3614_s14 + $0xb8] sm:$0xff]  ;;  %1836 = vmatpush.msrb.mxu0 %v1781_v37  ;;  %1855 = vmatpush.msrb.mxu1 %v1786_v33  ;;  %v1907_v33 = vld [vmem:[#allocation2 + $0x30] sm:$0xff] }
 0x495   :  { %v1623_v26 = vmul.f32 %v1619_v38, %v1467_v19  ;;  %v1782_v19 = vld [vmem:[%s3614_s14 + $0x8] sm:$0xff]  ;;  %1876 = vmatpush.msra.mxu3 %v1783_v35  ;;  %v1975_v35 = vld [vmem:[#allocation2 + $0x250] sm:$0xff] }
 0x496   :  { %1674 = vmatmul.f32.gmra.mxu2 %v1622_v18  ;;  %1891 = vmatpush.msra.mxu0 %v1804_v24  ;;  %v1796_v18 = vld [vmem:[%s3614_s14 + $0x78] sm:$0xff]  ;;  %v2025_v24 = vld [vmem:[#allocation2 + $0x3e0] sm:$0xff] }
 0x497   :  { %2369 = vmatmul.msk.f32.gmra.mxu3 %vm1648_vm14, %v1623_v26  ;;  %1856 = vmatpush.msrb.mxu1 %v1782_v19  ;;  %v1792_v26 = vld [vmem:[%s3614_s14 + $0x58] sm:$0xff]  ;;  %v1905_v19 = vld [vmem:[#allocation2 + $0x20] sm:$0xff] }
 0x50c   :  { %v1672_v47 = vpop.f32.mrf.mxu2 }
 0x50d   :  { %v1695_v43 = vpop.f32.mrf.mxu3 }
 0x50e   :  { %v1696_v41 = vadd.f32 %v1695_v43, %v1672_v47  ;;  %v1788_v47 = vld [vmem:[%s3614_s14 + $0x38] sm:$0xff]  ;;  %v1931_v43 = vld [vmem:[#allocation2 + $0xf0] sm:$0xff] }
 0x50f   :  { %2035 = vmatpush.msra.mxu1 %v1931_v43  ;;  %v2021_v43 = vld [vmem:[#allocation2 + $0x3c0] sm:$0xff] }
 0x510   :  { %v1701_v10 = vadd.f32 %v1696_v41, %v3136_v30  ;;  %v1963_v41 = vld [vmem:[#allocation2 + $0x1f0] sm:$0xff] }
 0x511   :  { %2055 = vmatpush.msra.mxu2 %v1963_v41  ;;  %v1971_v41 = vld [vmem:[#allocation2 + $0x230] sm:$0xff] }
 0x512   :  { %v1707_v63 = vadd.f32 %v2385_v5, %v1701_v10 }
 0x514   :  { %v1709_v52 = vsel %vm1332_vm0, %v1707_v63, 0.0  ;;  %v1784_v63 = vld [vmem:[%s3614_s14 + $0x18] sm:$0xff] }
 0x515   :  { %v1710_v39 = vrot.slane %v1709_v52, 4 }
 0x517   :  { %v1711_v51 = vadd.f32 %v1710_v39, %v1709_v52  ;;  %v1961_v52 = vld [vmem:[#allocation2 + $0x1e0] sm:$0xff] }
 0x518   :  { %2056 = vmatpush.msra.mxu2 %v1961_v52  ;;  %v1932_v52 = vld [vmem:[#allocation2 + $0xf8] sm:$0xff] }
 0x519   :  { %v1675_v0 = vpop.f32.mrf.mxu2  ;;  %v1712_v57 = vrot.slane %v1711_v51, 2 }
 0x51a   :  { %v1698_v55 = vpop.f32.mrf.mxu3 }
 0x51b   :  { %v1699_v54 = vadd.f32 %v1698_v55, %v1675_v0  ;;  %v1713_v48 = vadd.f32 %v1712_v57, %v1711_v51  ;;  %v1927_v0 = vld [vmem:[#allocation2 + $0xd0] sm:$0xff]  ;;  %v1957_v57 = vld [vmem:[#allocation2 + $0x1c0] sm:$0xff] }
 0x51c   :  { %v1959_v51 = vld [vmem:[#allocation2 + $0x1d0] sm:$0xff] }
 0x51d   :  { %v1702_v44 = vadd.f32 %v1699_v54, %v3143_v7  ;;  %v1714_v1 = vrot.slane %v1713_v48, 1  ;;  %v1995_v55 = vld [vmem:[#allocation2 + $0x2f0] sm:$0xff]  ;;  %2057 = vmatpush.msra.mxu2 %v1959_v51  ;;  %v1969_v51 = vld [vmem:[#allocation2 + $0x220] sm:$0xff] }
 0x51e   :  { %2075 = vmatpush.msrb.mxu3 %v1995_v55  ;;  %v1930_v55 = vld [vmem:[#allocation2 + $0xe8] sm:$0xff] }
 0x51f   :  { %v1708_v58 = vadd.f32 %v2385_v5, %v1702_v44  ;;  %v1715_v3 = vadd.f32 %v1714_v1, %v1713_v48  ;;  %v1929_v5 = vld [vmem:[#allocation2 + $0xe0] sm:$0xff]  ;;  %v1923_v48 = vld [vmem:[#allocation2 + $0xb0] sm:$0xff]  ;;  %2058 = vmatpush.msra.mxu2 %v1957_v57 }
 0x520   :  { %2036 = vmatpush.msra.mxu1 %v1929_v5  ;;  %v1925_v44 = vld [vmem:[#allocation2 + $0xc0] sm:$0xff]  ;;  %v1967_v57 = vld [vmem:[#allocation2 + $0x210] sm:$0xff] }
 0x521   :  { %v1716_v59 = vsel %vm1332_vm0, %v1708_v58, 0.0  ;;  %v1723_v6 = vmul.f32 0.125, %v1715_v3  ;;  %v1993_v58 = vld [vmem:[#allocation2 + $0x2e0] sm:$0xff] }
 0x522   :  { %v1717_v60 = vrot.slane %v1716_v59, 4  ;;  %2037 = vmatpush.msra.mxu1 %v1927_v0  ;;  %2076 = vmatpush.msrb.mxu3 %v1993_v58  ;;  %v1953_v3 = vld [vmem:[#allocation2 + $0x1a0] sm:$0xff]  ;;  %v1928_v58 = vld [vmem:[#allocation2 + $0xd8] sm:$0xff] }
 0x523   :  { %v1901_v5 = vld [vmem:[#allocation2] sm:$0xff] }
 0x524   :  { %v1718_v61 = vadd.f32 %v1717_v60, %v1716_v59  ;;  %v1991_v59 = vld [vmem:[#allocation2 + $0x2d0] sm:$0xff]  ;;  %2038 = vmatpush.msra.mxu1 %v1925_v44  ;;  %v2017_v0 = vld [vmem:[#allocation2 + $0x3a0] sm:$0xff] }
 0x525   :  { %2077 = vmatpush.msrb.mxu3 %v1991_v59  ;;  %v2015_v44 = vld [vmem:[#allocation2 + $0x390] sm:$0xff]  ;;  %v1960_v59 = vld [vmem:[#allocation2 + $0x1d8] sm:$0xff] }
 0x526   :  { %v1719_v62 = vrot.slane %v1718_v61, 2  ;;  %2039 = vmatpush.msra.mxu1 %v1923_v48  ;;  %v1965_v48 = vld [vmem:[#allocation2 + $0x200] sm:$0xff] }
 0x528   :  { %v1720_v30 = vadd.f32 %v1719_v62, %v1718_v61  ;;  %v1955_v61 = vld [vmem:[#allocation2 + $0x1b0] sm:$0xff]  ;;  %v1989_v62 = vld [vmem:[#allocation2 + $0x2c0] sm:$0xff] }
 0x529   :  { %2059 = vmatpush.msra.mxu2 %v1955_v61  ;;  %2078 = vmatpush.msrb.mxu3 %v1989_v62  ;;  %v1926_v61 = vld [vmem:[#allocation2 + $0xc8] sm:$0xff] }
 0x52a   :  { %v1721_v4 = vrot.slane %v1720_v30, 1  ;;  %v1958_v62 = vld [vmem:[#allocation2 + $0x1c8] sm:$0xff] }
 0x52b   :  { %2060 = vmatpush.msra.mxu2 %v1953_v3  ;;  %v1924_v3 = vld [vmem:[#allocation2 + $0xb8] sm:$0xff] }
 0x52c   :  { %v1722_v50 = vadd.f32 %v1721_v4, %v1720_v30  ;;  %v1921_v30 = vld [vmem:[#allocation2 + $0xa0] sm:$0xff]  ;;  %v1987_v4 = vld [vmem:[#allocation2 + $0x2b0] sm:$0xff] }
 0x52d   :  { %2040 = vmatpush.msra.mxu1 %v1921_v30  ;;  %2079 = vmatpush.msrb.mxu3 %v1987_v4  ;;  %v1996_v30 = vld [vmem:[#allocation2 + $0x2f8] sm:$0xff] }
 0x52e   :  { %v1724_v53 = vmul.f32 0.125, %v1722_v50  ;;  %v1956_v4 = vld [vmem:[#allocation2 + $0x1b8] sm:$0xff] }
 0x530   :  { %v1730_v56 = vsel %vm1729_vm1, %v1724_v53, %v1723_v6 }
 0x531   :  { %v1733_v7 = vsel %vm1732_vm2, %v1730_v56, 0.0  ;;  %v1985_v56 = vld [vmem:[#allocation2 + $0x2a0] sm:$0xff] }
 0x532   :  { %1734 = vadd.xlane.f32.xlu1 %v1733_v7  ;;  %2080 = vmatpush.msrb.mxu3 %v1985_v56  ;;  %v1954_v56 = vld [vmem:[#allocation2 + $0x1a8] sm:$0xff] }
 0x5a5   :  { %v1735_v8 = vpop.xlane.xlu1 %1734 }
 0x5a6   :  { %v1736_v9 = vmul.f32 %v1735_v8, %v3147_v46  ;;  %v1917_v8 = vld [vmem:[#allocation2 + $0x80] sm:$0xff] }
 0x5a8   :  { %v1738_v14 = vrot.slane %v1736_v9, 1  ;;  %v3394_v11 = vsub.f32 %v1723_v6, %v1736_v9  ;;  %v1919_v6 = vld [vmem:[#allocation2 + $0x90] sm:$0xff]  ;;  %v1949_v9 = vld [vmem:[#allocation2 + $0x180] sm:$0xff] }
 0x5a9   :  { %2041 = vmatpush.msra.mxu1 %v1919_v6  ;;  %v1994_v6 = vld [vmem:[#allocation2 + $0x2e8] sm:$0xff] }
 0x5aa   :  { %v3396_v20 = vsub.f32 %v1724_v53, %v1738_v14  ;;  %v1743_v13 = vmul.f32 %v3394_v11, %v3394_v11  ;;  %v1951_v53 = vld [vmem:[#allocation2 + $0x190] sm:$0xff]  ;;  %v2386_v14 = vld [vmem:[%s3612_s12] ss:$0 sm:$0xff]  ;;  %s2278_s12 = sshll.u32 %s2546_s16, 4  ;;  %s2279_s12 = int_to_ptr.vmem [resolvable:$true] %s2278_s12 }
 0x5ab   :  { %2061 = vmatpush.msra.mxu2 %v1951_v53  ;;  %2042 = vmatpush.msra.mxu1 %v1917_v8  ;;  %v1922_v53 = vld [vmem:[#allocation2 + $0xa8] sm:$0xff]  ;;  %v1992_v8 = vld [vmem:[#allocation2 + $0x2d8] sm:$0xff] }
 0x5ac   :  { %v1744_v12 = vmul.f32 %v3396_v20, %v3396_v20 }
 0x5ad   :  { %2062 = vmatpush.msra.mxu2 %v1949_v9  ;;  %v1920_v9 = vld [vmem:[#allocation2 + $0x98] sm:$0xff] }
 0x5ae   :  { %v1747_v16 = vrot.slane %v1744_v12, 7 }
 0x5b0   :  { %v1748_v15 = vsel %vm1729_vm1, %v1747_v16, %v1743_v13  ;;  %v1983_v16 = vld [vmem:[#allocation2 + $0x290] sm:$0xff] }
 0x5b1   :  { %v1750_v22 = vsel %vm1732_vm2, %v1748_v15, 0.0  ;;  %v1915_v15 = vld [vmem:[#allocation2 + $0x70] sm:$0xff]  ;;  %2081 = vmatpush.msrb.mxu3 %v1983_v16  ;;  %v1918_v16 = vld [vmem:[#allocation2 + $0x88] sm:$0xff] }
 0x5b2   :  { %1751 = vadd.xlane.f32.xlu2 %v1750_v22  ;;  %v1947_v22 = vld [vmem:[#allocation2 + $0x170] sm:$0xff]  ;;  %2043 = vmatpush.msra.mxu1 %v1915_v15  ;;  %v1950_v15 = vld [vmem:[#allocation2 + $0x188] sm:$0xff] }
 0x5b3   :  { %2063 = vmatpush.msra.mxu2 %v1947_v22  ;;  %2082 = vmatpush.msrb.mxu3 %v1981_v45  ;;  %v2003_v22 = vld [vmem:[#allocation2 + $0x330] sm:$0xff]  ;;  %v1916_v45 = vld [vmem:[#allocation2 + $0x78] sm:$0xff] }
 0x5b4   :  { %2044 = vmatpush.msra.mxu1 %v1913_v17  ;;  %v1948_v17 = vld [vmem:[#allocation2 + $0x178] sm:$0xff] }
 0x5b5   :  { %2064 = vmatpush.msra.mxu2 %v1945_v21  ;;  %2083 = vmatpush.msrb.mxu3 %v1979_v42  ;;  %v2001_v21 = vld [vmem:[#allocation2 + $0x320] sm:$0xff]  ;;  %v1999_v42 = vld [vmem:[#allocation2 + $0x310] sm:$0xff] }
 0x5b6   :  { %2045 = vmatpush.msra.mxu1 %v1911_v27  ;;  %v1984_v27 = vld [vmem:[#allocation2 + $0x298] sm:$0xff] }
 0x5b7   :  { %2065 = vmatpush.msra.mxu2 %v1943_v28  ;;  %v1997_v28 = vld [vmem:[#allocation2 + $0x300] sm:$0xff] }
 0x5b8   :  { %2046 = vmatpush.msra.mxu1 %v1909_v29  ;;  %v2024_v29 = vld [vmem:[#allocation2 + $0x3d8] sm:$0xff] }
 0x5b9   :  { %2066 = vmatpush.msra.mxu2 %v1941_v36  ;;  %v2022_v36 = vld [vmem:[#allocation2 + $0x3c8] sm:$0xff] }
 0x5ba   :  { %2047 = vmatpush.msra.mxu1 %v1907_v33  ;;  %v1982_v33 = vld [vmem:[#allocation2 + $0x288] sm:$0xff] }
 0x5bc   :  { %2048 = vmatpush.msra.mxu1 %v1905_v19  ;;  %v1980_v19 = vld [vmem:[#allocation2 + $0x278] sm:$0xff] }
 0x625   :  { %v1752_v40 = vpop.xlane.xlu2 %1751 }
 0x626   :  { %v1753_v34 = vmul.f32 %v1752_v40, %v3147_v46  ;;  %v1800_v46 = vld [vmem:[%s3614_s14 + $0x98] sm:$0xff]  ;;  %v2027_v40 = vld [vmem:[#allocation2 + $0x3f0] sm:$0xff] }
 0x627   :  { %1892 = vmatpush.msra.mxu0 %v1800_v46  ;;  %v2023_v46 = vld [vmem:[#allocation2 + $0x3d0] sm:$0xff] }
 0x628   :  { %v1754_v38 = vadd.f32 1e-05, %v1753_v34  ;;  %v1939_v34 = vld [vmem:[#allocation2 + $0x130] sm:$0xff] }
 0x629   :  { %1893 = vmatpush.msra.mxu0 %v1796_v18  ;;  %2067 = vmatpush.msra.mxu2 %v1939_v34  ;;  %v1973_v18 = vld [vmem:[#allocation2 + $0x240] sm:$0xff]  ;;  %v2016_v34 = vld [vmem:[#allocation2 + $0x398] sm:$0xff] }
 0x62a   :  { %2459 = vrsqrt.f32 %v1754_v38  ;;  %vm1761_vm5 = vweird.f32 %v1754_v38 }
 0x62b   :  { %1894 = vmatpush.msra.mxu0 %v1792_v26  ;;  %v1903_v26 = vld [vmem:[#allocation2 + $0x10] sm:$0xff] }
 0x62c   :  { %2049 = vmatpush.msra.mxu1 %v1903_v26  ;;  %v1978_v26 = vld [vmem:[#allocation2 + $0x268] sm:$0xff] }
 0x62d   :  { %1895 = vmatpush.msra.mxu0 %v1788_v47  ;;  %v1935_v47 = vld [vmem:[#allocation2 + $0x110] sm:$0xff] }
 0x62e   :  { %2050 = vmatpush.msra.mxu1 %v1901_v5  ;;  %v1976_v5 = vld [vmem:[#allocation2 + $0x258] sm:$0xff] }
 0x62f   :  { %1896 = vmatpush.msra.mxu0 %v1784_v63  ;;  %v1933_v63 = vld [vmem:[#allocation2 + $0x100] sm:$0xff] }
 0x630   :  { %v2460_v10 = vpop.eup %2459 }
 0x631   :  { %v1756_v39 = vmul.f32 %v2460_v10, %v1754_v38  ;;  %vm1762_vm4 = vweird.f32 %v2460_v10  ;;  %v1937_v38 = vld [vmem:[#allocation2 + $0x120] sm:$0xff] }
 0x632   :  { %vm1763_vm6 = vmor %vm1761_vm5, %vm1762_vm4  ;;  %2068 = vmatpush.msra.mxu2 %v1937_v38  ;;  %v2014_v38 = vld [vmem:[#allocation2 + $0x388] sm:$0xff] }
 0x633   :  { %v1757_v54 = vmul.f32 %v2460_v10, %v1756_v39  ;;  %v1964_v39 = vld [vmem:[#allocation2 + $0x1f8] sm:$0xff] }
 0x634   :  { %2069 = vmatpush.msra.mxu2 %v1935_v47  ;;  %v2012_v47 = vld [vmem:[#allocation2 + $0x378] sm:$0xff] }
 0x635   :  { %v1758_v60 = vmul.f32 0.5, %v1757_v54  ;;  %v1962_v54 = vld [vmem:[#allocation2 + $0x1e8] sm:$0xff] }
 0x636   :  { %2070 = vmatpush.msra.mxu2 %v1933_v63  ;;  %v1904_v63 = vld [vmem:[#allocation2 + $0x18] sm:$0xff] }
 0x637   :  { %v1759_v1 = vsub.f32 1.5, %v1758_v60  ;;  %v2013_v60 = vld [vmem:[#allocation2 + $0x380] sm:$0xff] }
 0x638   :  { %2135 = vmatpush.msrb.mxu2 %v1964_v39  ;;  %v1974_v39 = vld [vmem:[#allocation2 + $0x248] sm:$0xff] }
 0x639   :  { %v1760_v50 = vmul.f32 %v2460_v10, %v1759_v1  ;;  %v2011_v1 = vld [vmem:[#allocation2 + $0x370] sm:$0xff] }
 0x63a   :  { %2136 = vmatpush.msrb.mxu2 %v1962_v54  ;;  %v1972_v54 = vld [vmem:[#allocation2 + $0x238] sm:$0xff] }
 0x63b   :  { %v1764_v7 = vsel %vm1763_vm6, %v2460_v10, %v1760_v50  ;;  %v2019_v10 = vld [vmem:[#allocation2 + $0x3b0] sm:$0xff]  ;;  %v2009_v50 = vld [vmem:[#allocation2 + $0x360] sm:$0xff] }
 0x63c   :  { %v1766_v12 = vrot.slane %v1764_v7, 1  ;;  %v1769_v13 = vmul.f32 %v1764_v7, %v3394_v11  ;;  %v2387_v11 = vld [vmem:[%s3613_s13] ss:$0 sm:$0xff]  ;;  %2137 = vmatpush.msrb.mxu2 %v1960_v59  ;;  %v2007_v7 = vld [vmem:[#allocation2 + $0x350] sm:$0xff]  ;;  %v1968_v59 = vld [vmem:[#allocation2 + $0x218] sm:$0xff] }
 0x63e   :  { %v1770_v25 = vmul.f32 %v1766_v12, %v3396_v20  ;;  %v1774_v23 = vmul.f32 %v2386_v14, %v1769_v13  ;;  %v1977_v20 = vld [vmem:[#allocation2 + $0x260] sm:$0xff]  ;;  %2138 = vmatpush.msrb.mxu2 %v1958_v62  ;;  %v1990_v13 = vld [vmem:[#allocation2 + $0x2c8] sm:$0xff] }
 0x63f   :  { %2084 = vmatpush.msrb.mxu3 %v1977_v20  ;;  %v2005_v12 = vld [vmem:[#allocation2 + $0x340] sm:$0xff]  ;;  %v2026_v20 = vld [vmem:[#allocation2 + $0x3e8] sm:$0xff] }
 0x640   :  { %v1775_v49 = vmul.f32 %v2386_v14, %v1770_v25  ;;  %v1779_v31 = vadd.f32 %v2387_v11, %v1774_v23  ;;  %2139 = vmatpush.msrb.mxu2 %v1956_v4  ;;  %v1952_v14 = vld [vmem:[#allocation2 + $0x198] sm:$0xff]  ;;  %v1986_v23 = vld [vmem:[#allocation2 + $0x2a8] sm:$0xff] }
 0x641   :  { %2085 = vmatpush.msrb.mxu3 %v1975_v35  ;;  %v1988_v25 = vld [vmem:[#allocation2 + $0x2b8] sm:$0xff]  ;;  %v1942_v35 = vld [vmem:[#allocation2 + $0x148] sm:$0xff] }
 0x642   :  { %v1780_v2 = vadd.f32 %v2387_v11, %v1775_v49  ;;  %2140 = vmatpush.msrb.mxu2 %v1954_v56  ;;  %v1914_v49 = vld [vmem:[#allocation2 + $0x68] sm:$0xff]  ;;  %v2210_v56 = vld [vmem:[%s3618_s18 + $0x78] sm:$0xff] }
 0x643   :  { %2086 = vmatpush.msrb.mxu3 %v1973_v18  ;;  %v1946_v11 = vld [vmem:[#allocation2 + $0x168] sm:$0xff]  ;;  %v1940_v18 = vld [vmem:[#allocation2 + $0x138] sm:$0xff] }
 0x644   :  { %v1817_v32 = vrot.slane %v1780_v2, 7  ;;  %2141 = vmatpush.msrb.mxu2 %v1952_v14  ;;  %v2028_v2 = vld [vmem:[#allocation2 + $0x3f8] sm:$0xff]  ;;  %v1998_v62 = vld [vmem:[#allocation2 + $0x308] sm:$0xff] }
 0x645   :  { %2087 = vmatpush.msrb.mxu3 %v1971_v41  ;;  %v1938_v41 = vld [vmem:[#allocation2 + $0x128] sm:$0xff] }
 0x646   :  { %v1818_v37 = vsel %vm1729_vm1, %v1817_v32, %v1779_v31  ;;  %2142 = vmatpush.msrb.mxu2 %v1950_v15  ;;  %v2020_v31 = vld [vmem:[#allocation2 + $0x3b8] sm:$0xff]  ;;  %v2018_v32 = vld [vmem:[#allocation2 + $0x3a8] sm:$0xff] }
 0x647   :  { %2370 = vmatmul.msk.f32.vlgmr.msrb.gmra.mxu0 %vm1332_vm0, %v1818_v37  ;;  %2371 = vmatmul.msk.f32.vlgmr.msrb.gmra.mxu1 %vm1332_vm0, %v1818_v37 }
 0x648   :  { %2372 = vmatmul.msk.f32.vlgmr.msra.gmra.mxu3 %vm1332_vm0, %v1818_v37  ;;  %2095 = vmatpush.msrb.mxu0 %v2027_v40  ;;  %v1912_v40 = vld [vmem:[#allocation2 + $0x58] sm:$0xff] }
 0x649   :  { %2115 = vmatpush.msrb.mxu1 %v1932_v52  ;;  %2088 = vmatpush.msrb.mxu3 %v1969_v51  ;;  %v1936_v52 = vld [vmem:[#allocation2 + $0x118] sm:$0xff]  ;;  %v1902_v51 = vld [vmem:[#allocation2 + $0x8] sm:$0xff] }
 0x64a   :  { %2096 = vmatpush.msrb.mxu0 %v2025_v24  ;;  %2143 = vmatpush.msrb.mxu2 %v1948_v17  ;;  %v1910_v24 = vld [vmem:[#allocation2 + $0x48] sm:$0xff] }
 0x64b   :  { %2116 = vmatpush.msrb.mxu1 %v1930_v55  ;;  %2089 = vmatpush.msrb.mxu3 %v1967_v57  ;;  %v1934_v55 = vld [vmem:[#allocation2 + $0x108] sm:$0xff] }
 0x64c   :  { %2097 = vmatpush.msrb.mxu0 %v2023_v46  ;;  %2144 = vmatpush.msrb.mxu2 %v1946_v11  ;;  %v1908_v46 = vld [vmem:[#allocation2 + $0x38] sm:$0xff]  ;;  %v1970_v57 = vld [vmem:[#allocation2 + $0x228] sm:$0xff]  ;;  %v2203_v11 = vld [vmem:[%s3618_s18 + $0x40] sm:$0xff] }
 0x64d   :  { %2117 = vmatpush.msrb.mxu1 %v1928_v58  ;;  %2090 = vmatpush.msrb.mxu3 %v1965_v48  ;;  %v2004_v58 = vld [vmem:[#allocation2 + $0x338] sm:$0xff]  ;;  %v1966_v48 = vld [vmem:[#allocation2 + $0x208] sm:$0xff] }
 0x64e   :  { %2098 = vmatpush.msrb.mxu0 %v2021_v43  ;;  %v1906_v43 = vld [vmem:[#allocation2 + $0x28] sm:$0xff] }
 0x64f   :  { %2373 = vmatmul.msk.f32.vlgmr.msra.gmra.mxu0 %vm1332_vm0, %v1818_v37  ;;  %2118 = vmatpush.msrb.mxu1 %v1926_v61  ;;  %v1944_v37 = vld [vmem:[#allocation2 + $0x158] sm:$0xff]  ;;  %vm2271_vm0 = vcmask 17408  }
 0x650   :  { %2099 = vmatpush.msrb.mxu0 %v2019_v10  ;;  %2155 = vmatpush.msra.mxu3 %v1996_v30  ;;  %v2010_v10 = vld [vmem:[#allocation2 + $0x368] sm:$0xff]  ;;  %v2000_v61 = vld [vmem:[#allocation2 + $0x318] sm:$0xff] }
 0x651   :  { %2119 = vmatpush.msrb.mxu1 %v1924_v3  ;;  %2145 = vmatpush.msrb.mxu2 %v1944_v37  ;;  %v2218_v37 = vld [vmem:[%s3618_s18 + $0xb8] sm:$0xff] }
 0x652   :  { %2100 = vmatpush.msrb.mxu0 %v2017_v0  ;;  %2156 = vmatpush.msra.mxu3 %v1994_v6  ;;  %v2008_v0 = vld [vmem:[#allocation2 + $0x358] sm:$0xff] }
 0x653   :  { %2120 = vmatpush.msrb.mxu1 %v1922_v53  ;;  %2146 = vmatpush.msrb.mxu2 %v1942_v35  ;;  %v2216_v35 = vld [vmem:[%s3618_s18 + $0xa8] sm:$0xff] }
 0x654   :  { %2101 = vmatpush.msrb.mxu0 %v2015_v44  ;;  %2157 = vmatpush.msra.mxu3 %v1992_v8  ;;  %v2006_v44 = vld [vmem:[#allocation2 + $0x348] sm:$0xff]  ;;  %v2209_v8 = vld [vmem:[%s3618_s18 + $0x70] sm:$0xff] }
 0x655   :  { %2121 = vmatpush.msrb.mxu1 %v1920_v9  ;;  %2147 = vmatpush.msrb.mxu2 %v1940_v18  ;;  %v2225_v9 = vld [vmem:[%s3618_s18 + $0xf0] sm:$0xff] }
 0x656   :  { %2102 = vmatpush.msrb.mxu0 %v2013_v60  ;;  %2158 = vmatpush.msra.mxu3 %v1990_v13  ;;  %v2002_v60 = vld [vmem:[#allocation2 + $0x328] sm:$0xff]  ;;  %v2213_v18 = vld [vmem:[%s3618_s18 + $0x90] sm:$0xff] }
 0x657   :  { %2122 = vmatpush.msrb.mxu1 %v1918_v16  ;;  %2148 = vmatpush.msrb.mxu2 %v1938_v41  ;;  %v2208_v13 = vld [vmem:[%s3618_s18 + $0x68] sm:$0xff] }
 0x658   :  { %2103 = vmatpush.msrb.mxu0 %v2011_v1  ;;  %2159 = vmatpush.msra.mxu3 %v1988_v25  ;;  %v1805_v1 = vld [vmem:[%s3615_s15] sm:$0xf]  ;;  %v2224_v16 = vld [vmem:[%s3618_s18 + $0xe8] sm:$0xff] }
 0x659   :  { %2123 = vmatpush.msrb.mxu1 %v1916_v45  ;;  %2149 = vmatpush.msrb.mxu2 %v1936_v52  ;;  %v1807_v30 = vperm.slane %v1805_v1, 0  ;;  %v1808_v3 = vperm.slane %v1805_v1, 1  ;;  %v1809_v14 = vperm.slane %v1805_v1, 2 }
 0x65a   :  { %2104 = vmatpush.msrb.mxu0 %v2009_v50  ;;  %2160 = vmatpush.msra.mxu3 %v1986_v23  ;;  %v2205_v23 = vld [vmem:[%s3618_s18 + $0x50] sm:$0xff] }
 0x65b   :  { %2124 = vmatpush.msrb.mxu1 %v1914_v49  ;;  %2150 = vmatpush.msrb.mxu2 %v1934_v55  ;;  %v2204_v49 = vld [vmem:[%s3618_s18 + $0x48] sm:$0xff] }
 0x65c   :  { %2105 = vmatpush.msrb.mxu0 %v2007_v7  ;;  %2161 = vmatpush.msra.mxu3 %v1984_v27  ;;  %v2226_v7 = vld [vmem:[%s3618_s18 + $0xf8] sm:$0xff] }
 0x65d   :  { %2125 = vmatpush.msrb.mxu1 %v1912_v40  ;;  %v2202_v27 = vld [vmem:[%s3618_s18 + $0x38] sm:$0xff] }
 0x65e   :  { %2106 = vmatpush.msrb.mxu0 %v2005_v12  ;;  %2162 = vmatpush.msra.mxu3 %v1982_v33  ;;  %v1810_v12 = vperm.slane %v1805_v1, 3  ;;  %v2198_v40 = vld [vmem:[%s3618_s18 + $0x18] sm:$0xff]  ;;  %v2197_v33 = vld [vmem:[%s3618_s18 + $0x10] sm:$0xff]  ;;  %v2388_v1 = vld [vmem:[%s3619_s19] ss:$0 sm:$0xff] }
 0x65f   :  { %2126 = vmatpush.msrb.mxu1 %v1910_v24  ;;  %v2196_v24 = vld [vmem:[%s3618_s18 + $0x8] sm:$0xff] }
 0x660   :  { %2107 = vmatpush.msrb.mxu0 %v2003_v22  ;;  %2163 = vmatpush.msra.mxu3 %v1980_v19  ;;  %v2207_v22 = vld [vmem:[%s3618_s18 + $0x60] sm:$0xff] }
 0x661   :  { %2127 = vmatpush.msrb.mxu1 %v1908_v46  ;;  %v2195_v19 = vld [vmem:[%s3618_s18] sm:$0xff]  ;;  %v2214_v46 = vld [vmem:[%s3618_s18 + $0x98] sm:$0xff] }
 0x662   :  { %2108 = vmatpush.msrb.mxu0 %v2001_v21  ;;  %2164 = vmatpush.msra.mxu3 %v1978_v26  ;;  %v2206_v21 = vld [vmem:[%s3618_s18 + $0x58] sm:$0xff]  ;;  %v2212_v26 = vld [vmem:[%s3618_s18 + $0x88] sm:$0xff] }
 0x663   :  { %2128 = vmatpush.msrb.mxu1 %v1906_v43  ;;  %v2029_v43 = vld [vmem:[%s3617_s17] sm:$0x3]  ;;  %s2543_s17 = smov [#allocation6]  }
 0x664   :  { %2109 = vmatpush.msrb.mxu0 %v1999_v42  ;;  %2165 = vmatpush.msra.mxu3 %v1976_v5  ;;  %v2223_v42 = vld [vmem:[%s3618_s18 + $0xe0] sm:$0xff]  ;;  %v2031_v5 = vperm.slane %v2029_v43, 0 }
 0x665   :  { %2129 = vmatpush.msrb.mxu1 %v1904_v63 }
 0x666   :  { %2110 = vmatpush.msrb.mxu0 %v1997_v28  ;;  %2166 = vmatpush.msra.mxu3 %v1974_v39  ;;  %v2222_v28 = vld [vmem:[%s3618_s18 + $0xd8] sm:$0xff] }
 0x667   :  { %2130 = vmatpush.msrb.mxu1 %v1902_v51  ;;  %v2032_v51 = vperm.slane %v2029_v43, 1 }
 0x668   :  { %2175 = vmatpush.msra.mxu0 %v2028_v2  ;;  %2167 = vmatpush.msra.mxu3 %v1972_v54  ;;  %v2201_v2 = vld [vmem:[%s3618_s18 + $0x30] sm:$0xff] }
 0x66a   :  { %2176 = vmatpush.msra.mxu0 %v2026_v20  ;;  %2168 = vmatpush.msra.mxu3 %v1970_v57  ;;  %v2221_v20 = vld [vmem:[%s3618_s18 + $0xd0] sm:$0xff] }
 0x66c   :  { %2177 = vmatpush.msra.mxu0 %v2024_v29  ;;  %2169 = vmatpush.msra.mxu3 %v1968_v59  ;;  %v2200_v29 = vld [vmem:[%s3618_s18 + $0x28] sm:$0xff] }
 0x66e   :  { %2178 = vmatpush.msra.mxu0 %v2022_v36  ;;  %2170 = vmatpush.msra.mxu3 %v1966_v48  ;;  %v2220_v36 = vld [vmem:[%s3618_s18 + $0xc8] sm:$0xff] }
 0x670   :  { %2179 = vmatpush.msra.mxu0 %v2020_v31  ;;  %v2199_v31 = vld [vmem:[%s3618_s18 + $0x20] sm:$0xff] }
 0x672   :  { %2180 = vmatpush.msra.mxu0 %v2018_v32  ;;  %v2219_v32 = vld [vmem:[%s3618_s18 + $0xc0] sm:$0xff] }
 0x674   :  { %2181 = vmatpush.msra.mxu0 %v2016_v34  ;;  %v2217_v34 = vld [vmem:[%s3618_s18 + $0xb0] sm:$0xff] }
 0x676   :  { %2182 = vmatpush.msra.mxu0 %v2014_v38  ;;  %v2215_v38 = vld [vmem:[%s3618_s18 + $0xa0] sm:$0xff] }
 0x678   :  { %2183 = vmatpush.msra.mxu0 %v2012_v47  ;;  %v2211_v47 = vld [vmem:[%s3618_s18 + $0x80] sm:$0xff]  ;;  %s2288_s18 = sshll.u32 %s2543_s17, 4  ;;  %s2289_s18 = int_to_ptr.vmem [resolvable:$true] %s2288_s18 }
 0x679   :  { %2296 = dma.vmem_to_hbm [thread:$0]  %s2289_s18, 1536, %s2291_s11, [#allocation7], %s2544_s30, %s2544_s30, %s2545_s23  }
 0x67a   :  { %2184 = vmatpush.msra.mxu0 %v2010_v10 }
 0x67c   :  { %2185 = vmatpush.msra.mxu0 %v2008_v0 }
 0x67e   :  { %2186 = vmatpush.msra.mxu0 %v2006_v44 }
 0x680   :  { %2187 = vmatpush.msra.mxu0 %v2004_v58 }
 0x682   :  { %2188 = vmatpush.msra.mxu0 %v2002_v60 }
 0x684   :  { %2189 = vmatpush.msra.mxu0 %v2000_v61 }
 0x686   :  { %2190 = vmatpush.msra.mxu0 %v1998_v62 }
 0x6c4   :  { %v1838_v4 = vpop.f32.mrf.mxu0  ;;  %v1858_v50 = vpop.f32.mrf.mxu1 }
 0x6c5   :  { %v1839_v6 = vadd.f32 %v1838_v4, %v1807_v30  ;;  %v1859_v53 = vadd.f32 %v1858_v50, %v1808_v3 }
 0x6c7   :  { %2051 = vmatmul.f32.vlgmr.msra.gmra.mxu1 %v1839_v6  ;;  %2071 = vmatmul.f32.vlgmr.msra.gmra.mxu2 %v1859_v53 }
 0x6c8   :  { %2231 = vmatpush.msra.mxu1 %v2210_v56  ;;  %2251 = vmatpush.msra.mxu2 %v2226_v7 }
 0x6ca   :  { %2232 = vmatpush.msra.mxu1 %v2209_v8  ;;  %2252 = vmatpush.msra.mxu2 %v2225_v9 }
 0x6cb   :  { %v1878_v15 = vpop.f32.mrf.mxu3 }
 0x6cc   :  { %v1879_v25 = vadd.f32 %v1878_v15, %v1809_v14  ;;  %v1898_v45 = vpop.f32.mrf.mxu0  ;;  %2233 = vmatpush.msra.mxu1 %v2208_v13  ;;  %2253 = vmatpush.msra.mxu2 %v2224_v16 }
 0x6cd   :  { %v1899_v17 = vadd.f32 %v1898_v45, %v1810_v12 }
 0x6ce   :  { %2091 = vmatmul.f32.vlgmr.msrb.gmra.mxu3 %v1879_v25  ;;  %2234 = vmatpush.msra.mxu1 %v2207_v22 }
 0x6cf   :  { %2111 = vmatmul.f32.vlgmr.msrb.gmra.mxu0 %v1899_v17  ;;  %2131 = vmatmul.f32.vlgmr.msrb.gmra.mxu1 %v1839_v6 }
 0x6d0   :  { %2151 = vmatmul.f32.vlgmr.msrb.gmra.mxu2 %v1859_v53  ;;  %2235 = vmatpush.msra.mxu1 %v2206_v21 }
 0x6d1   :  { %2254 = vmatpush.msra.mxu2 %v2223_v42 }
 0x6d2   :  { %2236 = vmatpush.msra.mxu1 %v2205_v23 }
 0x6d3   :  { %2255 = vmatpush.msra.mxu2 %v2222_v28 }
 0x6d4   :  { %2237 = vmatpush.msra.mxu1 %v2204_v49 }
 0x6d5   :  { %2256 = vmatpush.msra.mxu2 %v2221_v20 }
 0x6d6   :  { %2171 = vmatmul.f32.vlgmr.msra.gmra.mxu3 %v1879_v25  ;;  %2238 = vmatpush.msra.mxu1 %v2203_v11 }
 0x6d7   :  { %2191 = vmatmul.f32.vlgmr.msra.gmra.mxu0 %v1899_v17  ;;  %2257 = vmatpush.msra.mxu2 %v2220_v36 }
 0x6d8   :  { %2239 = vmatpush.msra.mxu1 %v2202_v27 }
 0x6d9   :  { %2258 = vmatpush.msra.mxu2 %v2219_v32 }
 0x6da   :  { %2240 = vmatpush.msra.mxu1 %v2201_v2 }
 0x6db   :  { %2259 = vmatpush.msra.mxu2 %v2218_v37 }
 0x6dc   :  { %2241 = vmatpush.msra.mxu1 %v2200_v29 }
 0x6dd   :  { %2260 = vmatpush.msra.mxu2 %v2217_v34 }
 0x6de   :  { %2242 = vmatpush.msra.mxu1 %v2199_v31 }
 0x6df   :  { %2261 = vmatpush.msra.mxu2 %v2216_v35 }
 0x6e0   :  { %2243 = vmatpush.msra.mxu1 %v2198_v40 }
 0x6e1   :  { %2262 = vmatpush.msra.mxu2 %v2215_v38 }
 0x6e2   :  { %2244 = vmatpush.msra.mxu1 %v2197_v33 }
 0x6e3   :  { %2263 = vmatpush.msra.mxu2 %v2214_v46 }
 0x6e4   :  { %2245 = vmatpush.msra.mxu1 %v2196_v24 }
 0x6e5   :  { %2264 = vmatpush.msra.mxu2 %v2213_v18 }
 0x6e6   :  { %2246 = vmatpush.msra.mxu1 %v2195_v19 }
 0x6e7   :  { %2265 = vmatpush.msra.mxu2 %v2212_v26 }
 0x6e9   :  { %2266 = vmatpush.msra.mxu2 %v2211_v47 }
 0x744   :  { %v2052_v41 = vpop.f32.mrf.mxu1 }
 0x745   :  { %v2053_v63 = vadd.f32 %v2052_v41, %v2031_v5 }
 0x74a   :  { %v2072_v10 = vpop.f32.mrf.mxu2 }
 0x74b   :  { %v2073_v52 = vadd.f32 %v2072_v10, %v2053_v63 }
 0x74c   :  { %v2112_v39 = vpop.f32.mrf.mxu0  ;;  %v2132_v54 = vpop.f32.mrf.mxu1 }
 0x74d   :  { %v2133_v58 = vadd.f32 %v2132_v54, %v2032_v51 }
 0x751   :  { %v2092_v0 = vpop.f32.mrf.mxu3 }
 0x752   :  { %v2093_v55 = vadd.f32 %v2092_v0, %v2073_v52 }
 0x753   :  { %v2152_v57 = vpop.f32.mrf.mxu2 }
 0x754   :  { %v2113_v44 = vadd.f32 %v2112_v39, %v2093_v55  ;;  %v2153_v59 = vadd.f32 %v2152_v57, %v2133_v58  ;;  %v2192_v61 = vpop.f32.mrf.mxu0 }
 0x756   :  { %2247 = vmatmul.f32.vlgmr.msra.gmra.mxu1 %v2113_v44 }
 0x759   :  { %v2172_v60 = vpop.f32.mrf.mxu3 }
 0x75a   :  { %v2173_v48 = vadd.f32 %v2172_v60, %v2153_v59 }
 0x75c   :  { %v2193_v62 = vadd.f32 %v2192_v61, %v2173_v48 }
 0x75e   :  { %2267 = vmatmul.f32.vlgmr.msra.gmra.mxu2 %v2193_v62 }
 0x7d3   :  { %v2248_v30 = vpop.f32.mrf.mxu1 }
 0x7d4   :  { %v2249_v3 = vadd.f32 %v2388_v1, %v2248_v30 }
 0x7e1   :  { %v2268_v4 = vpop.f32.mrf.mxu2 }
 0x7e2   :  { %v2269_v50 = vadd.f32 %v2268_v4, %v2249_v3 }
 0x7e4   :  { %2272 = vst.msk [vmem:[#allocation5] sm:$0x3] %vm2271_vm0, %v2269_v50 }
 0x7e5   :  { %2283 = dma.vmem_to_hbm [thread:$0]  %s2279_s12, 32, %s2281_s4, [#allocation4]  }
 0x7e6   :  { %2535 = dma.done.wait [#allocation4], 32  }
 0x7e7   :  { %2536 = vsyncadd [#allocation4], 4294967264 }
 0x7e8   :  { %2537 = dma.done.wait [#allocation7], 1536  }
 0x7e9   :  { %2538 = vsyncadd [#allocation7], 4294965760 }
 0x7ea   :  { %2305 = vsyncpa [#allocation3], 1 }
 0x7eb   :  { %2306 = vsyncpa [#allocation4], 1 }
 0x7ec   :  { %2307 = vsyncpa [#allocation7], 1 }

</bundles_post_ra>
